<compile_context>
chip_gen: v7x
topology: tpu7x:2x2x1
jax: 0.10.0
libtpu: 0.0.40
codegen_flags: <defaults>
</compile_context>

<pallas_src>
import functools

import jax
import jax.numpy as jnp
from jax.experimental import pallas as pl
from jax.experimental.pallas import tpu as pltpu

HIDDEN = 750
HIDDEN_PAD = 768           # 750 padded up to a multiple of 128 lanes


def _round_up(x, m):
    return -(-x // m) * m


def _packed_width(action_dim, latent_dim):
    """Lane-dense packed-output width for [u | mean | std | 0...], >=128."""
    return max(128, _round_up(action_dim + 2 * latent_dim, 128))


# --------------------------------------------------------------------------
# Kernel
# --------------------------------------------------------------------------
def _vae_kernel(sa_ref, state_ref, eps_ref,
                w1_ref, b1_ref,
                w2_ref, b2_ref,
                wml_ref, bml_ref,
                wd1_ref, bd1_ref,
                wd2_ref, bd2_ref,
                wd3_ref, bd3_ref,
                out_ref, *, action_dim, latent_dim):
    dot = functools.partial(jnp.dot, preferred_element_type=jnp.float32)
    bf16 = jnp.bfloat16
    a0 = action_dim
    ld = latent_dim

    sa = sa_ref[...]          # (TB, state+action)  bf16
    s = state_ref[...]        # (TB, state)         bf16
    eps = eps_ref[...]        # (TB, latent)        f32

    # ---- encoder ----
    h = jnp.maximum(dot(sa, w1_ref[...]) + b1_ref[...], 0.0)                 # f32
    h = jnp.maximum(dot(h.astype(bf16), w2_ref[...]) + b2_ref[...], 0.0)     # f32

    # fused mean / log_std head: the (H_pad, OUT_PAD) weight slab already has
    # mean placed at lanes [A, A+L) and log_std at [A+L, A+2L); other lanes 0.
    ml_slab = dot(h.astype(bf16), wml_ref[...]) + bml_ref[...]               # (TB, OUT_PAD)
    std_slab = jnp.exp(jnp.clip(ml_slab, -5.0, 5.0))                         # EUP; only std lanes used

    mean = ml_slab[:, a0:a0 + ld]                                            # (TB, L)
    std = std_slab[:, a0 + ld:a0 + 2 * ld]                                   # (TB, L)
    z = mean + std * eps                                                     # reparameterization

    # ---- decoder ---- single fused d1 dot over cat([state, z], 1)
    sz = jnp.concatenate([s, z.astype(bf16)], axis=1)                        # (TB, state+latent)
    d = jnp.maximum(dot(sz, wd1_ref[...]) + bd1_ref[...], 0.0)
    d = jnp.maximum(dot(d.astype(bf16), wd2_ref[...]) + bd2_ref[...], 0.0)
    # wd3 is zero-padded to OUT_PAD columns -> this dot emits the output slab
    # directly, with u in lanes [0, A) and exact zeros elsewhere.
    u_slab = dot(d.astype(bf16), wd3_ref[...]) + bd3_ref[...]                # (TB, OUT_PAD)
    # NOTE: reference forward applies no tanh / max_action scaling (decode == d3(a)).

    # ---- pack [u | mean | std | 0...] without concatenate / zeros tensors ----
    lane = jax.lax.broadcasted_iota(jnp.int32, ml_slab.shape, 1)
    is_mean = (lane >= a0) & (lane < a0 + ld)
    is_std = (lane >= a0 + ld) & (lane < a0 + 2 * ld)
    head_slab = jnp.where(is_mean, ml_slab, jnp.where(is_std, std_slab, 0.0))
    out_ref[...] = u_slab + head_slab


# --------------------------------------------------------------------------
# Wrapper
# --------------------------------------------------------------------------
def _choose_batch_tile(batch, target=512):
    """Big tiles (amortize per-step overhead), >=2 grid steps so v7x's two
    TensorCores both get work, rounded to 8 sublanes from ceil(B / n_steps)
    so padding waste stays small for awkward batch sizes."""
    if batch <= 8:
        return 8
    n_steps = max(2, pl.cdiv(batch, target))
    return _round_up(pl.cdiv(batch, n_steps), 8)


def vae_forward(state, action, eps, kparams, *, batch_tile=None):
    """Fused VAE forward.  state:(B,S) action:(B,A) eps:(B,L) -> (u, mean, std)."""
    B, _ = state.shape
    action_dim = action.shape[1]
    latent_dim = eps.shape[1]
    out_pad = kparams["wd3"].shape[1]
    assert out_pad % 128 == 0 and action_dim + 2 * latent_dim <= out_pad, (
        "packed output width must be a multiple of 128 lanes and hold u|mean|std")

    tb = batch_tile if batch_tile is not None else _choose_batch_tile(B)
    b_pad = _round_up(B, tb)

    def pad_b(x):
        return jnp.pad(x, ((0, b_pad - B), (0, 0))) if b_pad != B else x

    # fold torch.cat([state, action], 1) into the wrapper; activations -> bf16
    sa = pad_b(jnp.concatenate([state, action], axis=1)).astype(jnp.bfloat16)
    s_in = pad_b(state).astype(jnp.bfloat16)
    eps_in = pad_b(eps).astype(jnp.float32)

    weights = (kparams["w1"], kparams["b1"],
               kparams["w2"], kparams["b2"],
               kparams["wml"], kparams["bml"],
               kparams["wd1"], kparams["bd1"],
               kparams["wd2"], kparams["bd2"],
               kparams["wd3"], kparams["bd3"])

    def act_spec(arr):          # activations: tiled over the batch axis
        return pl.BlockSpec((tb, arr.shape[1]), lambda i: (i, 0))

    def w_spec(arr):            # weights/biases: constant index_map -> fetched
        return pl.BlockSpec(arr.shape, lambda i: (0, 0))   # once, VMEM-resident

    in_specs = [act_spec(sa), act_spec(s_in), act_spec(eps_in)]
    in_specs += [w_spec(w) for w in weights]
    out_spec = pl.BlockSpec((tb, out_pad), lambda i: (i, 0))

    kern = functools.partial(_vae_kernel,
                             action_dim=action_dim, latent_dim=latent_dim)

    # TB<=512 keeps VMEM (double-buffered bf16 weights + activation tiles +
    # spills) well under 32 MiB, which is safe on every generation (v7x has
    # only 64 MiB/TC), so a single chip-agnostic limit is used.
    packed = pl.pallas_call(
        kern,
        out_shape=jax.ShapeDtypeStruct((b_pad, out_pad), jnp.float32),
        grid=(b_pad // tb,),
        in_specs=in_specs,
        out_specs=out_spec,
        compiler_params=pltpu.CompilerParams(
            dimension_semantics=("parallel",),
            vmem_limit_bytes=32 * 1024 * 1024),
    )(sa, s_in, eps_in, *weights)

    u = packed[:B, :action_dim]
    mean = packed[:B, action_dim:action_dim + latent_dim]
    std = packed[:B, action_dim + latent_dim:action_dim + 2 * latent_dim]
    return u, mean, std


# --------------------------------------------------------------------------
# Parameters
# --------------------------------------------------------------------------
def init_params(key, state_dim, action_dim, latent_dim, hidden=HIDDEN):
    """Synthetic f32 parameters with the nn.Module's shapes (W kept as (in,out))."""
    ks = jax.random.split(key, 14)

    def lin(kw, kb, fan_in, fan_out):
        scale = 1.0 / jnp.sqrt(jnp.float32(fan_in))
        w = jax.random.uniform(kw, (fan_in, fan_out), jnp.float32, -scale, scale)
        b = jax.random.uniform(kb, (1, fan_out), jnp.float32, -scale, scale)
        return w, b

    w1, b1 = lin(ks[0], ks[1], state_dim + action_dim, hidden)
    w2, b2 = lin(ks[2], ks[3], hidden, hidden)
    wm, bm = lin(ks[4], ks[5], hidden, latent_dim)
    wls, bls = lin(ks[6], ks[7], hidden, latent_dim)
    wd1, bd1 = lin(ks[8], ks[9], state_dim + latent_dim, hidden)
    wd2, bd2 = lin(ks[10], ks[11], hidden, hidden)
    wd3, bd3 = lin(ks[12], ks[13], hidden, action_dim)
    return dict(w1=w1, b1=b1, w2=w2, b2=b2, wm=wm, bm=bm, wls=wls, bls=bls,
                wd1=wd1, bd1=bd1, wd2=wd2, bd2=bd2, wd3=wd3, bd3=bd3)


def prepare_params(p, hidden_pad=HIDDEN_PAD):
    """One-time prep: pad hidden 750->768, fuse + pre-place heads in the output
    slab layout, keep d1 as a single (state+latent, 768) weight, cast bf16."""
    hidden = p["w2"].shape[0]
    action_dim = p["wd3"].shape[1]
    latent_dim = p["wm"].shape[1]
    out_pad = _packed_width(action_dim, latent_dim)
    ph = hidden_pad - hidden

    pad_cols = lambda w: jnp.pad(w, ((0, 0), (0, ph)))
    pad_rows = lambda w: jnp.pad(w, ((0, ph), (0, 0)))
    bf = lambda w: w.astype(jnp.bfloat16)

    # fused mean/log_std head, placed at lane offset action_dim inside the
    # packed-output slab so the kernel epilogue needs no concatenate.
    wml = jnp.zeros((hidden_pad, out_pad), jnp.float32)
    wml = wml.at[:hidden, action_dim:action_dim + latent_dim].set(p["wm"])
    wml = wml.at[:hidden, action_dim + latent_dim:action_dim + 2 * latent_dim].set(p["wls"])
    bml = jnp.zeros((1, out_pad), jnp.float32)
    bml = bml.at[:, action_dim:action_dim + latent_dim].set(p["bm"])
    bml = bml.at[:, action_dim + latent_dim:action_dim + 2 * latent_dim].set(p["bls"])

    # d3 head zero-padded to the slab width -> its dot emits the slab directly.
    wd3 = jnp.zeros((hidden_pad, out_pad), jnp.float32)
    wd3 = wd3.at[:hidden, :action_dim].set(p["wd3"])
    bd3 = jnp.zeros((1, out_pad), jnp.float32)
    bd3 = bd3.at[:, :action_dim].set(p["bd3"])

    return dict(
        w1=bf(pad_cols(p["w1"])),             b1=pad_cols(p["b1"]),
        w2=bf(pad_rows(pad_cols(p["w2"]))),   b2=pad_cols(p["b2"]),
        wml=bf(wml),                          bml=bml,
        wd1=bf(pad_cols(p["wd1"])),           bd1=pad_cols(p["bd1"]),
        wd2=bf(pad_rows(pad_cols(p["wd2"]))), bd2=pad_cols(p["bd2"]),
        wd3=bf(wd3),                          bd3=bd3,
    )


# --------------------------------------------------------------------------
# Pure-JAX f32 reference (for tolerance check against the bf16 kernel)
# --------------------------------------------------------------------------
def vae_reference(state, action, eps, p):
    relu = lambda x: jnp.maximum(x, 0.0)
    h = relu(jnp.concatenate([state, action], 1) @ p["w1"] + p["b1"])
    h = relu(h @ p["w2"] + p["b2"])
    mean = h @ p["wm"] + p["bm"]
    log_std = jnp.clip(h @ p["wls"] + p["bls"], -5.0, 5.0)
    std = jnp.exp(log_std)
    z = mean + std * eps
    d = relu(jnp.concatenate([state, z], 1) @ p["wd1"] + p["bd1"])
    d = relu(d @ p["wd2"] + p["bd2"])
    u = d @ p["wd3"] + p["bd3"]
    return u, mean, std


if __name__ == "__main__":
    STATE_DIM = 12
    ACTION_DIM = 4
    LATENT_DIM = 8
    MAX_ACTION = 1.0  # unused by this forward (no tanh scaling in the reference)

    key = jax.random.PRNGKey(0)
    k_params, k_data = jax.random.split(key)

    params_f32 = init_params(k_params, STATE_DIM, ACTION_DIM, LATENT_DIM)
    kparams = prepare_params(params_f32)   # one-time bf16 cast + padding + head fusion

    # B=8 exercises the single-step small-batch path; B=20 exercises a
    # multi-step grid (2 tiles, padded batch rows) for the megacore path.
    for B in (8, 20):
        ks, ka, ke = jax.random.split(jax.random.fold_in(k_data, B), 3)
        state = jax.random.normal(ks, (B, STATE_DIM), jnp.float32)
        action = jax.random.normal(ka, (B, ACTION_DIM), jnp.float32)
        # torch.randn_like(std) equivalent, generated outside the kernel.
        eps = jax.random.normal(ke, (B, LATENT_DIM), jnp.float32)

        u, mean, std = jax.block_until_ready(
            vae_forward(state, action, eps, kparams))

        assert u.shape == (B, ACTION_DIM)
        assert mean.shape == (B, LATENT_DIM)
        assert std.shape == (B, LATENT_DIM)
        assert bool(jnp.all(jnp.isfinite(u)))
        assert bool(jnp.all(std > 0.0))

        # bf16 weights -> validate against f32 reference with a tolerance
        u_ref, mean_ref, std_ref = vae_reference(state, action, eps, params_f32)
        for got, ref in ((u, u_ref), (mean, mean_ref), (std, std_ref)):
            assert bool(jnp.max(jnp.abs(got - ref)) < 0.25)

    print("KERNEL_OK")
</pallas_src>

<mosaic_0001>
module attributes {stable_mosaic.version = 11 : i64} {
  func.func @_vae_kernel(%arg0: i32, %arg1: memref<8x16xbf16, #tpu.memory_space<vmem>>, %arg2: memref<8x12xbf16, #tpu.memory_space<vmem>>, %arg3: memref<8x8xf32, #tpu.memory_space<vmem>>, %arg4: memref<16x768xbf16, #tpu.memory_space<vmem>>, %arg5: memref<1x768xf32, #tpu.memory_space<vmem>>, %arg6: memref<768x768xbf16, #tpu.memory_space<vmem>>, %arg7: memref<1x768xf32, #tpu.memory_space<vmem>>, %arg8: memref<768x128xbf16, #tpu.memory_space<vmem>>, %arg9: memref<1x128xf32, #tpu.memory_space<vmem>>, %arg10: memref<20x768xbf16, #tpu.memory_space<vmem>>, %arg11: memref<1x768xf32, #tpu.memory_space<vmem>>, %arg12: memref<768x768xbf16, #tpu.memory_space<vmem>>, %arg13: memref<1x768xf32, #tpu.memory_space<vmem>>, %arg14: memref<768x128xbf16, #tpu.memory_space<vmem>>, %arg15: memref<1x128xf32, #tpu.memory_space<vmem>>, %arg16: memref<8x128xf32, #tpu.memory_space<vmem>>) attributes {dimension_semantics = [#tpu.dimension_semantics<parallel>], iteration_bounds = array<i64: 1>, scalar_prefetch = 0 : i64, scratch_operands = 0 : i64, tpu.core_type = #tpu.core_type<tc>, window_params = [{transform_indices = @transform_0, window_bounds = array<i64: 8, 16>}, {transform_indices = @transform_1, window_bounds = array<i64: 8, 12>}, {transform_indices = @transform_2, window_bounds = array<i64: 8, 8>}, {pipeline_mode = #tpu.pipeline_mode<synchronous>, transform_indices = @transform_3, window_bounds = array<i64: 16, 768>}, {pipeline_mode = #tpu.pipeline_mode<synchronous>, transform_indices = @transform_4, window_bounds = array<i64: 1, 768>}, {pipeline_mode = #tpu.pipeline_mode<synchronous>, transform_indices = @transform_5, window_bounds = array<i64: 768, 768>}, {pipeline_mode = #tpu.pipeline_mode<synchronous>, transform_indices = @transform_6, window_bounds = array<i64: 1, 768>}, {pipeline_mode = #tpu.pipeline_mode<synchronous>, transform_indices = @transform_7, window_bounds = array<i64: 768, 128>}, {pipeline_mode = #tpu.pipeline_mode<synchronous>, transform_indices = @transform_8, window_bounds = array<i64: 1, 128>}, {pipeline_mode = #tpu.pipeline_mode<synchronous>, transform_indices = @transform_9, window_bounds = array<i64: 20, 768>}, {pipeline_mode = #tpu.pipeline_mode<synchronous>, transform_indices = @transform_10, window_bounds = array<i64: 1, 768>}, {pipeline_mode = #tpu.pipeline_mode<synchronous>, transform_indices = @transform_11, window_bounds = array<i64: 768, 768>}, {pipeline_mode = #tpu.pipeline_mode<synchronous>, transform_indices = @transform_12, window_bounds = array<i64: 1, 768>}, {pipeline_mode = #tpu.pipeline_mode<synchronous>, transform_indices = @transform_13, window_bounds = array<i64: 768, 128>}, {pipeline_mode = #tpu.pipeline_mode<synchronous>, transform_indices = @transform_14, window_bounds = array<i64: 1, 128>}, {transform_indices = @transform_15, window_bounds = array<i64: 8, 128>}]} {
    %c0 = arith.constant 0 : index
    %c0_0 = arith.constant 0 : index
    %0 = vector.load %arg1[%c0, %c0_0] : memref<8x16xbf16, #tpu.memory_space<vmem>>, vector<8x16xbf16>
    %c0_1 = arith.constant 0 : index
    %c0_2 = arith.constant 0 : index
    %1 = vector.load %arg2[%c0_1, %c0_2] : memref<8x12xbf16, #tpu.memory_space<vmem>>, vector<8x12xbf16>
    %c0_3 = arith.constant 0 : index
    %c0_4 = arith.constant 0 : index
    %2 = vector.load %arg3[%c0_3, %c0_4] : memref<8x8xf32, #tpu.memory_space<vmem>>, vector<8x8xf32>
    %c0_5 = arith.constant 0 : index
    %c0_6 = arith.constant 0 : index
    %3 = vector.load %arg4[%c0_5, %c0_6] : memref<16x768xbf16, #tpu.memory_space<vmem>>, vector<16x768xbf16>
    %cst = arith.constant dense<0.000000e+00> : vector<8x768xf32>
    %4 = tpu.matmul %0, %3, %cst {dimension_numbers = #tpu.dot_dimension_numbers<[1], [0], [0], [1], [0, 0, 1, 1], [], []>} : vector<8x16xbf16>, vector<16x768xbf16>, vector<8x768xf32> -> vector<8x768xf32>
    %c0_7 = arith.constant 0 : index
    %c0_8 = arith.constant 0 : index
    %5 = vector.load %arg5[%c0_7, %c0_8] : memref<1x768xf32, #tpu.memory_space<vmem>>, vector<1x768xf32>
    %6 = vector.broadcast %5 : vector<1x768xf32> to vector<8x768xf32>
    %7 = arith.addf %4, %6 : vector<8x768xf32>
    %cst_9 = arith.constant 0.000000e+00 : f32
    %8 = vector.broadcast %cst_9 : f32 to vector<8x768xf32>
    %9 = arith.maximumf %7, %8 : vector<8x768xf32>
    %10 = arith.truncf %9 : vector<8x768xf32> to vector<8x768xbf16>
    %c0_10 = arith.constant 0 : index
    %c0_11 = arith.constant 0 : index
    %11 = vector.load %arg6[%c0_10, %c0_11] : memref<768x768xbf16, #tpu.memory_space<vmem>>, vector<768x768xbf16>
    %cst_12 = arith.constant dense<0.000000e+00> : vector<8x768xf32>
    %12 = tpu.matmul %10, %11, %cst_12 {dimension_numbers = #tpu.dot_dimension_numbers<[1], [0], [0], [1], [0, 0, 1, 1], [], []>} : vector<8x768xbf16>, vector<768x768xbf16>, vector<8x768xf32> -> vector<8x768xf32>
    %c0_13 = arith.constant 0 : index
    %c0_14 = arith.constant 0 : index
    %13 = vector.load %arg7[%c0_13, %c0_14] : memref<1x768xf32, #tpu.memory_space<vmem>>, vector<1x768xf32>
    %14 = vector.broadcast %13 : vector<1x768xf32> to vector<8x768xf32>
    %15 = arith.addf %12, %14 : vector<8x768xf32>
    %cst_15 = arith.constant 0.000000e+00 : f32
    %16 = vector.broadcast %cst_15 : f32 to vector<8x768xf32>
    %17 = arith.maximumf %15, %16 : vector<8x768xf32>
    %18 = arith.truncf %17 : vector<8x768xf32> to vector<8x768xbf16>
    %c0_16 = arith.constant 0 : index
    %c0_17 = arith.constant 0 : index
    %19 = vector.load %arg8[%c0_16, %c0_17] : memref<768x128xbf16, #tpu.memory_space<vmem>>, vector<768x128xbf16>
    %cst_18 = arith.constant dense<0.000000e+00> : vector<8x128xf32>
    %20 = tpu.matmul %18, %19, %cst_18 {dimension_numbers = #tpu.dot_dimension_numbers<[1], [0], [0], [1], [0, 0, 1, 1], [], []>} : vector<8x768xbf16>, vector<768x128xbf16>, vector<8x128xf32> -> vector<8x128xf32>
    %c0_19 = arith.constant 0 : index
    %c0_20 = arith.constant 0 : index
    %21 = vector.load %arg9[%c0_19, %c0_20] : memref<1x128xf32, #tpu.memory_space<vmem>>, vector<1x128xf32>
    %22 = vector.broadcast %21 : vector<1x128xf32> to vector<8x128xf32>
    %23 = arith.addf %20, %22 : vector<8x128xf32>
    %cst_21 = arith.constant -5.000000e+00 : f32
    %cst_22 = arith.constant 5.000000e+00 : f32
    %24 = vector.broadcast %cst_21 : f32 to vector<8x128xf32>
    %25 = arith.maximumf %24, %23 : vector<8x128xf32>
    %26 = vector.broadcast %cst_22 : f32 to vector<8x128xf32>
    %27 = arith.minimumf %26, %25 : vector<8x128xf32>
    %28 = math.exp %27 : vector<8x128xf32>
    %29 = vector.extract_strided_slice %23 {offsets = [0, 4], sizes = [8, 8], strides = [1, 1]} : vector<8x128xf32> to vector<8x8xf32>
    %30 = vector.extract_strided_slice %28 {offsets = [0, 12], sizes = [8, 8], strides = [1, 1]} : vector<8x128xf32> to vector<8x8xf32>
    %31 = arith.mulf %30, %2 : vector<8x8xf32>
    %32 = arith.addf %29, %31 : vector<8x8xf32>
    %33 = arith.truncf %32 : vector<8x8xf32> to vector<8x8xbf16>
    %34 = tpu.concatenate %1, %33 in 1 : vector<8x12xbf16>, vector<8x8xbf16> -> vector<8x20xbf16>
    %c0_23 = arith.constant 0 : index
    %c0_24 = arith.constant 0 : index
    %35 = vector.load %arg10[%c0_23, %c0_24] : memref<20x768xbf16, #tpu.memory_space<vmem>>, vector<20x768xbf16>
    %cst_25 = arith.constant dense<0.000000e+00> : vector<8x768xf32>
    %36 = tpu.matmul %34, %35, %cst_25 {dimension_numbers = #tpu.dot_dimension_numbers<[1], [0], [0], [1], [0, 0, 1, 1], [], []>} : vector<8x20xbf16>, vector<20x768xbf16>, vector<8x768xf32> -> vector<8x768xf32>
    %c0_26 = arith.constant 0 : index
    %c0_27 = arith.constant 0 : index
    %37 = vector.load %arg11[%c0_26, %c0_27] : memref<1x768xf32, #tpu.memory_space<vmem>>, vector<1x768xf32>
    %38 = vector.broadcast %37 : vector<1x768xf32> to vector<8x768xf32>
    %39 = arith.addf %36, %38 : vector<8x768xf32>
    %cst_28 = arith.constant 0.000000e+00 : f32
    %40 = vector.broadcast %cst_28 : f32 to vector<8x768xf32>
    %41 = arith.maximumf %39, %40 : vector<8x768xf32>
    %42 = arith.truncf %41 : vector<8x768xf32> to vector<8x768xbf16>
    %c0_29 = arith.constant 0 : index
    %c0_30 = arith.constant 0 : index
    %43 = vector.load %arg12[%c0_29, %c0_30] : memref<768x768xbf16, #tpu.memory_space<vmem>>, vector<768x768xbf16>
    %cst_31 = arith.constant dense<0.000000e+00> : vector<8x768xf32>
    %44 = tpu.matmul %42, %43, %cst_31 {dimension_numbers = #tpu.dot_dimension_numbers<[1], [0], [0], [1], [0, 0, 1, 1], [], []>} : vector<8x768xbf16>, vector<768x768xbf16>, vector<8x768xf32> -> vector<8x768xf32>
    %c0_32 = arith.constant 0 : index
    %c0_33 = arith.constant 0 : index
    %45 = vector.load %arg13[%c0_32, %c0_33] : memref<1x768xf32, #tpu.memory_space<vmem>>, vector<1x768xf32>
    %46 = vector.broadcast %45 : vector<1x768xf32> to vector<8x768xf32>
    %47 = arith.addf %44, %46 : vector<8x768xf32>
    %cst_34 = arith.constant 0.000000e+00 : f32
    %48 = vector.broadcast %cst_34 : f32 to vector<8x768xf32>
    %49 = arith.maximumf %47, %48 : vector<8x768xf32>
    %50 = arith.truncf %49 : vector<8x768xf32> to vector<8x768xbf16>
    %c0_35 = arith.constant 0 : index
    %c0_36 = arith.constant 0 : index
    %51 = vector.load %arg14[%c0_35, %c0_36] : memref<768x128xbf16, #tpu.memory_space<vmem>>, vector<768x128xbf16>
    %cst_37 = arith.constant dense<0.000000e+00> : vector<8x128xf32>
    %52 = tpu.matmul %50, %51, %cst_37 {dimension_numbers = #tpu.dot_dimension_numbers<[1], [0], [0], [1], [0, 0, 1, 1], [], []>} : vector<8x768xbf16>, vector<768x128xbf16>, vector<8x128xf32> -> vector<8x128xf32>
    %c0_38 = arith.constant 0 : index
    %c0_39 = arith.constant 0 : index
    %53 = vector.load %arg15[%c0_38, %c0_39] : memref<1x128xf32, #tpu.memory_space<vmem>>, vector<1x128xf32>
    %54 = vector.broadcast %53 : vector<1x128xf32> to vector<8x128xf32>
    %55 = arith.addf %52, %54 : vector<8x128xf32>
    %56 = tpu.iota {dimensions = array<i32: 1>} : vector<8x128xi32>
    %c4_i32 = arith.constant 4 : i32
    %57 = vector.broadcast %c4_i32 : i32 to vector<8x128xi32>
    %58 = arith.cmpi sge, %56, %57 : vector<8x128xi32>
    %c12_i32 = arith.constant 12 : i32
    %59 = vector.broadcast %c12_i32 : i32 to vector<8x128xi32>
    %60 = arith.cmpi slt, %56, %59 : vector<8x128xi32>
    %61 = arith.andi %58, %60 : vector<8x128xi1>
    %c12_i32_40 = arith.constant 12 : i32
    %62 = vector.broadcast %c12_i32_40 : i32 to vector<8x128xi32>
    %63 = arith.cmpi sge, %56, %62 : vector<8x128xi32>
    %c20_i32 = arith.constant 20 : i32
    %64 = vector.broadcast %c20_i32 : i32 to vector<8x128xi32>
    %65 = arith.cmpi slt, %56, %64 : vector<8x128xi32>
    %66 = arith.andi %63, %65 : vector<8x128xi1>
    %cst_41 = arith.constant 0.000000e+00 : f32
    %67 = vector.broadcast %cst_41 : f32 to vector<8x128xf32>
    %68 = arith.select %66, %28, %67 : vector<8x128xi1>, vector<8x128xf32>
    %69 = arith.select %61, %23, %68 : vector<8x128xi1>, vector<8x128xf32>
    %70 = arith.addf %55, %69 : vector<8x128xf32>
    %c0_42 = arith.constant 0 : index
    %c0_43 = arith.constant 0 : index
    %71 = vector.load %arg16[%c0_42, %c0_43] : memref<8x128xf32, #tpu.memory_space<vmem>>, vector<8x128xf32>
    tpu.vector_store %arg16[%c0_42, %c0_43], %70 {strides = array<i32>} : memref<8x128xf32, #tpu.memory_space<vmem>>, vector<8x128xf32>,
    return
  }
  func.func @transform_0(%arg0: i32) -> (i32, i32) {
    %c0_i32 = arith.constant 0 : i32
    %c0_i32_0 = arith.constant 0 : i32
    return %arg0, %c0_i32 : i32, i32
  }
  func.func @transform_1(%arg0: i32) -> (i32, i32) {
    %c0_i32 = arith.constant 0 : i32
    %c0_i32_0 = arith.constant 0 : i32
    return %arg0, %c0_i32 : i32, i32
  }
  func.func @transform_2(%arg0: i32) -> (i32, i32) {
    %c0_i32 = arith.constant 0 : i32
    %c0_i32_0 = arith.constant 0 : i32
    return %arg0, %c0_i32 : i32, i32
  }
  func.func @transform_3(%arg0: i32) -> (i32, i32) {
    %c0_i32 = arith.constant 0 : i32
    %c0_i32_0 = arith.constant 0 : i32
    %c0_i32_1 = arith.constant 0 : i32
    return %c0_i32, %c0_i32_0 : i32, i32
  }
  func.func @transform_4(%arg0: i32) -> (i32, i32) {
    %c0_i32 = arith.constant 0 : i32
    %c0_i32_0 = arith.constant 0 : i32
    %c0_i32_1 = arith.constant 0 : i32
    return %c0_i32, %c0_i32_0 : i32, i32
  }
  func.func @transform_5(%arg0: i32) -> (i32, i32) {
    %c0_i32 = arith.constant 0 : i32
    %c0_i32_0 = arith.constant 0 : i32
    %c0_i32_1 = arith.constant 0 : i32
    return %c0_i32, %c0_i32_0 : i32, i32
  }
  func.func @transform_6(%arg0: i32) -> (i32, i32) {
    %c0_i32 = arith.constant 0 : i32
    %c0_i32_0 = arith.constant 0 : i32
    %c0_i32_1 = arith.constant 0 : i32
    return %c0_i32, %c0_i32_0 : i32, i32
  }
  func.func @transform_7(%arg0: i32) -> (i32, i32) {
    %c0_i32 = arith.constant 0 : i32
    %c0_i32_0 = arith.constant 0 : i32
    %c0_i32_1 = arith.constant 0 : i32
    return %c0_i32, %c0_i32_0 : i32, i32
  }
  func.func @transform_8(%arg0: i32) -> (i32, i32) {
    %c0_i32 = arith.constant 0 : i32
    %c0_i32_0 = arith.constant 0 : i32
    %c0_i32_1 = arith.constant 0 : i32
    return %c0_i32, %c0_i32_0 : i32, i32
  }
  func.func @transform_9(%arg0: i32) -> (i32, i32) {
    %c0_i32 = arith.constant 0 : i32
    %c0_i32_0 = arith.constant 0 : i32
    %c0_i32_1 = arith.constant 0 : i32
    return %c0_i32, %c0_i32_0 : i32, i32
  }
  func.func @transform_10(%arg0: i32) -> (i32, i32) {
    %c0_i32 = arith.constant 0 : i32
    %c0_i32_0 = arith.constant 0 : i32
    %c0_i32_1 = arith.constant 0 : i32
    return %c0_i32, %c0_i32_0 : i32, i32
  }
  func.func @transform_11(%arg0: i32) -> (i32, i32) {
    %c0_i32 = arith.constant 0 : i32
    %c0_i32_0 = arith.constant 0 : i32
    %c0_i32_1 = arith.constant 0 : i32
    return %c0_i32, %c0_i32_0 : i32, i32
  }
  func.func @transform_12(%arg0: i32) -> (i32, i32) {
    %c0_i32 = arith.constant 0 : i32
    %c0_i32_0 = arith.constant 0 : i32
    %c0_i32_1 = arith.constant 0 : i32
    return %c0_i32, %c0_i32_0 : i32, i32
  }
  func.func @transform_13(%arg0: i32) -> (i32, i32) {
    %c0_i32 = arith.constant 0 : i32
    %c0_i32_0 = arith.constant 0 : i32
    %c0_i32_1 = arith.constant 0 : i32
    return %c0_i32, %c0_i32_0 : i32, i32
  }
  func.func @transform_14(%arg0: i32) -> (i32, i32) {
    %c0_i32 = arith.constant 0 : i32
    %c0_i32_0 = arith.constant 0 : i32
    %c0_i32_1 = arith.constant 0 : i32
    return %c0_i32, %c0_i32_0 : i32, i32
  }
  func.func @transform_15(%arg0: i32) -> (i32, i32) {
    %c0_i32 = arith.constant 0 : i32
    %c0_i32_0 = arith.constant 0 : i32
    return %arg0, %c0_i32 : i32, i32
  }
}

</mosaic_0001>

<bundles_post_ra>
// kernel: tpu_custom_call.1
= control target key start
LH: loop header
LB: loop body
LE: loop exit
PB: predicated region body
PF: predicated region fallthrough
CT: control target
= control target key end

     0   :  { %20 = vsyncpa [#allocation3], 0  ;;  %s8842_s0 = inlined_call_operand.hbm [shape: bf16[8,16], index: 0, kind: input, shape index: {}]   ;;  %s8843_s1 = inlined_call_operand.hbm [shape: bf16[8,12], index: 1, kind: input, shape index: {}]   ;;  %s8844_s2 = inlined_call_operand.hbm [shape: f32[8,8], index: 2, kind: input, shape index: {}]   ;;  %s8845_s3 = inlined_call_operand.hbm [shape: bf16[16,768], index: 3, kind: input, shape index: {}]   ;;  %s8846_s4 = inlined_call_operand.hbm [shape: f32[1,768], index: 4, kind: input, shape index: {}]   ;;  %s8847_s5 = inlined_call_operand.hbm [shape: bf16[768,768], index: 5, kind: input, shape index: {}]   ;;  %s8848_s6 = inlined_call_operand.hbm [shape: f32[1,768], index: 6, kind: input, shape index: {}]   ;;  %s8849_s7 = inlined_call_operand.hbm [shape: bf16[768,128], index: 7, kind: input, shape index: {}]   ;;  %s8850_s8 = inlined_call_operand.hbm [shape: f32[1,128], index: 8, kind: input, shape index: {}]   ;;  %s8851_s9 = inlined_call_operand.hbm [shape: bf16[20,768], index: 9, kind: input, shape index: {}]   ;;  %s8852_s10 = inlined_call_operand.hbm [shape: f32[1,768], index: 10, kind: input, shape index: {}]   ;;  %s8853_s11 = inlined_call_operand.hbm [shape: bf16[768,768], index: 11, kind: input, shape index: {}]   ;;  %s8854_s12 = inlined_call_operand.hbm [shape: f32[1,768], index: 12, kind: input, shape index: {}]   ;;  %s8855_s13 = inlined_call_operand.hbm [shape: bf16[768,128], index: 13, kind: input, shape index: {}]   ;;  %s8856_s14 = inlined_call_operand.hbm [shape: f32[1,128], index: 14, kind: input, shape index: {}]   ;;  %s8857_s15 = inlined_call_operand.hbm [shape: f32[8,128], index: 15, kind: output, shape index: {}]  }
   0x1   :  { %21 = vsyncpa [#allocation6], 0 }
   0x2   :  { %22 = vsyncpa [#allocation9], 0 }
   0x3   :  { %23 = vsyncpa [#allocation12], 0 }
   0x4   :  { %24 = vsyncpa [#allocation15], 0 }
   0x5   :  { %25 = vsyncpa [#allocation18], 0 }
   0x6   :  { %26 = vsyncpa [#allocation21], 0 }
   0x7   :  { %27 = vsyncpa [#allocation24], 0 }
   0x8   :  { %28 = vsyncpa [#allocation4], 0  ;;  %s8325_s18 = smov [#allocation5]   ;;  %s8326_s20 = smov [#allocation8]  }
   0x9   :  { %s45_s19 = sshll.u32 %s8325_s18, 4  ;;  %s64_s21 = sshll.u32 %s8326_s20, 4  ;;  %s46_s19 = int_to_ptr.vmem [resolvable:$true] %s45_s19  ;;  %s8429_s21 = int_to_ptr.vmem [resolvable:$true] %s64_s21 }
   0xa   :  { %s7955_s24 = scalar_lea.hbm %s8843_s1, 64 }
   0xb   :  { %p7956_p0 = scmp.ne.s32.totalorder %s8843_s1, %s7955_s24  ;;  %p7959_p1 = scmp.lt.u32.totalorder %s7955_s24, %s8843_s1 }
   0xd   :  { %p7961_p2 = pnand %p7959_p1, %p7956_p0 }
   0xf   :  { %7964 = shalt.err (!%p7961_p2)
}
  0x10   :  { %s7965_s29 = scalar_lea.vmem %s46_s19, 64  ;;  %p7970_p4 = scmp.lt.s32.totalorder %s46_s19, %s46_s19 }
  0x11   :  { %p7966_p3 = scmp.ne.s32.totalorder %s46_s19, %s7965_s29  ;;  %p7971_p5 = scmp.lt.s32.totalorder %s7965_s29, %s7965_s29 }
  0x13   :  { %p7972_p6 = por %p7971_p5, %p7970_p4 }
  0x15   :  { %p7973_p7 = pnand %p7972_p6, %p7966_p3 }
  0x17   :  { %7976 = shalt.err (!%p7973_p7)
}
  0x18   :  { %48 = dma.hbm_to_vmem [thread:$0]  %s8843_s1, 64, %s46_s19, [#allocation6]  }
  0x19   :  { %s7977_s20 = scalar_lea.hbm %s8845_s3, 768 }
  0x1a   :  { %p7978_p8 = scmp.ne.s32.totalorder %s8845_s3, %s7977_s20  ;;  %p7981_p9 = scmp.lt.u32.totalorder %s7977_s20, %s8845_s3 }
  0x1c   :  { %p7983_p10 = pnand %p7981_p9, %p7978_p8 }
  0x1e   :  { %7986 = shalt.err (!%p7983_p10)
}
  0x1f   :  { %s7987_s26 = scalar_lea.vmem %s8429_s21, 768  ;;  %p7992_p12 = scmp.lt.s32.totalorder %s8429_s21, %s8429_s21 }
  0x20   :  { %p7988_p11 = scmp.ne.s32.totalorder %s8429_s21, %s7987_s26  ;;  %p7993_p13 = scmp.lt.s32.totalorder %s7987_s26, %s7987_s26 }
  0x22   :  { %p7994_p0 = por %p7993_p13, %p7992_p12 }
  0x24   :  { %p7995_p1 = pnand %p7994_p0, %p7988_p11 }
  0x26   :  { %7998 = shalt.err (!%p7995_p1)
}
  0x27   :  { %s8327_s1 = smov 384   ;;  %s8328_s19 = smov 24  }
  0x28   :  { %70 = dma.hbm_to_vmem [thread:$0]  %s8845_s3, 768, %s8429_s21, [#allocation9], %s8327_s1, %s8327_s1, %s8328_s19  }
  0x29   :  { %s8329_s29 = smov [#allocation11]   ;;  %s8330_s16 = smov [#allocation14]  }
  0x2a   :  { %s86_s30 = sshll.u32 %s8329_s29, 4  ;;  %s108_s17 = sshll.u32 %s8330_s16, 4  ;;  %s87_s30 = int_to_ptr.vmem [resolvable:$true] %s86_s30  ;;  %s8463_s17 = int_to_ptr.vmem [resolvable:$true] %s108_s17 }
  0x2b   :  { %s7999_s22 = scalar_lea.hbm %s8847_s5, 36864 }
  0x2c   :  { %p8000_p2 = scmp.ne.s32.totalorder %s8847_s5, %s7999_s22  ;;  %p8003_p3 = scmp.lt.u32.totalorder %s7999_s22, %s8847_s5 }
  0x2e   :  { %p8005_p4 = pnand %p8003_p3, %p8000_p2 }
  0x30   :  { %8008 = shalt.err (!%p8005_p4)
}
  0x31   :  { %s8009_s3 = scalar_lea.vmem %s87_s30, 36864  ;;  %p8014_p6 = scmp.lt.s32.totalorder %s87_s30, %s87_s30 }
  0x32   :  { %p8010_p5 = scmp.ne.s32.totalorder %s87_s30, %s8009_s3  ;;  %p8015_p7 = scmp.lt.s32.totalorder %s8009_s3, %s8009_s3 }
  0x34   :  { %p8016_p8 = por %p8015_p7, %p8014_p6 }
  0x36   :  { %p8017_p9 = pnand %p8016_p8, %p8010_p5 }
  0x38   :  { %8020 = shalt.err (!%p8017_p9)
}
  0x39   :  { %92 = dma.hbm_to_vmem [thread:$0]  %s8847_s5, 36864, %s87_s30, [#allocation12], %s8327_s1, %s8327_s1, %s8328_s19  }
  0x3a   :  { %s8021_s16 = scalar_lea.hbm %s8849_s7, 6144 }
  0x3b   :  { %p8022_p10 = scmp.ne.s32.totalorder %s8849_s7, %s8021_s16  ;;  %p8025_p11 = scmp.lt.u32.totalorder %s8021_s16, %s8849_s7 }
  0x3d   :  { %p8027_p12 = pnand %p8025_p11, %p8022_p10 }
  0x3f   :  { %8030 = shalt.err (!%p8027_p12)
}
  0x40   :  { %s8031_s24 = scalar_lea.vmem %s8463_s17, 6144  ;;  %p8036_p0 = scmp.lt.s32.totalorder %s8463_s17, %s8463_s17 }
  0x41   :  { %p8032_p13 = scmp.ne.s32.totalorder %s8463_s17, %s8031_s24  ;;  %p8037_p1 = scmp.lt.s32.totalorder %s8031_s24, %s8031_s24 }
  0x43   :  { %p8038_p2 = por %p8037_p1, %p8036_p0 }
  0x45   :  { %p8039_p3 = pnand %p8038_p2, %p8032_p13 }
  0x47   :  { %8042 = shalt.err (!%p8039_p3)
}
  0x48   :  { %s8331_s5 = smov 64   ;;  %s8332_s30 = smov 4  }
  0x49   :  { %114 = dma.hbm_to_vmem [thread:$0]  %s8849_s7, 6144, %s8463_s17, [#allocation15], %s8331_s5, %s8331_s5, %s8332_s30  }
  0x4a   :  { %s8333_s3 = smov [#allocation17]   ;;  %s8334_s27 = smov [#allocation20]  }
  0x4b   :  { %s130_s21 = sshll.u32 %s8333_s3, 4  ;;  %s152_s28 = sshll.u32 %s8334_s27, 4  ;;  %s131_s21 = int_to_ptr.vmem [resolvable:$true] %s130_s21  ;;  %s8500_s28 = int_to_ptr.vmem [resolvable:$true] %s152_s28 }
  0x4c   :  { %s8043_s18 = scalar_lea.hbm %s8851_s9, 1152 }
  0x4d   :  { %p8044_p4 = scmp.ne.s32.totalorder %s8851_s9, %s8043_s18  ;;  %p8047_p5 = scmp.lt.u32.totalorder %s8043_s18, %s8851_s9 }
  0x4f   :  { %p8049_p6 = pnand %p8047_p5, %p8044_p4 }
  0x51   :  { %8052 = shalt.err (!%p8049_p6)
}
  0x52   :  { %s8053_s7 = scalar_lea.vmem %s131_s21, 1152  ;;  %p8058_p8 = scmp.lt.s32.totalorder %s131_s21, %s131_s21 }
  0x53   :  { %p8054_p7 = scmp.ne.s32.totalorder %s131_s21, %s8053_s7  ;;  %p8059_p9 = scmp.lt.s32.totalorder %s8053_s7, %s8053_s7 }
  0x55   :  { %p8060_p10 = por %p8059_p9, %p8058_p8 }
  0x57   :  { %p8061_p11 = pnand %p8060_p10, %p8054_p7 }
  0x59   :  { %8064 = shalt.err (!%p8061_p11)
}
  0x5a   :  { %136 = dma.hbm_to_vmem [thread:$0]  %s8851_s9, 1152, %s131_s21, [#allocation18], %s8327_s1, %s8327_s1, %s8328_s19  }
  0x5b   :  { %s8065_s27 = scalar_lea.hbm %s8853_s11, 36864 }
  0x5c   :  { %p8066_p12 = scmp.ne.s32.totalorder %s8853_s11, %s8065_s27  ;;  %p8069_p13 = scmp.lt.u32.totalorder %s8065_s27, %s8853_s11 }
  0x5e   :  { %p8071_p0 = pnand %p8069_p13, %p8066_p12 }
  0x60   :  { %8074 = shalt.err (!%p8071_p0)
}
  0x61   :  { %s8075_s22 = scalar_lea.vmem %s8500_s28, 36864  ;;  %p8080_p2 = scmp.lt.s32.totalorder %s8500_s28, %s8500_s28 }
  0x62   :  { %p8076_p1 = scmp.ne.s32.totalorder %s8500_s28, %s8075_s22  ;;  %p8081_p3 = scmp.lt.s32.totalorder %s8075_s22, %s8075_s22 }
  0x64   :  { %p8082_p4 = por %p8081_p3, %p8080_p2 }
  0x66   :  { %p8083_p5 = pnand %p8082_p4, %p8076_p1 }
  0x68   :  { %8086 = shalt.err (!%p8083_p5)
}
  0x69   :  { %158 = dma.hbm_to_vmem [thread:$0]  %s8853_s11, 36864, %s8500_s28, [#allocation21], %s8327_s1, %s8327_s1, %s8328_s19  }
  0x6a   :  { %s8335_s23 = smov [#allocation23]   ;;  %s8336_s7 = smov [#allocation2]  }
  0x6b   :  { %s174_s24 = sshll.u32 %s8335_s23, 4  ;;  %s35_s17 = sshll.u32 %s8336_s7, 4  ;;  %s175_s24 = int_to_ptr.vmem [resolvable:$true] %s174_s24  ;;  %s36_s17 = int_to_ptr.vmem [resolvable:$true] %s35_s17 }
  0x6c   :  { %s8087_s3 = scalar_lea.hbm %s8855_s13, 6144 }
  0x6d   :  { %p8088_p6 = scmp.ne.s32.totalorder %s8855_s13, %s8087_s3  ;;  %p8091_p7 = scmp.lt.u32.totalorder %s8087_s3, %s8855_s13 }
  0x6f   :  { %p8093_p8 = pnand %p8091_p7, %p8088_p6 }
  0x71   :  { %8096 = shalt.err (!%p8093_p8)
}
  0x72   :  { %s8097_s11 = scalar_lea.vmem %s175_s24, 6144  ;;  %p8102_p10 = scmp.lt.s32.totalorder %s175_s24, %s175_s24 }
  0x73   :  { %p8098_p9 = scmp.ne.s32.totalorder %s175_s24, %s8097_s11  ;;  %p8103_p11 = scmp.lt.s32.totalorder %s8097_s11, %s8097_s11 }
  0x75   :  { %p8104_p12 = por %p8103_p11, %p8102_p10 }
  0x77   :  { %p8105_p13 = pnand %p8104_p12, %p8098_p9 }
  0x79   :  { %8108 = shalt.err (!%p8105_p13)
}
  0x7a   :  { %180 = dma.hbm_to_vmem [thread:$0]  %s8855_s13, 6144, %s175_s24, [#allocation24], %s8331_s5, %s8331_s5, %s8332_s30  }
  0x7b   :  { %s8109_s22 = scalar_lea.hbm %s8842_s0, 64 }
  0x7c   :  { %p8110_p0 = scmp.ne.s32.totalorder %s8842_s0, %s8109_s22  ;;  %p8113_p1 = scmp.lt.u32.totalorder %s8109_s22, %s8842_s0 }
  0x7e   :  { %p8115_p2 = pnand %p8113_p1, %p8110_p0 }
  0x80   :  { %8118 = shalt.err (!%p8115_p2)
}
  0x81   :  { %s8119_s25 = scalar_lea.vmem %s36_s17, 64  ;;  %p8124_p4 = scmp.lt.s32.totalorder %s36_s17, %s36_s17 }
  0x82   :  { %p8120_p3 = scmp.ne.s32.totalorder %s36_s17, %s8119_s25  ;;  %p8125_p5 = scmp.lt.s32.totalorder %s8119_s25, %s8119_s25 }
  0x84   :  { %p8126_p6 = por %p8125_p5, %p8124_p4 }
  0x86   :  { %p8127_p7 = pnand %p8126_p6, %p8120_p3 }
  0x88   :  { %8130 = shalt.err (!%p8127_p7)
}
  0x89   :  { %38 = dma.hbm_to_vmem [thread:$0]  %s8842_s0, 64, %s36_s17, [#allocation3]  }
  0x8a   :  { %s8337_s30 = smov [#allocation7]   ;;  %s8338_s26 = smov [#allocation10]  }
  0x8b   :  { %s55_s24 = sshll.u32 %s8337_s30, 4  ;;  %s77_s3 = sshll.u32 %s8338_s26, 4  ;;  %s56_s24 = int_to_ptr.vmem [resolvable:$true] %s55_s24  ;;  %s78_s3 = int_to_ptr.vmem [resolvable:$true] %s77_s3 }
  0x8c   :  { %s8131_s16 = scalar_lea.hbm %s8844_s2, 128 }
  0x8d   :  { %p8132_p8 = scmp.ne.s32.totalorder %s8844_s2, %s8131_s16  ;;  %p8135_p9 = scmp.lt.u32.totalorder %s8131_s16, %s8844_s2 }
  0x8f   :  { %p8137_p10 = pnand %p8135_p9, %p8132_p8 }
  0x91   :  { %8140 = shalt.err (!%p8137_p10)
}
  0x92   :  { %s8141_s0 = scalar_lea.vmem %s56_s24, 128  ;;  %p8146_p12 = scmp.lt.s32.totalorder %s56_s24, %s56_s24 }
  0x93   :  { %p8142_p11 = scmp.ne.s32.totalorder %s56_s24, %s8141_s0  ;;  %p8147_p13 = scmp.lt.s32.totalorder %s8141_s0, %s8141_s0 }
  0x95   :  { %p8148_p0 = por %p8147_p13, %p8146_p12 }
  0x97   :  { %p8149_p1 = pnand %p8148_p0, %p8142_p11 }
  0x99   :  { %8152 = shalt.err (!%p8149_p1)
}
  0x9a   :  { %58 = dma.hbm_to_vmem [thread:$0]  %s8844_s2, 128, %s56_s24, [#allocation6]  }
  0x9b   :  { %s8153_s9 = scalar_lea.hbm %s8846_s4, 96 }
  0x9c   :  { %p8154_p2 = scmp.ne.s32.totalorder %s8846_s4, %s8153_s9  ;;  %p8157_p3 = scmp.lt.u32.totalorder %s8153_s9, %s8846_s4 }
  0x9e   :  { %p8159_p4 = pnand %p8157_p3, %p8154_p2 }
  0xa0   :  { %8162 = shalt.err (!%p8159_p4)
}
  0xa1   :  { %s8163_s13 = scalar_lea.vmem %s78_s3, 96  ;;  %p8168_p6 = scmp.lt.s32.totalorder %s78_s3, %s78_s3 }
  0xa2   :  { %p8164_p5 = scmp.ne.s32.totalorder %s78_s3, %s8163_s13  ;;  %p8169_p7 = scmp.lt.s32.totalorder %s8163_s13, %s8163_s13 }
  0xa4   :  { %p8170_p8 = por %p8169_p7, %p8168_p6 }
  0xa6   :  { %p8171_p9 = pnand %p8170_p8, %p8164_p5 }
  0xa8   :  { %8174 = shalt.err (!%p8171_p9)
}
  0xa9   :  { %80 = dma.hbm_to_vmem [thread:$0]  %s8846_s4, 96, %s78_s3, [#allocation9]  }
  0xaa   :  { %s8339_s30 = smov [#allocation13]   ;;  %s8340_s26 = smov [#allocation16]  }
  0xab   :  { %s99_s24 = sshll.u32 %s8339_s30, 4  ;;  %s121_s27 = sshll.u32 %s8340_s26, 4  ;;  %s100_s24 = int_to_ptr.vmem [resolvable:$true] %s99_s24  ;;  %s122_s27 = int_to_ptr.vmem [resolvable:$true] %s121_s27 }
  0xac   :  { %s8175_s18 = scalar_lea.hbm %s8848_s6, 96 }
  0xad   :  { %p8176_p10 = scmp.ne.s32.totalorder %s8848_s6, %s8175_s18  ;;  %p8179_p11 = scmp.lt.u32.totalorder %s8175_s18, %s8848_s6 }
  0xaf   :  { %p8181_p12 = pnand %p8179_p11, %p8176_p10 }
  0xb1   :  { %8184 = shalt.err (!%p8181_p12)
}
  0xb2   :  { %s8185_s4 = scalar_lea.vmem %s100_s24, 96  ;;  %p8190_p0 = scmp.lt.s32.totalorder %s100_s24, %s100_s24 }
  0xb3   :  { %p8186_p13 = scmp.ne.s32.totalorder %s100_s24, %s8185_s4  ;;  %p8191_p1 = scmp.lt.s32.totalorder %s8185_s4, %s8185_s4 }
  0xb5   :  { %p8192_p2 = por %p8191_p1, %p8190_p0 }
  0xb7   :  { %p8193_p3 = pnand %p8192_p2, %p8186_p13 }
  0xb9   :  { %8196 = shalt.err (!%p8193_p3)
}
  0xba   :  { %102 = dma.hbm_to_vmem [thread:$0]  %s8848_s6, 96, %s100_s24, [#allocation12]  }
  0xbb   :  { %s8197_s22 = scalar_lea.hbm %s8850_s8, 16 }
  0xbc   :  { %p8198_p4 = scmp.ne.s32.totalorder %s8850_s8, %s8197_s22  ;;  %p8201_p5 = scmp.lt.u32.totalorder %s8197_s22, %s8850_s8 }
  0xbe   :  { %p8203_p6 = pnand %p8201_p5, %p8198_p4 }
  0xc0   :  { %8206 = shalt.err (!%p8203_p6)
}
  0xc1   :  { %s8207_s25 = scalar_lea.vmem %s122_s27, 16  ;;  %s8211_s13 = scalar_lea.vmem %s122_s27, 32 }
  0xc2   :  { %p8208_p7 = scmp.ne.s32.totalorder %s122_s27, %s8207_s25  ;;  %p8212_p8 = scmp.lt.s32.totalorder %s122_s27, %s122_s27 }
  0xc3   :  { %p8213_p9 = scmp.lt.s32.totalorder %s8211_s13, %s8207_s25 }
  0xc5   :  { %p8214_p10 = por %p8213_p9, %p8212_p8 }
  0xc7   :  { %p8215_p11 = pnand %p8214_p10, %p8208_p7 }
  0xc9   :  { %8218 = shalt.err (!%p8215_p11)
}
  0xca   :  { %124 = dma.hbm_to_vmem [thread:$0]  %s8850_s8, 16, %s122_s27, [#allocation15]  }
  0xcb   :  { %s8341_s5 = smov [#allocation19]   ;;  %s8342_s24 = smov [#allocation22]  }
  0xcc   :  { %s143_s30 = sshll.u32 %s8341_s5, 4  ;;  %s165_s26 = sshll.u32 %s8342_s24, 4  ;;  %s144_s30 = int_to_ptr.vmem [resolvable:$true] %s143_s30  ;;  %s166_s26 = int_to_ptr.vmem [resolvable:$true] %s165_s26 }
  0xcd   :  { %s8219_s18 = scalar_lea.hbm %s8852_s10, 96 }
  0xce   :  { %p8220_p12 = scmp.ne.s32.totalorder %s8852_s10, %s8219_s18  ;;  %p8223_p13 = scmp.lt.u32.totalorder %s8219_s18, %s8852_s10 }
  0xd0   :  { %p8225_p0 = pnand %p8223_p13, %p8220_p12 }
  0xd2   :  { %8228 = shalt.err (!%p8225_p0)
}
  0xd3   :  { %s8229_s8 = scalar_lea.vmem %s144_s30, 96  ;;  %p8234_p2 = scmp.lt.s32.totalorder %s144_s30, %s144_s30 }
  0xd4   :  { %p8230_p1 = scmp.ne.s32.totalorder %s144_s30, %s8229_s8  ;;  %p8235_p3 = scmp.lt.s32.totalorder %s8229_s8, %s8229_s8 }
  0xd6   :  { %p8236_p4 = por %p8235_p3, %p8234_p2 }
  0xd8   :  { %p8237_p5 = pnand %p8236_p4, %p8230_p1 }
  0xda   :  { %8240 = shalt.err (!%p8237_p5)
}
  0xdb   :  { %146 = dma.hbm_to_vmem [thread:$0]  %s8852_s10, 96, %s144_s30, [#allocation18]  }
  0xdc   :  { %s8241_s28 = scalar_lea.hbm %s8854_s12, 96 }
  0xdd   :  { %p8242_p6 = scmp.ne.s32.totalorder %s8854_s12, %s8241_s28  ;;  %p8245_p7 = scmp.lt.u32.totalorder %s8241_s28, %s8854_s12 }
  0xdf   :  { %p8247_p8 = pnand %p8245_p7, %p8242_p6 }
  0xe1   :  { %8250 = shalt.err (!%p8247_p8)
}
  0xe2   :  { %s8251_s23 = scalar_lea.vmem %s166_s26, 96  ;;  %p8256_p10 = scmp.lt.s32.totalorder %s166_s26, %s166_s26 }
  0xe3   :  { %p8252_p9 = scmp.ne.s32.totalorder %s166_s26, %s8251_s23  ;;  %p8257_p11 = scmp.lt.s32.totalorder %s8251_s23, %s8251_s23 }
  0xe5   :  { %p8258_p12 = por %p8257_p11, %p8256_p10 }
  0xe7   :  { %p8259_p13 = pnand %p8258_p12, %p8252_p9 }
  0xe9   :  { %8262 = shalt.err (!%p8259_p13)
}
  0xea   :  { %168 = dma.hbm_to_vmem [thread:$0]  %s8854_s12, 96, %s166_s26, [#allocation21]  }
  0xeb   :  { %s8343_s25 = smov [#allocation25]   ;;  %s8263_s5 = scalar_lea.hbm %s8856_s14, 16 }
  0xec   :  { %s187_s13 = sshll.u32 %s8343_s25, 4  ;;  %p8264_p0 = scmp.ne.s32.totalorder %s8856_s14, %s8263_s5  ;;  %s188_s13 = int_to_ptr.vmem [resolvable:$true] %s187_s13 }
  0xed   :  { %p8267_p1 = scmp.lt.u32.totalorder %s8263_s5, %s8856_s14 }
  0xef   :  { %p8269_p2 = pnand %p8267_p1, %p8264_p0 }
  0xf1   :  { %8272 = shalt.err (!%p8269_p2)
}
  0xf2   :  { %s8273_s18 = scalar_lea.vmem %s188_s13, 16  ;;  %s8277_s12 = scalar_lea.vmem %s188_s13, 32 }
  0xf3   :  { %p8274_p3 = scmp.ne.s32.totalorder %s188_s13, %s8273_s18  ;;  %p8278_p4 = scmp.lt.s32.totalorder %s188_s13, %s188_s13 }
  0xf4   :  { %p8279_p5 = scmp.lt.s32.totalorder %s8277_s12, %s8273_s18 }
  0xf6   :  { %p8280_p6 = por %p8279_p5, %p8278_p4 }
  0xf8   :  { %p8281_p7 = pnand %p8280_p6, %p8274_p3 }
  0xfa   :  { %8284 = shalt.err (!%p8281_p7)
}
  0xfb   :  { %190 = dma.hbm_to_vmem [thread:$0]  %s8856_s14, 16, %s188_s13, [#allocation24]  }
  0xfc   :  { %8307 = dma.done.wait [#allocation3], 64  }
  0xfd   :  { %8308 = vsyncadd [#allocation3], 4294967232 }
  0xfe   :  { %8309 = dma.done.wait [#allocation6], 192  }
  0xff   :  { %8310 = vsyncadd [#allocation6], 4294967104 }
 0x100   :  { %8311 = dma.done.wait [#allocation9], 864  }
 0x101   :  { %8312 = vsyncadd [#allocation9], 4294966432 }
 0x102   :  { %8313 = dma.done.wait [#allocation12], 36960  }
 0x103   :  { %8314 = vsyncadd [#allocation12], 4294930336 }
 0x104   :  { %8315 = dma.done.wait [#allocation15], 6160  }
 0x105   :  { %8316 = vsyncadd [#allocation15], 4294961136 }
 0x106   :  { %8317 = dma.done.wait [#allocation18], 1248  }
 0x107   :  { %8318 = vsyncadd [#allocation18], 4294966048 }
 0x108   :  { %8319 = dma.done.wait [#allocation21], 36960  }
 0x109   :  { %8320 = vsyncadd [#allocation21], 4294930336 }
 0x10a   :  { %8321 = dma.done.wait [#allocation24], 6160  }
 0x10b   :  { %8322 = vsyncadd [#allocation24], 4294961136  ;;  %v8344_v0 = vmov 0   ;;  %v6968_v1 = vld [vmem:[#allocation8 + $0x4] ss:$24 sps:$4 sm:$0xff]   ;;  %vm308_vm0 = vcmask 130048  }
 0x10c   :  { %344 = vmatprep.mubr.bf16.mxu1 %v8344_v0  ;;  %426 = vmatprep.mubr.bf16.mxu0 %v8344_v0  ;;  %v6970_v2 = vld [vmem:[#allocation8] ss:$24 sps:$4 sm:$0xff]   ;;  %v237_v3 = vld [vmem:[#allocation2] sm:$0xf]  ;;  %v6973_v5 = vld [vmem:[#allocation8 + $0xc] ss:$24 sps:$4 sm:$0xff]  }
 0x10d   :  { %312 = vmatprep.subr.bf16.mxu1 %v6968_v1  ;;  %v6971_v4 = vld [vmem:[#allocation8 + $0x8] ss:$24 sps:$4 sm:$0xff]   ;;  %v6974_v6 = vld [vmem:[#allocation8 + $0x14] ss:$24 sps:$4 sm:$0xff]   ;;  %s8345_s14 = smov 12   ;;  %vm3210_vm1 = vcmask 1041408  }
 0x10e   :  { %313 = vmatpush1.bf16.msra.mxu1 %v6970_v2  ;;  %v6976_v7 = vld [vmem:[#allocation8 + $0x10] ss:$24 sps:$4 sm:$0xff]   ;;  %394 = vmatprep.subr.bf16.mxu0 %v6974_v6  ;;  %v6980_v9 = vld [vmem:[#allocation11 + $0x8] ss:$24 sps:$4 sm:$0xff]   ;;  %v6982_v10 = vld [vmem:[#allocation11 + $0xc] ss:$24 sps:$4 sm:$0xff]  }
 0x10f   :  { %353 = vmatprep.subr.bf16.mxu1 %v6973_v5  ;;  %v6979_v8 = vld [vmem:[#allocation11 + $0x4] ss:$24 sps:$4 sm:$0xff]   ;;  %395 = vmatpush1.bf16.msra.mxu0 %v6976_v7  ;;  %v6977_v12 = vld [vmem:[#allocation11] ss:$24 sps:$4 sm:$0xff]   ;;  %v6985_v14 = vld [vmem:[#allocation11 + $0x34] ss:$24 sps:$4 sm:$0xff]  }
 0x110   :  { %2330 = vmatprep.subr.bf16.mxu0 %v6982_v10  ;;  %v6988_v11 = vld [vmem:[#allocation11 + $0x3c] ss:$24 sps:$4 sm:$0xff]   ;;  %v6986_v13 = vld [vmem:[#allocation11 + $0x38] ss:$24 sps:$4 sm:$0xff]   ;;  %v6994_v15 = vld [vmem:[#allocation11 + $0x6c] ss:$24 sps:$4 sm:$0xff]  }
 0x111   :  { %6056 = vmatmul.mubr.msk.bf16.vlgmr.msra.gmra.mrb[0].mxu1 %vm308_vm0, %v237_v3  ;;  %v6983_v16 = vld [vmem:[#allocation11 + $0x30] ss:$24 sps:$4 sm:$0xff]   ;;  %v7000_v18 = vld [vmem:[#allocation11 + $0x9c] ss:$24 sps:$4 sm:$0xff]   ;;  %v6989_v20 = vld [vmem:[#allocation11 + $0x60] ss:$24 sps:$4 sm:$0xff]  }
 0x112   :  { %354 = vmatpush1.bf16.msra.mxu1 %v6971_v4  ;;  %385 = vmatprep.mubr.bf16.mxu1 %v8344_v0  ;;  %v6992_v17 = vld [vmem:[#allocation11 + $0x68] ss:$24 sps:$4 sm:$0xff]   ;;  %v6991_v19 = vld [vmem:[#allocation11 + $0x64] ss:$24 sps:$4 sm:$0xff]   ;;  %v6998_v21 = vld [vmem:[#allocation11 + $0x98] ss:$24 sps:$4 sm:$0xff]  }
 0x113   :  { %2207 = vmatprep.subr.bf16.mxu1 %v6979_v8  ;;  %6058 = vmatmul.mubr.msk.bf16.vlgmr.msra.gmra.mrb[0].mxu0 %vm308_vm0, %v237_v3  ;;  %v7006_v22 = vld [vmem:[#allocation11 + $0xcc] ss:$24 sps:$4 sm:$0xff]   ;;  %v6995_v24 = vld [vmem:[#allocation11 + $0x90] ss:$24 sps:$4 sm:$0xff]   ;;  %v7012_v26 = vld [vmem:[#allocation11 + $0xfc] ss:$24 sps:$4 sm:$0xff]  }
 0x114   :  { %2331 = vmatpush1.bf16.msra.mxu0 %v6980_v9  ;;  %v6997_v23 = vld [vmem:[#allocation11 + $0x94] ss:$24 sps:$4 sm:$0xff]   ;;  %v7004_v25 = vld [vmem:[#allocation11 + $0xc8] ss:$24 sps:$4 sm:$0xff]   ;;  %v7003_v27 = vld [vmem:[#allocation11 + $0xc4] ss:$24 sps:$4 sm:$0xff]  }
 0x115   :  { %2332 = vmatprep.subr.bf16.mxu0 %v6988_v11  ;;  %v7001_v28 = vld [vmem:[#allocation11 + $0xc0] ss:$24 sps:$4 sm:$0xff]   ;;  %v7018_v30 = vld [vmem:[#allocation11 + $0x12c] ss:$24 sps:$4 sm:$0xff]   ;;  %v7007_v32 = vld [vmem:[#allocation11 + $0xf0] ss:$24 sps:$4 sm:$0xff]   ;;  %v248_v11 = vlaneseq }
 0x116   :  { %v7010_v29 = vld [vmem:[#allocation11 + $0xf8] ss:$24 sps:$4 sm:$0xff]   ;;  %v7009_v31 = vld [vmem:[#allocation11 + $0xf4] ss:$24 sps:$4 sm:$0xff]   ;;  %v7016_v33 = vld [vmem:[#allocation11 + $0x128] ss:$24 sps:$4 sm:$0xff]  }
 0x117   :  { %v7024_v34 = vld [vmem:[#allocation11 + $0x15c] ss:$24 sps:$4 sm:$0xff]   ;;  %v7013_v36 = vld [vmem:[#allocation11 + $0x120] ss:$24 sps:$4 sm:$0xff]   ;;  %v7030_v38 = vld [vmem:[#allocation11 + $0x18c] ss:$24 sps:$4 sm:$0xff]  }
 0x118   :  { %2333 = vmatpush1.bf16.msra.mxu0 %v6986_v13  ;;  %v7015_v35 = vld [vmem:[#allocation11 + $0x124] ss:$24 sps:$4 sm:$0xff]   ;;  %v7022_v37 = vld [vmem:[#allocation11 + $0x158] ss:$24 sps:$4 sm:$0xff]   ;;  %v7021_v39 = vld [vmem:[#allocation11 + $0x154] ss:$24 sps:$4 sm:$0xff]  }
 0x119   :  { %6057 = vmatmul.mubr.msk.bf16.vlgmr.msra.gmra.mrb[4].mxu1 %vm308_vm0, %v237_v3  ;;  %2334 = vmatprep.subr.bf16.mxu0 %v6994_v15  ;;  %v7019_v40 = vld [vmem:[#allocation11 + $0x150] ss:$24 sps:$4 sm:$0xff]   ;;  %v7036_v42 = vld [vmem:[#allocation11 + $0x1bc] ss:$24 sps:$4 sm:$0xff]   ;;  %v7025_v44 = vld [vmem:[#allocation11 + $0x180] ss:$24 sps:$4 sm:$0xff]  }
 0x11a   :  { %2208 = vmatpush1.bf16.msra.mxu1 %v6977_v12  ;;  %v7028_v41 = vld [vmem:[#allocation11 + $0x188] ss:$24 sps:$4 sm:$0xff]   ;;  %v7027_v43 = vld [vmem:[#allocation11 + $0x184] ss:$24 sps:$4 sm:$0xff]   ;;  %v7034_v45 = vld [vmem:[#allocation11 + $0x1b8] ss:$24 sps:$4 sm:$0xff]  }
 0x11b   :  { %2209 = vmatprep.subr.bf16.mxu1 %v6985_v14  ;;  %v7042_v46 = vld [vmem:[#allocation11 + $0x1ec] ss:$24 sps:$4 sm:$0xff]   ;;  %v7040_v48 = vld [vmem:[#allocation11 + $0x1e8] ss:$24 sps:$4 sm:$0xff]   ;;  %v7048_v50 = vld [vmem:[#allocation11 + $0x21c] ss:$24 sps:$4 sm:$0xff]  }
 0x11c   :  { %2335 = vmatpush1.bf16.msra.mxu0 %v6992_v17  ;;  %v7033_v47 = vld [vmem:[#allocation11 + $0x1b4] ss:$24 sps:$4 sm:$0xff]   ;;  %v7031_v49 = vld [vmem:[#allocation11 + $0x1b0] ss:$24 sps:$4 sm:$0xff]   ;;  %v7039_v51 = vld [vmem:[#allocation11 + $0x1e4] ss:$24 sps:$4 sm:$0xff]  }
 0x11d   :  { %2336 = vmatprep.subr.bf16.mxu0 %v7000_v18  ;;  %v7046_v52 = vld [vmem:[#allocation11 + $0x218] ss:$24 sps:$4 sm:$0xff]   ;;  %v7054_v54 = vld [vmem:[#allocation11 + $0x24c] ss:$24 sps:$4 sm:$0xff]   ;;  %v7052_v56 = vld [vmem:[#allocation11 + $0x248] ss:$24 sps:$4 sm:$0xff]  }
 0x11e   :  { %2210 = vmatpush1.bf16.msra.mxu1 %v6983_v16  ;;  %v7037_v53 = vld [vmem:[#allocation11 + $0x1e0] ss:$24 sps:$4 sm:$0xff]   ;;  %v7045_v55 = vld [vmem:[#allocation11 + $0x214] ss:$24 sps:$4 sm:$0xff]   ;;  %v7043_v57 = vld [vmem:[#allocation11 + $0x210] ss:$24 sps:$4 sm:$0xff]  }
 0x11f   :  { %2211 = vmatprep.subr.bf16.mxu1 %v6991_v19  ;;  %v7060_v58 = vld [vmem:[#allocation11 + $0x27c] ss:$24 sps:$4 sm:$0xff]   ;;  %v7058_v60 = vld [vmem:[#allocation11 + $0x278] ss:$24 sps:$4 sm:$0xff]   ;;  %v7066_v2 = vld [vmem:[#allocation11 + $0x2ac] ss:$24 sps:$4 sm:$0xff]  }
 0x120   :  { %2337 = vmatpush1.bf16.msra.mxu0 %v6998_v21  ;;  %v7051_v59 = vld [vmem:[#allocation11 + $0x244] ss:$24 sps:$4 sm:$0xff]   ;;  %v7049_v61 = vld [vmem:[#allocation11 + $0x240] ss:$24 sps:$4 sm:$0xff]   ;;  %v7057_v62 = vld [vmem:[#allocation11 + $0x274] ss:$24 sps:$4 sm:$0xff]  }
 0x121   :  { %2338 = vmatprep.subr.bf16.mxu0 %v7006_v22  ;;  %v7055_v63 = vld [vmem:[#allocation11 + $0x270] ss:$24 sps:$4 sm:$0xff]   ;;  %v7063_v1 = vld [vmem:[#allocation11 + $0x2a4] ss:$24 sps:$4 sm:$0xff]   ;;  %v7061_v3 = vld [vmem:[#allocation11 + $0x2a0] ss:$24 sps:$4 sm:$0xff]  }
 0x122   :  { %2212 = vmatpush1.bf16.msra.mxu1 %v6989_v20  ;;  %v7064_v4 = vld [vmem:[#allocation11 + $0x2a8] ss:$24 sps:$4 sm:$0xff]   ;;  %v7069_v5 = vld [vmem:[#allocation11 + $0x2d4] ss:$24 sps:$4 sm:$0xff]   ;;  %v7070_v8 = vld [vmem:[#allocation11 + $0x2d8] ss:$24 sps:$4 sm:$0xff]  }
 0x123   :  { %2213 = vmatprep.subr.bf16.mxu1 %v6997_v23  ;;  %v7072_v6 = vld [vmem:[#allocation11 + $0x2dc] ss:$24 sps:$4 sm:$0xff]   ;;  %v7067_v7 = vld [vmem:[#allocation11 + $0x2d0] ss:$24 sps:$4 sm:$0xff]   ;;  %v7078_v10 = vld [vmem:[#allocation11 + $0x30c] ss:$24 sps:$4 sm:$0xff]  }
 0x124   :  { %2339 = vmatpush1.bf16.msra.mxu0 %v7004_v25  ;;  %v7075_v9 = vld [vmem:[#allocation11 + $0x304] ss:$24 sps:$4 sm:$0xff]   ;;  %v8655_v12 = vshrl.u32 %v248_v11, 7  ;;  %s8346_s1 = smov 120   ;;  %s8347_s19 = smov 8   ;;  %vm3117_vm2 = vcmask 97280  }
 0x125   :  { %2340 = vmatprep.subr.bf16.mxu0 %v7012_v26  ;;  %v8660_v14 = vld [vmem:[#allocation10] sm:$0x3f]  ;;  %vm3207_vm3 = vcmask 162816   ;;  %s8348_s0 = smov [#allocation26]  }
 0x126   :  { %2214 = vmatpush1.bf16.msra.mxu1 %v6995_v24  ;;  %v8658_v13 = vsub.s32 0, %v8655_v12  ;;  %v8663_v15 = vsub.s32 1, %v8655_v12  ;;  %v8670_v23 = vsub.s32 3, %v8655_v12  ;;  %s6034_s8 = sshll.u32 %s8348_s0, 4  ;;  %s6035_s8 = int_to_ptr.vmem [resolvable:$true] %s6034_s8 }
 0x127   :  { %2215 = vmatprep.subr.bf16.mxu1 %v7003_v27  ;;  %s8285_s27 = scalar_lea.vmem %s6035_s8, 128  ;;  %p8290_p9 = scmp.lt.s32.totalorder %s6035_s8, %s6035_s8 }
 0x128   :  { %2341 = vmatpush1.bf16.msra.mxu0 %v7010_v29  ;;  %v251_v16 = vrot.slane %v8660_v14, %v8658_v13  ;;  %v255_v17 = vrot.slane %v8660_v14, %v8663_v15  ;;  %v7076_v29 = vld [vmem:[#allocation11 + $0x308] ss:$24 sps:$4 sm:$0xff]   ;;  %p8286_p8 = scmp.ne.s32.totalorder %s6035_s8, %s8285_s27  ;;  %p8291_p10 = scmp.lt.s32.totalorder %s8285_s27, %s8285_s27 }
 0x129   :  { %2342 = vmatprep.subr.bf16.mxu0 %v7018_v30 }
 0x12a   :  { %2216 = vmatpush1.bf16.msra.mxu1 %v7001_v28  ;;  %v7073_v28 = vld [vmem:[#allocation11 + $0x300] ss:$24 sps:$4 sm:$0xff]   ;;  %p8292_p11 = por %p8291_p10, %p8290_p9 }
 0x12b   :  { %2217 = vmatprep.subr.bf16.mxu1 %v7009_v31  ;;  %v7081_v31 = vld [vmem:[#allocation11 + $0x334] ss:$24 sps:$4 sm:$0xff]  }
 0x12c   :  { %2343 = vmatpush1.bf16.msra.mxu0 %v7016_v33  ;;  %p8293_p12 = pnand %p8292_p11, %p8286_p8 }
 0x12d   :  { %2344 = vmatprep.subr.bf16.mxu0 %v7024_v34  ;;  %v263_v34 = vrot.slane %v8660_v14, %v8670_v23 }
 0x12e   :  { %2218 = vmatpush1.bf16.msra.mxu1 %v7007_v32 }
 0x12f   :  { %2219 = vmatprep.subr.bf16.mxu1 %v7015_v35 }
 0x130   :  { %2345 = vmatpush1.bf16.msra.mxu0 %v7022_v37  ;;  %v7084_v37 = vld [vmem:[#allocation11 + $0x33c] ss:$24 sps:$4 sm:$0xff]  }
 0x131   :  { %2346 = vmatprep.subr.bf16.mxu0 %v7030_v38  ;;  %v7079_v38 = vld [vmem:[#allocation11 + $0x330] ss:$24 sps:$4 sm:$0xff]  }
 0x132   :  { %2220 = vmatpush1.bf16.msra.mxu1 %v7013_v36 }
 0x133   :  { %2221 = vmatprep.subr.bf16.mxu1 %v7021_v39  ;;  %v7082_v39 = vld [vmem:[#allocation11 + $0x338] ss:$24 sps:$4 sm:$0xff]  }
 0x134   :  { %2347 = vmatpush1.bf16.msra.mxu0 %v7028_v41 }
 0x135   :  { %2348 = vmatprep.subr.bf16.mxu0 %v7036_v42  ;;  %v7087_v42 = vld [vmem:[#allocation11 + $0x364] ss:$24 sps:$4 sm:$0xff]  }
 0x136   :  { %2222 = vmatpush1.bf16.msra.mxu1 %v7019_v40 }
 0x137   :  { %2223 = vmatprep.subr.bf16.mxu1 %v7027_v43  ;;  %v7090_v43 = vld [vmem:[#allocation11 + $0x36c] ss:$24 sps:$4 sm:$0xff]  }
 0x138   :  { %2349 = vmatpush1.bf16.msra.mxu0 %v7034_v45 }
 0x139   :  { %2350 = vmatprep.subr.bf16.mxu0 %v7042_v46 }
 0x13a   :  { %2224 = vmatpush1.bf16.msra.mxu1 %v7025_v44 }
 0x13b   :  { %2225 = vmatprep.subr.bf16.mxu1 %v7033_v47  ;;  %v7085_v47 = vld [vmem:[#allocation11 + $0x360] ss:$24 sps:$4 sm:$0xff]  }
 0x13c   :  { %2351 = vmatpush1.bf16.msra.mxu0 %v7040_v48  ;;  %v7088_v48 = vld [vmem:[#allocation11 + $0x368] ss:$24 sps:$4 sm:$0xff]  }
 0x13d   :  { %2352 = vmatprep.subr.bf16.mxu0 %v7048_v50  ;;  %v7093_v50 = vld [vmem:[#allocation11 + $0x394] ss:$24 sps:$4 sm:$0xff]  }
 0x13e   :  { %2226 = vmatpush1.bf16.msra.mxu1 %v7031_v49 }
 0x13f   :  { %2227 = vmatprep.subr.bf16.mxu1 %v7039_v51  ;;  %v7096_v51 = vld [vmem:[#allocation11 + $0x39c] ss:$24 sps:$4 sm:$0xff]  }
 0x140   :  { %2353 = vmatpush1.bf16.msra.mxu0 %v7046_v52 }
 0x141   :  { %2354 = vmatprep.subr.bf16.mxu0 %v7054_v54  ;;  %v7094_v54 = vld [vmem:[#allocation11 + $0x398] ss:$24 sps:$4 sm:$0xff]  }
 0x142   :  { %2228 = vmatpush1.bf16.msra.mxu1 %v7037_v53  ;;  %v7091_v53 = vld [vmem:[#allocation11 + $0x390] ss:$24 sps:$4 sm:$0xff]  }
 0x143   :  { %2229 = vmatprep.subr.bf16.mxu1 %v7045_v55  ;;  %v7099_v55 = vld [vmem:[#allocation11 + $0x3c4] ss:$24 sps:$4 sm:$0xff]  }
 0x144   :  { %2355 = vmatpush1.bf16.msra.mxu0 %v7052_v56  ;;  %v7102_v56 = vld [vmem:[#allocation11 + $0x3cc] ss:$24 sps:$4 sm:$0xff]  }
 0x145   :  { %2356 = vmatprep.subr.bf16.mxu0 %v7060_v58  ;;  %v7100_v58 = vld [vmem:[#allocation11 + $0x3c8] ss:$24 sps:$4 sm:$0xff]  }
 0x146   :  { %2230 = vmatpush1.bf16.msra.mxu1 %v7043_v57  ;;  %v7097_v57 = vld [vmem:[#allocation11 + $0x3c0] ss:$24 sps:$4 sm:$0xff]  }
 0x147   :  { %2231 = vmatprep.subr.bf16.mxu1 %v7051_v59  ;;  %v7105_v59 = vld [vmem:[#allocation11 + $0x3f4] ss:$24 sps:$4 sm:$0xff]  }
 0x148   :  { %2357 = vmatpush1.bf16.msra.mxu0 %v7058_v60  ;;  %v7108_v60 = vld [vmem:[#allocation11 + $0x3fc] ss:$24 sps:$4 sm:$0xff]  }
 0x149   :  { %2358 = vmatprep.subr.bf16.mxu0 %v7066_v2  ;;  %v7109_v2 = vld [vmem:[#allocation11 + $0x420] ss:$24 sps:$4 sm:$0xff]  }
 0x14a   :  { %2232 = vmatpush1.bf16.msra.mxu1 %v7049_v61  ;;  %v7103_v61 = vld [vmem:[#allocation11 + $0x3f0] ss:$24 sps:$4 sm:$0xff]  }
 0x14b   :  { %2233 = vmatprep.subr.bf16.mxu1 %v7057_v62  ;;  %v7106_v62 = vld [vmem:[#allocation11 + $0x3f8] ss:$24 sps:$4 sm:$0xff]  }
 0x14c   :  { %2359 = vmatpush1.bf16.msra.mxu0 %v7064_v4  ;;  %v7117_v4 = vld [vmem:[#allocation11 + $0x454] ss:$24 sps:$4 sm:$0xff]  }
 0x14d   :  { %2360 = vmatprep.subr.bf16.mxu0 %v7072_v6  ;;  %v7115_v6 = vld [vmem:[#allocation11 + $0x450] ss:$24 sps:$4 sm:$0xff]  }
 0x14e   :  { %2234 = vmatpush1.bf16.msra.mxu1 %v7055_v63  ;;  %v7111_v63 = vld [vmem:[#allocation11 + $0x424] ss:$24 sps:$4 sm:$0xff]  }
 0x14f   :  { %2235 = vmatprep.subr.bf16.mxu1 %v7063_v1  ;;  %v7114_v1 = vld [vmem:[#allocation11 + $0x42c] ss:$24 sps:$4 sm:$0xff]  }
 0x150   :  { %2361 = vmatpush1.bf16.msra.mxu0 %v7070_v8  ;;  %v7123_v8 = vld [vmem:[#allocation11 + $0x484] ss:$24 sps:$4 sm:$0xff]  }
 0x151   :  { %2371 = vmatprep.subr.bf16.mxu0 %v7078_v10  ;;  %v7121_v10 = vld [vmem:[#allocation11 + $0x480] ss:$24 sps:$4 sm:$0xff]  }
 0x152   :  { %2236 = vmatpush1.bf16.msra.mxu1 %v7061_v3  ;;  %v7112_v3 = vld [vmem:[#allocation11 + $0x428] ss:$24 sps:$4 sm:$0xff]  }
 0x153   :  { %2237 = vmatprep.subr.bf16.mxu1 %v7069_v5  ;;  %v7120_v5 = vld [vmem:[#allocation11 + $0x45c] ss:$24 sps:$4 sm:$0xff]  }
 0x156   :  { %2238 = vmatpush1.bf16.msra.mxu1 %v7067_v7  ;;  %v7118_v7 = vld [vmem:[#allocation11 + $0x458] ss:$24 sps:$4 sm:$0xff]  }
 0x157   :  { %2248 = vmatprep.subr.bf16.mxu1 %v7075_v9  ;;  %v7126_v9 = vld [vmem:[#allocation11 + $0x48c] ss:$24 sps:$4 sm:$0xff]  }
 0x1e4   :  { %v346_v18 = vpop.f32.mrb[0].mxu1 }
 0x1e5   :  { %v347_v19 = vadd.f32 %v346_v18, %v251_v16  ;;  %v348_v20 = vpop.f32.mrb[1].mxu1  ;;  %v7124_v16 = vld [vmem:[#allocation11 + $0x488] ss:$24 sps:$4 sm:$0xff]   ;;  %v7132_v18 = vld [vmem:[#allocation11 + $0x4bc] ss:$24 sps:$4 sm:$0xff]  }
 0x1e6   :  { %v349_v21 = vadd.f32 %v348_v20, %v255_v17  ;;  %v350_v22 = vpop.f32.mrb[2].mxu1  ;;  %v8672_v26 = vpop.f32.mrb[0].mxu0  ;;  %v7129_v17 = vld [vmem:[#allocation11 + $0x4b4] ss:$24 sps:$4 sm:$0xff]   ;;  %v7130_v20 = vld [vmem:[#allocation11 + $0x4b8] ss:$24 sps:$4 sm:$0xff]  }
 0x1e7   :  { %v435_v24 = vmax.f32 %v347_v19, 0.0  ;;  %v351_v25 = vpop.f32.mrb[3].mxu1  ;;  %v8674_v30 = vpop.f32.mrb[1].mxu0  ;;  %v7127_v19 = vld [vmem:[#allocation11 + $0x4b0] ss:$24 sps:$4 sm:$0xff]  }
 0x1e8   :  { %v436_v27 = vmax.f32 %v349_v21, 0.0  ;;  %v432_v32 = vpop.f32.mrb[2].mxu0  ;;  %v7135_v21 = vld [vmem:[#allocation11 + $0x4e4] ss:$24 sps:$4 sm:$0xff]   ;;  %v7136_v25 = vld [vmem:[#allocation11 + $0x4e8] ss:$24 sps:$4 sm:$0xff]  }
 0x1e9   :  { %v433_v35 = vpop.f32.mrb[3].mxu0  ;;  %v8680_v36 = vpack.c.bf16 %v435_v24, %v435_v24  ;;  %v7138_v22 = vld [vmem:[#allocation11 + $0x4ec] ss:$24 sps:$4 sm:$0xff]   ;;  %v7133_v24 = vld [vmem:[#allocation11 + $0x4e0] ss:$24 sps:$4 sm:$0xff]  }
 0x1ea   :  { %v8676_v33 = vpack.c.bf16 %v436_v27, %v436_v27  ;;  %v7141_v27 = vld [vmem:[#allocation11 + $0x514] ss:$24 sps:$4 sm:$0xff]   ;;  %v7147_v32 = vld [vmem:[#allocation11 + $0x544] ss:$24 sps:$4 sm:$0xff]   ;;  %v7145_v35 = vld [vmem:[#allocation11 + $0x540] ss:$24 sps:$4 sm:$0xff]  }
 0x1ec   :  { %2239 = vmatprep.mubr.bf16.mxu1 %v8676_v33  ;;  %2362 = vmatprep.mubr.bf16.mxu0 %v8676_v33  ;;  %v8684_v40 = vpop.f32.mrb[4].mxu1 }
 0x1ed   :  { %2240 = vmatmul.mubr.bf16.vlgmr.msra.gmra.mrb[8].mxu1 %v8680_v36  ;;  %2363 = vmatmul.mubr.bf16.vlgmr.msra.gmra.mrb[4].mxu0 %v8680_v36  ;;  %v389_v41 = vpop.f32.mrb[5].mxu1 }
 0x1ee   :  { %2249 = vmatpush1.bf16.msra.mxu1 %v7073_v28  ;;  %2372 = vmatpush1.bf16.msra.mxu0 %v7076_v29  ;;  %v390_v44 = vadd.f32 %v389_v41, %v263_v34  ;;  %v391_v45 = vpop.f32.mrb[6].mxu1  ;;  %v7144_v28 = vld [vmem:[#allocation11 + $0x51c] ss:$24 sps:$4 sm:$0xff]   ;;  %v7139_v29 = vld [vmem:[#allocation11 + $0x510] ss:$24 sps:$4 sm:$0xff]  }
 0x1ef   :  { %2250 = vmatprep.subr.bf16.mxu1 %v7081_v31  ;;  %2373 = vmatprep.subr.bf16.mxu0 %v7084_v37  ;;  %v392_v46 = vpop.f32.mrb[7].mxu1  ;;  %v7142_v31 = vld [vmem:[#allocation11 + $0x518] ss:$24 sps:$4 sm:$0xff]   ;;  %v7150_v34 = vld [vmem:[#allocation11 + $0x54c] ss:$24 sps:$4 sm:$0xff]  }
 0x1f0   :  { %v438_v49 = vmax.f32 %v390_v44, 0.0  ;;  %v7148_v37 = vld [vmem:[#allocation11 + $0x548] ss:$24 sps:$4 sm:$0xff]   ;;  %v7156_v41 = vld [vmem:[#allocation11 + $0x57c] ss:$24 sps:$4 sm:$0xff]   ;;  %v8696_v44 = vsub.s32 5, %v8655_v12 }
 0x1f1   :  { %v7159_v46 = vld [vmem:[#allocation11 + $0x5a4] ss:$24 sps:$4 sm:$0xff]  }
 0x1f2   :  { %2251 = vmatpush1.bf16.msra.mxu1 %v7079_v38  ;;  %2374 = vmatpush1.bf16.msra.mxu0 %v7082_v39  ;;  %v8688_v52 = vpack.c.bf16 %v438_v49, %v438_v49  ;;  %v8693_v38 = vsub.s32 2, %v8655_v12  ;;  %v7153_v39 = vld [vmem:[#allocation11 + $0x574] ss:$24 sps:$4 sm:$0xff]   ;;  %v7160_v49 = vld [vmem:[#allocation11 + $0x5a8] ss:$24 sps:$4 sm:$0xff]  }
 0x1f3   :  { %2252 = vmatprep.subr.bf16.mxu1 %v7087_v42  ;;  %2375 = vmatprep.subr.bf16.mxu0 %v7090_v43  ;;  %v7151_v42 = vld [vmem:[#allocation11 + $0x570] ss:$24 sps:$4 sm:$0xff]  }
 0x1f4   :  { %2280 = vmatprep.mubr.bf16.mxu1 %v8688_v52  ;;  %2403 = vmatprep.mubr.bf16.mxu0 %v8688_v52  ;;  %v7154_v43 = vld [vmem:[#allocation11 + $0x578] ss:$24 sps:$4 sm:$0xff]   ;;  %v259_v45 = vrot.slane %v8660_v14, %v8693_v38 }
 0x1f6   :  { %2253 = vmatpush1.bf16.msra.mxu1 %v7085_v47  ;;  %2376 = vmatpush1.bf16.msra.mxu0 %v7088_v48  ;;  %v7162_v47 = vld [vmem:[#allocation11 + $0x5ac] ss:$24 sps:$4 sm:$0xff]   ;;  %v7157_v48 = vld [vmem:[#allocation11 + $0x5a0] ss:$24 sps:$4 sm:$0xff]  }
 0x1f7   :  { %2254 = vmatprep.subr.bf16.mxu1 %v7093_v50  ;;  %2377 = vmatprep.subr.bf16.mxu0 %v7096_v51  ;;  %v271_v50 = vrot.slane %v8660_v14, %v8696_v44  ;;  %v388_v51 = vadd.f32 %v8684_v40, %v259_v45  ;;  %v7169_v14 = vld [vmem:[#allocation11 + $0x600] ss:$24 sps:$4 sm:$0xff]   ;;  %v7225_v45 = vld [vmem:[#allocation11 + $0x7b4] ss:$24 sps:$4 sm:$0xff]  }
 0x1fa   :  { %2255 = vmatpush1.bf16.msra.mxu1 %v7091_v53  ;;  %2378 = vmatpush1.bf16.msra.mxu0 %v7094_v54  ;;  %v7165_v53 = vld [vmem:[#allocation11 + $0x5d4] ss:$24 sps:$4 sm:$0xff]  }
 0x1fb   :  { %2256 = vmatprep.subr.bf16.mxu1 %v7099_v55  ;;  %2379 = vmatprep.subr.bf16.mxu0 %v7102_v56  ;;  %v7168_v54 = vld [vmem:[#allocation11 + $0x5dc] ss:$24 sps:$4 sm:$0xff]   ;;  %v7163_v55 = vld [vmem:[#allocation11 + $0x5d0] ss:$24 sps:$4 sm:$0xff]  }
 0x1fc   :  { %v7166_v56 = vld [vmem:[#allocation11 + $0x5d8] ss:$24 sps:$4 sm:$0xff]  }
 0x1fe   :  { %2257 = vmatpush1.bf16.msra.mxu1 %v7097_v57  ;;  %2380 = vmatpush1.bf16.msra.mxu0 %v7100_v58  ;;  %v431_v57 = vadd.f32 %v8674_v30, %v271_v50  ;;  %v437_v58 = vmax.f32 %v388_v51, 0.0  ;;  %v7178_v30 = vld [vmem:[#allocation11 + $0x638] ss:$24 sps:$4 sm:$0xff]   ;;  %v7234_v50 = vld [vmem:[#allocation11 + $0x7ec] ss:$24 sps:$4 sm:$0xff]  }
 0x1ff   :  { %2258 = vmatprep.subr.bf16.mxu1 %v7105_v59  ;;  %2381 = vmatprep.subr.bf16.mxu0 %v7108_v60  ;;  %v7171_v59 = vld [vmem:[#allocation11 + $0x604] ss:$24 sps:$4 sm:$0xff]   ;;  %v7229_v51 = vld [vmem:[#allocation11 + $0x7e0] ss:$24 sps:$4 sm:$0xff]  }
 0x200   :  { %v7174_v60 = vld [vmem:[#allocation11 + $0x60c] ss:$24 sps:$4 sm:$0xff]   ;;  %v440_v40 = vmax.f32 %v431_v57, 0.0  ;;  %v7238_v57 = vld [vmem:[#allocation11 + $0x818] ss:$24 sps:$4 sm:$0xff]  }
 0x202   :  { %2259 = vmatpush1.bf16.msra.mxu1 %v7103_v61  ;;  %2382 = vmatpush1.bf16.msra.mxu0 %v7106_v62  ;;  %v7172_v61 = vld [vmem:[#allocation11 + $0x608] ss:$24 sps:$4 sm:$0xff]   ;;  %v8704_v62 = vpack.c.bf16 %v437_v58, %v437_v58  ;;  %v7243_v58 = vld [vmem:[#allocation11 + $0x844] ss:$24 sps:$4 sm:$0xff]  }
 0x203   :  { %2260 = vmatprep.subr.bf16.mxu1 %v7111_v63  ;;  %2383 = vmatprep.subr.bf16.mxu0 %v7114_v1  ;;  %v7177_v63 = vld [vmem:[#allocation11 + $0x634] ss:$24 sps:$4 sm:$0xff]  }
 0x204   :  { %v7180_v1 = vld [vmem:[#allocation11 + $0x63c] ss:$24 sps:$4 sm:$0xff]  }
 0x206   :  { %2261 = vmatpush1.bf16.msra.mxu1 %v7109_v2  ;;  %2384 = vmatpush1.bf16.msra.mxu0 %v7112_v3  ;;  %v7175_v2 = vld [vmem:[#allocation11 + $0x630] ss:$24 sps:$4 sm:$0xff]   ;;  %v8706_v3 = vpack.c.bf16 %v440_v40, %v440_v40  ;;  %v7249_v40 = vld [vmem:[#allocation11 + $0x874] ss:$24 sps:$4 sm:$0xff]  }
 0x207   :  { %2262 = vmatprep.subr.bf16.mxu1 %v7117_v4  ;;  %2385 = vmatprep.subr.bf16.mxu0 %v7120_v5  ;;  %v7183_v4 = vld [vmem:[#allocation11 + $0x664] ss:$24 sps:$4 sm:$0xff]  }
 0x208   :  { %v7186_v5 = vld [vmem:[#allocation11 + $0x66c] ss:$24 sps:$4 sm:$0xff]  }
 0x20a   :  { %2263 = vmatpush1.bf16.msra.mxu1 %v7115_v6  ;;  %2386 = vmatpush1.bf16.msra.mxu0 %v7118_v7  ;;  %v7181_v6 = vld [vmem:[#allocation11 + $0x660] ss:$24 sps:$4 sm:$0xff]  }
 0x20b   :  { %2264 = vmatprep.subr.bf16.mxu1 %v7123_v8  ;;  %2387 = vmatprep.subr.bf16.mxu0 %v7126_v9  ;;  %v7184_v7 = vld [vmem:[#allocation11 + $0x668] ss:$24 sps:$4 sm:$0xff]   ;;  %v7189_v8 = vld [vmem:[#allocation11 + $0x694] ss:$24 sps:$4 sm:$0xff]  }
 0x20c   :  { %v7192_v9 = vld [vmem:[#allocation11 + $0x69c] ss:$24 sps:$4 sm:$0xff]  }
 0x20e   :  { %2265 = vmatpush1.bf16.msra.mxu1 %v7121_v10  ;;  %2388 = vmatpush1.bf16.msra.mxu0 %v7124_v16  ;;  %v7187_v10 = vld [vmem:[#allocation11 + $0x690] ss:$24 sps:$4 sm:$0xff]  }
 0x20f   :  { %2266 = vmatprep.subr.bf16.mxu1 %v7129_v17  ;;  %2389 = vmatprep.subr.bf16.mxu0 %v7132_v18  ;;  %v7190_v16 = vld [vmem:[#allocation11 + $0x698] ss:$24 sps:$4 sm:$0xff]   ;;  %v7195_v17 = vld [vmem:[#allocation11 + $0x6c4] ss:$24 sps:$4 sm:$0xff]  }
 0x210   :  { %v7198_v18 = vld [vmem:[#allocation11 + $0x6cc] ss:$24 sps:$4 sm:$0xff]  }
 0x212   :  { %2267 = vmatpush1.bf16.msra.mxu1 %v7127_v19  ;;  %2390 = vmatpush1.bf16.msra.mxu0 %v7130_v20  ;;  %v7193_v19 = vld [vmem:[#allocation11 + $0x6c0] ss:$24 sps:$4 sm:$0xff]  }
 0x213   :  { %2268 = vmatprep.subr.bf16.mxu1 %v7135_v21  ;;  %2391 = vmatprep.subr.bf16.mxu0 %v7138_v22  ;;  %v7196_v20 = vld [vmem:[#allocation11 + $0x6c8] ss:$24 sps:$4 sm:$0xff]   ;;  %v7201_v21 = vld [vmem:[#allocation11 + $0x6f4] ss:$24 sps:$4 sm:$0xff]  }
 0x214   :  { %v7204_v22 = vld [vmem:[#allocation11 + $0x6fc] ss:$24 sps:$4 sm:$0xff]  }
 0x216   :  { %2269 = vmatpush1.bf16.msra.mxu1 %v7133_v24  ;;  %2392 = vmatpush1.bf16.msra.mxu0 %v7136_v25  ;;  %v7199_v24 = vld [vmem:[#allocation11 + $0x6f0] ss:$24 sps:$4 sm:$0xff]  }
 0x217   :  { %2270 = vmatprep.subr.bf16.mxu1 %v7141_v27  ;;  %2393 = vmatprep.subr.bf16.mxu0 %v7144_v28  ;;  %v7202_v25 = vld [vmem:[#allocation11 + $0x6f8] ss:$24 sps:$4 sm:$0xff]   ;;  %v7207_v27 = vld [vmem:[#allocation11 + $0x724] ss:$24 sps:$4 sm:$0xff]  }
 0x218   :  { %v7210_v28 = vld [vmem:[#allocation11 + $0x72c] ss:$24 sps:$4 sm:$0xff]  }
 0x21a   :  { %2271 = vmatpush1.bf16.msra.mxu1 %v7139_v29  ;;  %2394 = vmatpush1.bf16.msra.mxu0 %v7142_v31  ;;  %v7205_v29 = vld [vmem:[#allocation11 + $0x720] ss:$24 sps:$4 sm:$0xff]  }
 0x21b   :  { %2272 = vmatprep.subr.bf16.mxu1 %v7147_v32  ;;  %2395 = vmatprep.subr.bf16.mxu0 %v7150_v34  ;;  %v7208_v31 = vld [vmem:[#allocation11 + $0x728] ss:$24 sps:$4 sm:$0xff]   ;;  %v7213_v32 = vld [vmem:[#allocation11 + $0x754] ss:$24 sps:$4 sm:$0xff]  }
 0x21c   :  { %v7216_v34 = vld [vmem:[#allocation11 + $0x75c] ss:$24 sps:$4 sm:$0xff]  }
 0x21e   :  { %2273 = vmatpush1.bf16.msra.mxu1 %v7145_v35  ;;  %2396 = vmatpush1.bf16.msra.mxu0 %v7148_v37  ;;  %v7211_v35 = vld [vmem:[#allocation11 + $0x750] ss:$24 sps:$4 sm:$0xff]  }
 0x21f   :  { %2274 = vmatprep.subr.bf16.mxu1 %v7153_v39  ;;  %2397 = vmatprep.subr.bf16.mxu0 %v7156_v41  ;;  %v7214_v37 = vld [vmem:[#allocation11 + $0x758] ss:$24 sps:$4 sm:$0xff]   ;;  %v7219_v39 = vld [vmem:[#allocation11 + $0x784] ss:$24 sps:$4 sm:$0xff]  }
 0x220   :  { %v7222_v41 = vld [vmem:[#allocation11 + $0x78c] ss:$24 sps:$4 sm:$0xff]  }
 0x222   :  { %2275 = vmatpush1.bf16.msra.mxu1 %v7151_v42  ;;  %2398 = vmatpush1.bf16.msra.mxu0 %v7154_v43  ;;  %v7217_v42 = vld [vmem:[#allocation11 + $0x780] ss:$24 sps:$4 sm:$0xff]  }
 0x223   :  { %2276 = vmatprep.subr.bf16.mxu1 %v7159_v46  ;;  %2399 = vmatprep.subr.bf16.mxu0 %v7162_v47  ;;  %v7220_v43 = vld [vmem:[#allocation11 + $0x788] ss:$24 sps:$4 sm:$0xff]   ;;  %v7228_v46 = vld [vmem:[#allocation11 + $0x7bc] ss:$24 sps:$4 sm:$0xff]  }
 0x224   :  { %v7223_v47 = vld [vmem:[#allocation11 + $0x7b0] ss:$24 sps:$4 sm:$0xff]  }
 0x226   :  { %2277 = vmatpush1.bf16.msra.mxu1 %v7157_v48  ;;  %2400 = vmatpush1.bf16.msra.mxu0 %v7160_v49  ;;  %v7226_v48 = vld [vmem:[#allocation11 + $0x7b8] ss:$24 sps:$4 sm:$0xff]   ;;  %v7231_v49 = vld [vmem:[#allocation11 + $0x7e4] ss:$24 sps:$4 sm:$0xff]  }
 0x227   :  { %2278 = vmatprep.subr.bf16.mxu1 %v7165_v53  ;;  %2401 = vmatprep.subr.bf16.mxu0 %v7168_v54  ;;  %v7232_v53 = vld [vmem:[#allocation11 + $0x7e8] ss:$24 sps:$4 sm:$0xff]   ;;  %v7237_v54 = vld [vmem:[#allocation11 + $0x814] ss:$24 sps:$4 sm:$0xff]  }
 0x22a   :  { %2279 = vmatpush1.bf16.msra.mxu1 %v7163_v55  ;;  %2402 = vmatpush1.bf16.msra.mxu0 %v7166_v56  ;;  %v7240_v55 = vld [vmem:[#allocation11 + $0x81c] ss:$24 sps:$4 sm:$0xff]   ;;  %v7235_v56 = vld [vmem:[#allocation11 + $0x810] ss:$24 sps:$4 sm:$0xff]  }
 0x22b   :  { %2289 = vmatprep.subr.bf16.mxu1 %v7171_v59  ;;  %2412 = vmatprep.subr.bf16.mxu0 %v7174_v60  ;;  %v7246_v59 = vld [vmem:[#allocation11 + $0x84c] ss:$24 sps:$4 sm:$0xff]   ;;  %v8713_v60 = vsub.s32 4, %v8655_v12 }
 0x22d   :  { %2281 = vmatmul.mubr.bf16.vlgmr.msra.gmra.mrb[8].mxu1 %v8704_v62  ;;  %2404 = vmatmul.mubr.bf16.vlgmr.msra.gmra.mrb[4].mxu0 %v8704_v62 }
 0x22e   :  { %2290 = vmatpush1.bf16.msra.mxu1 %v7169_v14  ;;  %2413 = vmatpush1.bf16.msra.mxu0 %v7172_v61  ;;  %v7241_v14 = vld [vmem:[#allocation11 + $0x840] ss:$24 sps:$4 sm:$0xff]  }
 0x22f   :  { %2291 = vmatprep.subr.bf16.mxu1 %v7177_v63  ;;  %2414 = vmatprep.subr.bf16.mxu0 %v7180_v1  ;;  %v7244_v61 = vld [vmem:[#allocation11 + $0x848] ss:$24 sps:$4 sm:$0xff]   ;;  %v7252_v63 = vld [vmem:[#allocation11 + $0x87c] ss:$24 sps:$4 sm:$0xff]  }
 0x230   :  { %2321 = vmatprep.mubr.bf16.mxu1 %v8706_v3  ;;  %2444 = vmatprep.mubr.bf16.mxu0 %v8706_v3  ;;  %v7954_v1 = vld [vmem:[#allocation10] sm:$0x3f] }
 0x232   :  { %2292 = vmatpush1.bf16.msra.mxu1 %v7175_v2  ;;  %2415 = vmatpush1.bf16.msra.mxu0 %v7178_v30  ;;  %v267_v2 = vrot.slane %v7954_v1, %v8713_v60  ;;  %v7247_v30 = vld [vmem:[#allocation11 + $0x870] ss:$24 sps:$4 sm:$0xff]   ;;  %v7318_v1 = vld [vmem:[#allocation11 + $0x344] ss:$24 sps:$4 sm:$0xff]  }
 0x233   :  { %2293 = vmatprep.subr.bf16.mxu1 %v7183_v4  ;;  %2416 = vmatprep.subr.bf16.mxu0 %v7186_v5  ;;  %v7250_v4 = vld [vmem:[#allocation11 + $0x878] ss:$24 sps:$4 sm:$0xff]   ;;  %v7255_v5 = vld [vmem:[#allocation11 + $0x8a4] ss:$24 sps:$4 sm:$0xff]  }
 0x234   :  { %v429_v12 = vadd.f32 %v8672_v26, %v267_v2  ;;  %v7267_v26 = vld [vmem:[#allocation11 + $0x14] ss:$24 sps:$4 sm:$0xff]  }
 0x235   :  { %v7412_v2 = vld [vmem:[#allocation14 + $0x8] sm:$0xff]  }
 0x236   :  { %2294 = vmatpush1.bf16.msra.mxu1 %v7181_v6  ;;  %2417 = vmatpush1.bf16.msra.mxu0 %v7184_v7  ;;  %v7258_v6 = vld [vmem:[#allocation11 + $0x8ac] ss:$24 sps:$4 sm:$0xff]   ;;  %v7253_v7 = vld [vmem:[#allocation11 + $0x8a0] ss:$24 sps:$4 sm:$0xff]  }
 0x237   :  { %2295 = vmatprep.subr.bf16.mxu1 %v7189_v8  ;;  %2418 = vmatprep.subr.bf16.mxu0 %v7192_v9  ;;  %v7256_v8 = vld [vmem:[#allocation11 + $0x8a8] ss:$24 sps:$4 sm:$0xff]   ;;  %v7261_v9 = vld [vmem:[#allocation11 + $0x8d4] ss:$24 sps:$4 sm:$0xff]  }
 0x23a   :  { %2296 = vmatpush1.bf16.msra.mxu1 %v7187_v10  ;;  %2419 = vmatpush1.bf16.msra.mxu0 %v7190_v16  ;;  %v439_v10 = vmax.f32 %v429_v12, 0.0  ;;  %v7264_v16 = vld [vmem:[#allocation11 + $0x8dc] ss:$24 sps:$4 sm:$0xff]   ;;  %v7316_v12 = vld [vmem:[#allocation11 + $0x340] ss:$24 sps:$4 sm:$0xff]  }
 0x23b   :  { %2297 = vmatprep.subr.bf16.mxu1 %v7195_v17  ;;  %2420 = vmatprep.subr.bf16.mxu0 %v7198_v18  ;;  %v7259_v17 = vld [vmem:[#allocation11 + $0x8d0] ss:$24 sps:$4 sm:$0xff]  }
 0x23c   :  { %v7262_v18 = vld [vmem:[#allocation11 + $0x8d8] ss:$24 sps:$4 sm:$0xff]  }
 0x23e   :  { %2298 = vmatpush1.bf16.msra.mxu1 %v7193_v19  ;;  %2421 = vmatpush1.bf16.msra.mxu0 %v7196_v20  ;;  %v8717_v19 = vpack.c.bf16 %v439_v10, %v439_v10  ;;  %v7265_v20 = vld [vmem:[#allocation11 + $0x10] ss:$24 sps:$4 sm:$0xff]   ;;  %v7324_v10 = vld [vmem:[#allocation11 + $0x3a4] ss:$24 sps:$4 sm:$0xff]  }
 0x23f   :  { %2299 = vmatprep.subr.bf16.mxu1 %v7201_v21  ;;  %2422 = vmatprep.subr.bf16.mxu0 %v7204_v22  ;;  %v7270_v21 = vld [vmem:[#allocation11 + $0x44] ss:$24 sps:$4 sm:$0xff]   ;;  %v7268_v22 = vld [vmem:[#allocation11 + $0x40] ss:$24 sps:$4 sm:$0xff]  }
 0x242   :  { %2300 = vmatpush1.bf16.msra.mxu1 %v7199_v24  ;;  %2423 = vmatpush1.bf16.msra.mxu0 %v7202_v25  ;;  %v7273_v24 = vld [vmem:[#allocation11 + $0x74] ss:$24 sps:$4 sm:$0xff]   ;;  %v7271_v25 = vld [vmem:[#allocation11 + $0x70] ss:$24 sps:$4 sm:$0xff]  }
 0x243   :  { %2301 = vmatprep.subr.bf16.mxu1 %v7207_v27  ;;  %2424 = vmatprep.subr.bf16.mxu0 %v7210_v28  ;;  %v7276_v27 = vld [vmem:[#allocation11 + $0xa4] ss:$24 sps:$4 sm:$0xff]   ;;  %v7274_v28 = vld [vmem:[#allocation11 + $0xa0] ss:$24 sps:$4 sm:$0xff]  }
 0x246   :  { %2302 = vmatpush1.bf16.msra.mxu1 %v7205_v29  ;;  %2425 = vmatpush1.bf16.msra.mxu0 %v7208_v31  ;;  %v7279_v29 = vld [vmem:[#allocation11 + $0xd4] ss:$24 sps:$4 sm:$0xff]   ;;  %v7277_v31 = vld [vmem:[#allocation11 + $0xd0] ss:$24 sps:$4 sm:$0xff]  }
 0x247   :  { %2303 = vmatprep.subr.bf16.mxu1 %v7213_v32  ;;  %2426 = vmatprep.subr.bf16.mxu0 %v7216_v34  ;;  %v7282_v32 = vld [vmem:[#allocation11 + $0x104] ss:$24 sps:$4 sm:$0xff]   ;;  %v7280_v34 = vld [vmem:[#allocation11 + $0x100] ss:$24 sps:$4 sm:$0xff]  }
 0x24a   :  { %2304 = vmatpush1.bf16.msra.mxu1 %v7211_v35  ;;  %2427 = vmatpush1.bf16.msra.mxu0 %v7214_v37  ;;  %v7285_v35 = vld [vmem:[#allocation11 + $0x134] ss:$24 sps:$4 sm:$0xff]   ;;  %v7288_v37 = vld [vmem:[#allocation11 + $0x164] ss:$24 sps:$4 sm:$0xff]  }
 0x24b   :  { %2305 = vmatprep.subr.bf16.mxu1 %v7219_v39  ;;  %2428 = vmatprep.subr.bf16.mxu0 %v7222_v41  ;;  %v7286_v39 = vld [vmem:[#allocation11 + $0x160] ss:$24 sps:$4 sm:$0xff]   ;;  %v7291_v41 = vld [vmem:[#allocation11 + $0x194] ss:$24 sps:$4 sm:$0xff]  }
 0x24e   :  { %2306 = vmatpush1.bf16.msra.mxu1 %v7217_v42  ;;  %2429 = vmatpush1.bf16.msra.mxu0 %v7220_v43  ;;  %v7289_v42 = vld [vmem:[#allocation11 + $0x190] ss:$24 sps:$4 sm:$0xff]   ;;  %v7294_v43 = vld [vmem:[#allocation11 + $0x1c4] ss:$24 sps:$4 sm:$0xff]  }
 0x24f   :  { %2307 = vmatprep.subr.bf16.mxu1 %v7225_v45  ;;  %2430 = vmatprep.subr.bf16.mxu0 %v7228_v46  ;;  %v7292_v45 = vld [vmem:[#allocation11 + $0x1c0] ss:$24 sps:$4 sm:$0xff]   ;;  %v7297_v46 = vld [vmem:[#allocation11 + $0x1f4] ss:$24 sps:$4 sm:$0xff]  }
 0x252   :  { %2308 = vmatpush1.bf16.msra.mxu1 %v7223_v47  ;;  %2431 = vmatpush1.bf16.msra.mxu0 %v7226_v48  ;;  %v7295_v47 = vld [vmem:[#allocation11 + $0x1f0] ss:$24 sps:$4 sm:$0xff]   ;;  %v7300_v48 = vld [vmem:[#allocation11 + $0x224] ss:$24 sps:$4 sm:$0xff]  }
 0x253   :  { %2309 = vmatprep.subr.bf16.mxu1 %v7231_v49  ;;  %2432 = vmatprep.subr.bf16.mxu0 %v7234_v50  ;;  %v7298_v49 = vld [vmem:[#allocation11 + $0x220] ss:$24 sps:$4 sm:$0xff]   ;;  %v7303_v50 = vld [vmem:[#allocation11 + $0x254] ss:$24 sps:$4 sm:$0xff]  }
 0x256   :  { %2310 = vmatpush1.bf16.msra.mxu1 %v7229_v51  ;;  %2433 = vmatpush1.bf16.msra.mxu0 %v7232_v53  ;;  %v7301_v51 = vld [vmem:[#allocation11 + $0x250] ss:$24 sps:$4 sm:$0xff]   ;;  %v7306_v53 = vld [vmem:[#allocation11 + $0x284] ss:$24 sps:$4 sm:$0xff]  }
 0x257   :  { %2311 = vmatprep.subr.bf16.mxu1 %v7237_v54  ;;  %2434 = vmatprep.subr.bf16.mxu0 %v7240_v55  ;;  %v7304_v54 = vld [vmem:[#allocation11 + $0x280] ss:$24 sps:$4 sm:$0xff]   ;;  %v7309_v55 = vld [vmem:[#allocation11 + $0x2b4] ss:$24 sps:$4 sm:$0xff]  }
 0x25a   :  { %2312 = vmatpush1.bf16.msra.mxu1 %v7235_v56  ;;  %2435 = vmatpush1.bf16.msra.mxu0 %v7238_v57  ;;  %v7307_v56 = vld [vmem:[#allocation11 + $0x2b0] ss:$24 sps:$4 sm:$0xff]   ;;  %v7312_v57 = vld [vmem:[#allocation11 + $0x2e4] ss:$24 sps:$4 sm:$0xff]  }
 0x25b   :  { %2313 = vmatprep.subr.bf16.mxu1 %v7243_v58  ;;  %2436 = vmatprep.subr.bf16.mxu0 %v7246_v59  ;;  %v7310_v58 = vld [vmem:[#allocation11 + $0x2e0] ss:$24 sps:$4 sm:$0xff]   ;;  %v7406_v59 = vld [vmem:[#allocation14 + $0x40] sm:$0xff]  }
 0x25e   :  { %2314 = vmatpush1.bf16.msra.mxu1 %v7241_v14  ;;  %2437 = vmatpush1.bf16.msra.mxu0 %v7244_v61  ;;  %v7315_v14 = vld [vmem:[#allocation11 + $0x314] ss:$24 sps:$4 sm:$0xff]  }
 0x25f   :  { %2315 = vmatprep.subr.bf16.mxu1 %v7249_v40  ;;  %2438 = vmatprep.subr.bf16.mxu0 %v7252_v63  ;;  %v7410_v61 = vld [vmem:[#allocation14] sm:$0xff]   ;;  %v7411_v63 = vld [vmem:[#allocation14 + $0x48] sm:$0xff]  }
 0x260   :  { %v7313_v40 = vld [vmem:[#allocation11 + $0x310] ss:$24 sps:$4 sm:$0xff]  }
 0x262   :  { %2316 = vmatpush1.bf16.msra.mxu1 %v7247_v30  ;;  %2439 = vmatpush1.bf16.msra.mxu0 %v7250_v4  ;;  %v7413_v30 = vld [vmem:[#allocation14 + $0x50] sm:$0xff]  }
 0x263   :  { %2317 = vmatprep.subr.bf16.mxu1 %v7255_v5  ;;  %2440 = vmatprep.subr.bf16.mxu0 %v7258_v6  ;;  %v7414_v4 = vld [vmem:[#allocation14 + $0x10] sm:$0xff]   ;;  %v7415_v5 = vld [vmem:[#allocation14 + $0x58] sm:$0xff]  }
 0x264   :  { %v7321_v6 = vld [vmem:[#allocation11 + $0x374] ss:$24 sps:$4 sm:$0xff]  }
 0x266   :  { %2318 = vmatpush1.bf16.msra.mxu1 %v7253_v7  ;;  %2441 = vmatpush1.bf16.msra.mxu0 %v7256_v8  ;;  %v7416_v7 = vld [vmem:[#allocation14 + $0x18] sm:$0xff]   ;;  %v7319_v8 = vld [vmem:[#allocation11 + $0x370] ss:$24 sps:$4 sm:$0xff]  }
 0x267   :  { %2319 = vmatprep.subr.bf16.mxu1 %v7261_v9  ;;  %2442 = vmatprep.subr.bf16.mxu0 %v7264_v16  ;;  %v7417_v9 = vld [vmem:[#allocation14 + $0x60] sm:$0xff]   ;;  %v7322_v16 = vld [vmem:[#allocation11 + $0x3a0] ss:$24 sps:$4 sm:$0xff]  }
 0x26a   :  { %2320 = vmatpush1.bf16.msra.mxu1 %v7259_v17  ;;  %2443 = vmatpush1.bf16.msra.mxu0 %v7262_v18  ;;  %v7419_v17 = vld [vmem:[#allocation14 + $0x68] sm:$0xff]  }
 0x26b   :  { %2453 = vmatprep.subr.bf16.mxu1 %v7267_v26  ;;  %6752 = vmatprep.subr.bf16.mxu0 %v7406_v59  ;;  %v7420_v18 = vld [vmem:[#allocation14 + $0x28] sm:$0xff]  }
 0x26c   :  { %v7325_v26 = vld [vmem:[#allocation11 + $0x3d0] ss:$24 sps:$4 sm:$0xff]   ;;  %v7369_v59 = vld [vmem:[#allocation11 + $0x674] ss:$24 sps:$4 sm:$0xff]  }
 0x26d   :  { %2322 = vmatmul.mubr.bf16.vlgmr.msra.gmra.mrb[8].mxu1 %v8717_v19  ;;  %2445 = vmatmul.mubr.bf16.vlgmr.msra.gmra.mrb[4].mxu0 %v8717_v19 }
 0x26e   :  { %2454 = vmatpush1.bf16.msra.mxu1 %v7265_v20  ;;  %2485 = vmatprep.mubr.bf16.mxu1 %v8676_v33  ;;  %v7283_v33 = vld [vmem:[#allocation11 + $0x130] ss:$24 sps:$4 sm:$0xff]   ;;  %v7330_v20 = vld [vmem:[#allocation11 + $0x404] ss:$24 sps:$4 sm:$0xff]  }
 0x26f   :  { %2455 = vmatprep.subr.bf16.mxu1 %v7270_v21  ;;  %6753 = vmatpush3.bf16.msra.mxu0 %v7410_v61  ;;  %v7328_v21 = vld [vmem:[#allocation11 + $0x400] ss:$24 sps:$4 sm:$0xff]   ;;  %v7372_v61 = vld [vmem:[#allocation11 + $0x6a4] ss:$24 sps:$4 sm:$0xff]  }
 0x270   :  { %6754 = vmatprep.subr.bf16.mxu0 %v7411_v63  ;;  %v7375_v63 = vld [vmem:[#allocation11 + $0x6d4] ss:$24 sps:$4 sm:$0xff]  }
 0x272   :  { %2456 = vmatpush1.bf16.msra.mxu1 %v7268_v22  ;;  %v7421_v22 = vld [vmem:[#allocation14 + $0x70] sm:$0xff]  }
 0x273   :  { %2457 = vmatprep.subr.bf16.mxu1 %v7273_v24  ;;  %6755 = vmatpush3.bf16.msra.mxu0 %v7412_v2  ;;  %v7333_v24 = vld [vmem:[#allocation11 + $0x434] ss:$24 sps:$4 sm:$0xff]   ;;  %v7378_v2 = vld [vmem:[#allocation11 + $0x704] ss:$24 sps:$4 sm:$0xff]  }
 0x274   :  { %6756 = vmatprep.subr.bf16.mxu0 %v7413_v30  ;;  %v7381_v30 = vld [vmem:[#allocation11 + $0x734] ss:$24 sps:$4 sm:$0xff]  }
 0x276   :  { %2458 = vmatpush1.bf16.msra.mxu1 %v7271_v25  ;;  %v7422_v25 = vld [vmem:[#allocation14 + $0x30] sm:$0xff]  }
 0x277   :  { %2459 = vmatprep.subr.bf16.mxu1 %v7276_v27  ;;  %6757 = vmatpush3.bf16.msra.mxu0 %v7414_v4  ;;  %v7331_v27 = vld [vmem:[#allocation11 + $0x430] ss:$24 sps:$4 sm:$0xff]   ;;  %v7384_v4 = vld [vmem:[#allocation11 + $0x764] ss:$24 sps:$4 sm:$0xff]  }
 0x278   :  { %6758 = vmatprep.subr.bf16.mxu0 %v7415_v5  ;;  %v7387_v5 = vld [vmem:[#allocation11 + $0x794] ss:$24 sps:$4 sm:$0xff]  }
 0x27a   :  { %2460 = vmatpush1.bf16.msra.mxu1 %v7274_v28  ;;  %v7423_v28 = vld [vmem:[#allocation14 + $0x78] sm:$0xff]  }
 0x27b   :  { %2461 = vmatprep.subr.bf16.mxu1 %v7279_v29  ;;  %6759 = vmatpush3.bf16.msra.mxu0 %v7416_v7  ;;  %v7336_v29 = vld [vmem:[#allocation11 + $0x464] ss:$24 sps:$4 sm:$0xff]  }
 0x27c   :  { %6760 = vmatprep.subr.bf16.mxu0 %v7417_v9  ;;  %v7390_v7 = vld [vmem:[#allocation11 + $0x7c4] ss:$24 sps:$4 sm:$0xff]   ;;  %v7393_v9 = vld [vmem:[#allocation11 + $0x7f4] ss:$24 sps:$4 sm:$0xff]  }
 0x27e   :  { %2462 = vmatpush1.bf16.msra.mxu1 %v7277_v31  ;;  %v7424_v31 = vld [vmem:[#allocation14 + $0x38] sm:$0xff]  }
 0x27f   :  { %2463 = vmatprep.subr.bf16.mxu1 %v7282_v32  ;;  %v7334_v32 = vld [vmem:[#allocation11 + $0x460] ss:$24 sps:$4 sm:$0xff]  }
 0x282   :  { %2464 = vmatpush1.bf16.msra.mxu1 %v7280_v34  ;;  %v7425_v34 = vld [vmem:[#allocation14 + $0xc0] sm:$0xff]  }
 0x283   :  { %2465 = vmatprep.subr.bf16.mxu1 %v7285_v35  ;;  %v7339_v35 = vld [vmem:[#allocation11 + $0x494] ss:$24 sps:$4 sm:$0xff]  }
 0x286   :  { %2466 = vmatpush1.bf16.msra.mxu1 %v7283_v33  ;;  %v7337_v33 = vld [vmem:[#allocation11 + $0x490] ss:$24 sps:$4 sm:$0xff]  }
 0x287   :  { %2467 = vmatprep.subr.bf16.mxu1 %v7288_v37  ;;  %v7342_v37 = vld [vmem:[#allocation11 + $0x4c4] ss:$24 sps:$4 sm:$0xff]  }
 0x28a   :  { %2468 = vmatpush1.bf16.msra.mxu1 %v7286_v39  ;;  %v7340_v39 = vld [vmem:[#allocation11 + $0x4c0] ss:$24 sps:$4 sm:$0xff]  }
 0x28b   :  { %2469 = vmatprep.subr.bf16.mxu1 %v7291_v41  ;;  %v7345_v41 = vld [vmem:[#allocation11 + $0x4f4] ss:$24 sps:$4 sm:$0xff]  }
 0x28e   :  { %2470 = vmatpush1.bf16.msra.mxu1 %v7289_v42  ;;  %v7343_v42 = vld [vmem:[#allocation11 + $0x4f0] ss:$24 sps:$4 sm:$0xff]  }
 0x28f   :  { %2471 = vmatprep.subr.bf16.mxu1 %v7294_v43  ;;  %v7348_v43 = vld [vmem:[#allocation11 + $0x524] ss:$24 sps:$4 sm:$0xff]  }
 0x292   :  { %2472 = vmatpush1.bf16.msra.mxu1 %v7292_v45  ;;  %v7346_v45 = vld [vmem:[#allocation11 + $0x520] ss:$24 sps:$4 sm:$0xff]  }
 0x293   :  { %2473 = vmatprep.subr.bf16.mxu1 %v7297_v46  ;;  %v7351_v46 = vld [vmem:[#allocation11 + $0x554] ss:$24 sps:$4 sm:$0xff]  }
 0x296   :  { %2474 = vmatpush1.bf16.msra.mxu1 %v7295_v47  ;;  %v7349_v47 = vld [vmem:[#allocation11 + $0x550] ss:$24 sps:$4 sm:$0xff]  }
 0x297   :  { %2475 = vmatprep.subr.bf16.mxu1 %v7300_v48  ;;  %v7354_v48 = vld [vmem:[#allocation11 + $0x584] ss:$24 sps:$4 sm:$0xff]  }
 0x29a   :  { %2476 = vmatpush1.bf16.msra.mxu1 %v7298_v49  ;;  %v7352_v49 = vld [vmem:[#allocation11 + $0x580] ss:$24 sps:$4 sm:$0xff]  }
 0x29b   :  { %2477 = vmatprep.subr.bf16.mxu1 %v7303_v50  ;;  %v7357_v50 = vld [vmem:[#allocation11 + $0x5b4] ss:$24 sps:$4 sm:$0xff]  }
 0x29e   :  { %2478 = vmatpush1.bf16.msra.mxu1 %v7301_v51  ;;  %v7355_v51 = vld [vmem:[#allocation11 + $0x5b0] ss:$24 sps:$4 sm:$0xff]  }
 0x29f   :  { %2479 = vmatprep.subr.bf16.mxu1 %v7306_v53  ;;  %v7360_v53 = vld [vmem:[#allocation11 + $0x5e4] ss:$24 sps:$4 sm:$0xff]  }
 0x2a2   :  { %2480 = vmatpush1.bf16.msra.mxu1 %v7304_v54  ;;  %v7358_v54 = vld [vmem:[#allocation11 + $0x5e0] ss:$24 sps:$4 sm:$0xff]  }
 0x2a3   :  { %2481 = vmatprep.subr.bf16.mxu1 %v7309_v55  ;;  %v7363_v55 = vld [vmem:[#allocation11 + $0x614] ss:$24 sps:$4 sm:$0xff]  }
 0x2a6   :  { %2482 = vmatpush1.bf16.msra.mxu1 %v7307_v56  ;;  %v7361_v56 = vld [vmem:[#allocation11 + $0x610] ss:$24 sps:$4 sm:$0xff]  }
 0x2a7   :  { %2483 = vmatprep.subr.bf16.mxu1 %v7312_v57  ;;  %v7366_v57 = vld [vmem:[#allocation11 + $0x644] ss:$24 sps:$4 sm:$0xff]  }
 0x2aa   :  { %2484 = vmatpush1.bf16.msra.mxu1 %v7310_v58  ;;  %v7364_v58 = vld [vmem:[#allocation11 + $0x640] ss:$24 sps:$4 sm:$0xff]  }
 0x2ab   :  { %2494 = vmatprep.subr.bf16.mxu1 %v7315_v14  ;;  %v7367_v14 = vld [vmem:[#allocation11 + $0x670] ss:$24 sps:$4 sm:$0xff]  }
 0x2ad   :  { %2486 = vmatmul.mubr.bf16.vlgmr.msra.gmra.mrb[12].mxu1 %v8680_v36  ;;  %v7418_v36 = vld [vmem:[#allocation14 + $0x20] sm:$0xff]  }
 0x2ae   :  { %2495 = vmatpush1.bf16.msra.mxu1 %v7313_v40  ;;  %2526 = vmatprep.mubr.bf16.mxu1 %v8688_v52  ;;  %v7327_v52 = vld [vmem:[#allocation11 + $0x3d4] ss:$24 sps:$4 sm:$0xff]   ;;  %v7370_v40 = vld [vmem:[#allocation11 + $0x6a0] ss:$24 sps:$4 sm:$0xff]  }
 0x2af   :  { %2496 = vmatprep.subr.bf16.mxu1 %v7318_v1  ;;  %6761 = vmatpush3.bf16.msra.mxu0 %v7418_v36  ;;  %v7373_v1 = vld [vmem:[#allocation11 + $0x6d0] ss:$24 sps:$4 sm:$0xff]   ;;  %v7396_v36 = vld [vmem:[#allocation11 + $0x824] ss:$24 sps:$4 sm:$0xff]  }
 0x2b0   :  { %6762 = vmatprep.subr.bf16.mxu0 %v7419_v17  ;;  %v7399_v17 = vld [vmem:[#allocation11 + $0x854] ss:$24 sps:$4 sm:$0xff]  }
 0x2b2   :  { %2497 = vmatpush1.bf16.msra.mxu1 %v7316_v12  ;;  %v7382_v12 = vld [vmem:[#allocation11 + $0x760] ss:$24 sps:$4 sm:$0xff]  }
 0x2b3   :  { %2498 = vmatprep.subr.bf16.mxu1 %v7321_v6  ;;  %6763 = vmatpush3.bf16.msra.mxu0 %v7420_v18  ;;  %v7385_v6 = vld [vmem:[#allocation11 + $0x790] ss:$24 sps:$4 sm:$0xff]   ;;  %v7402_v18 = vld [vmem:[#allocation11 + $0x884] ss:$24 sps:$4 sm:$0xff]  }
 0x2b4   :  { %6764 = vmatprep.subr.bf16.mxu0 %v7421_v22  ;;  %v7409_v22 = vld [vmem:[#allocation11 + $0x8e4] ss:$24 sps:$4 sm:$0xff]  }
 0x2b6   :  { %2499 = vmatpush1.bf16.msra.mxu1 %v7319_v8  ;;  %v7388_v8 = vld [vmem:[#allocation11 + $0x7c0] ss:$24 sps:$4 sm:$0xff]  }
 0x2b7   :  { %2500 = vmatprep.subr.bf16.mxu1 %v7324_v10  ;;  %6765 = vmatpush3.bf16.msra.mxu0 %v7422_v25  ;;  %v7391_v10 = vld [vmem:[#allocation11 + $0x7f0] ss:$24 sps:$4 sm:$0xff]   ;;  %v8728_v25 = vld [vmem:[#allocation13] sm:$0x3f] }
 0x2b8   :  { %6766 = vmatprep.subr.bf16.mxu0 %v7423_v28  ;;  %v744_v28 = vrot.slane %v8728_v25, %v8663_v15 }
 0x2ba   :  { %2501 = vmatpush1.bf16.msra.mxu1 %v7322_v16  ;;  %v7394_v16 = vld [vmem:[#allocation11 + $0x820] ss:$24 sps:$4 sm:$0xff]  }
 0x2bb   :  { %2502 = vmatprep.subr.bf16.mxu1 %v7327_v52  ;;  %6767 = vmatpush3.bf16.msra.mxu0 %v7424_v31  ;;  %v7397_v52 = vld [vmem:[#allocation11 + $0x850] ss:$24 sps:$4 sm:$0xff]  }
 0x2bc   :  { %6774 = vmatprep.subr.bf16.mxu0 %v7425_v34 }
 0x2be   :  { %2503 = vmatpush1.bf16.msra.mxu1 %v7325_v26  ;;  %v7400_v26 = vld [vmem:[#allocation11 + $0x880] ss:$24 sps:$4 sm:$0xff]  }
 0x2bf   :  { %2504 = vmatprep.subr.bf16.mxu1 %v7330_v20  ;;  %v7405_v20 = vld [vmem:[#allocation11 + $0x8b4] ss:$24 sps:$4 sm:$0xff]  }
 0x2c2   :  { %2505 = vmatpush1.bf16.msra.mxu1 %v7328_v21  ;;  %v7403_v21 = vld [vmem:[#allocation11 + $0x8b0] ss:$24 sps:$4 sm:$0xff]  }
 0x2c3   :  { %2506 = vmatprep.subr.bf16.mxu1 %v7333_v24  ;;  %v7407_v24 = vld [vmem:[#allocation11 + $0x8e0] ss:$24 sps:$4 sm:$0xff]  }
 0x2c6   :  { %2507 = vmatpush1.bf16.msra.mxu1 %v7331_v27  ;;  %v740_v27 = vrot.slane %v8728_v25, %v8658_v13 }
 0x2c7   :  { %2508 = vmatprep.subr.bf16.mxu1 %v7336_v29  ;;  %v752_v29 = vrot.slane %v8728_v25, %v8670_v23 }
 0x2ca   :  { %2509 = vmatpush1.bf16.msra.mxu1 %v7334_v32 }
 0x2cb   :  { %2510 = vmatprep.subr.bf16.mxu1 %v7339_v35 }
 0x2ce   :  { %2511 = vmatpush1.bf16.msra.mxu1 %v7337_v33 }
 0x2cf   :  { %2512 = vmatprep.subr.bf16.mxu1 %v7342_v37 }
 0x2d2   :  { %2513 = vmatpush1.bf16.msra.mxu1 %v7340_v39 }
 0x2d3   :  { %2514 = vmatprep.subr.bf16.mxu1 %v7345_v41 }
 0x2d6   :  { %2515 = vmatpush1.bf16.msra.mxu1 %v7343_v42 }
 0x2d7   :  { %2516 = vmatprep.subr.bf16.mxu1 %v7348_v43 }
 0x2da   :  { %2517 = vmatpush1.bf16.msra.mxu1 %v7346_v45 }
 0x2db   :  { %2518 = vmatprep.subr.bf16.mxu1 %v7351_v46 }
 0x2de   :  { %2519 = vmatpush1.bf16.msra.mxu1 %v7349_v47 }
 0x2df   :  { %2520 = vmatprep.subr.bf16.mxu1 %v7354_v48 }
 0x2e2   :  { %2521 = vmatpush1.bf16.msra.mxu1 %v7352_v49  ;;  %v7426_v49 = vld [vmem:[#allocation14 + $0x80] sm:$0xff]  }
 0x2e3   :  { %2522 = vmatprep.subr.bf16.mxu1 %v7357_v50 }
 0x2e6   :  { %2523 = vmatpush1.bf16.msra.mxu1 %v7355_v51  ;;  %v7427_v51 = vld [vmem:[#allocation14 + $0xc8] sm:$0xff]  }
 0x2e7   :  { %2524 = vmatprep.subr.bf16.mxu1 %v7360_v53 }
 0x2ea   :  { %2525 = vmatpush1.bf16.msra.mxu1 %v7358_v54  ;;  %v7428_v54 = vld [vmem:[#allocation14 + $0x88] sm:$0xff]  }
 0x2eb   :  { %2535 = vmatprep.subr.bf16.mxu1 %v7363_v55  ;;  %v7429_v55 = vld [vmem:[#allocation14 + $0xd0] sm:$0xff]  }
 0x2ed   :  { %2527 = vmatmul.mubr.bf16.vlgmr.msra.gmra.mrb[12].mxu1 %v8704_v62  ;;  %v7376_v62 = vld [vmem:[#allocation11 + $0x700] ss:$24 sps:$4 sm:$0xff]  }
 0x2ee   :  { %2536 = vmatpush1.bf16.msra.mxu1 %v7361_v56  ;;  %2567 = vmatprep.mubr.bf16.mxu1 %v8706_v3  ;;  %v7379_v3 = vld [vmem:[#allocation11 + $0x730] ss:$24 sps:$4 sm:$0xff]   ;;  %v7430_v56 = vld [vmem:[#allocation14 + $0x90] sm:$0xff]  }
 0x2ef   :  { %2537 = vmatprep.subr.bf16.mxu1 %v7366_v57  ;;  %v7431_v57 = vld [vmem:[#allocation14 + $0xd8] sm:$0xff]  }
 0x2f2   :  { %2538 = vmatpush1.bf16.msra.mxu1 %v7364_v58  ;;  %v7432_v58 = vld [vmem:[#allocation14 + $0x98] sm:$0xff]  }
 0x2f3   :  { %2539 = vmatprep.subr.bf16.mxu1 %v7369_v59  ;;  %v7433_v59 = vld [vmem:[#allocation14 + $0xe0] sm:$0xff]  }
 0x2f6   :  { %2540 = vmatpush1.bf16.msra.mxu1 %v7367_v14  ;;  %v7434_v14 = vld [vmem:[#allocation14 + $0xa0] sm:$0xff]  }
 0x2f7   :  { %2541 = vmatprep.subr.bf16.mxu1 %v7372_v61  ;;  %v7435_v61 = vld [vmem:[#allocation14 + $0xe8] sm:$0xff]  }
 0x2fa   :  { %2542 = vmatpush1.bf16.msra.mxu1 %v7370_v40  ;;  %v7436_v40 = vld [vmem:[#allocation14 + $0xa8] sm:$0xff]  }
 0x2fb   :  { %2543 = vmatprep.subr.bf16.mxu1 %v7375_v63  ;;  %v748_v63 = vrot.slane %v8728_v25, %v8693_v38 }
 0x2fe   :  { %2544 = vmatpush1.bf16.msra.mxu1 %v7373_v1  ;;  %v7437_v1 = vld [vmem:[#allocation14 + $0xf0] sm:$0xff]  }
 0x2ff   :  { %2545 = vmatprep.subr.bf16.mxu1 %v7378_v2  ;;  %v7438_v2 = vld [vmem:[#allocation14 + $0xb0] sm:$0xff]  }
 0x302   :  { %2546 = vmatpush1.bf16.msra.mxu1 %v7376_v62 }
 0x303   :  { %2547 = vmatprep.subr.bf16.mxu1 %v7381_v30  ;;  %v7439_v30 = vld [vmem:[#allocation14 + $0xf8] sm:$0xff]  }
 0x306   :  { %2548 = vmatpush1.bf16.msra.mxu1 %v7379_v3  ;;  %v7440_v3 = vld [vmem:[#allocation14 + $0xb8] sm:$0xff]  }
 0x307   :  { %2549 = vmatprep.subr.bf16.mxu1 %v7384_v4 }
 0x30a   :  { %2550 = vmatpush1.bf16.msra.mxu1 %v7382_v12  ;;  %v7441_v12 = vld [vmem:[#allocation14 + $0x140] sm:$0xff]  }
 0x30b   :  { %2551 = vmatprep.subr.bf16.mxu1 %v7387_v5  ;;  %v7442_v5 = vld [vmem:[#allocation14 + $0x100] sm:$0xff]  }
 0x30e   :  { %2552 = vmatpush1.bf16.msra.mxu1 %v7385_v6 }
 0x30f   :  { %2553 = vmatprep.subr.bf16.mxu1 %v7390_v7  ;;  %v7443_v7 = vld [vmem:[#allocation14 + $0x148] sm:$0xff]  }
 0x312   :  { %2554 = vmatpush1.bf16.msra.mxu1 %v7388_v8  ;;  %v7444_v8 = vld [vmem:[#allocation14 + $0x108] sm:$0xff]  }
 0x313   :  { %2555 = vmatprep.subr.bf16.mxu1 %v7393_v9  ;;  %v7445_v9 = vld [vmem:[#allocation14 + $0x150] sm:$0xff]  }
 0x316   :  { %2556 = vmatpush1.bf16.msra.mxu1 %v7391_v10  ;;  %v7446_v10 = vld [vmem:[#allocation14 + $0x110] sm:$0xff]  }
 0x317   :  { %2557 = vmatprep.subr.bf16.mxu1 %v7396_v36  ;;  %v7447_v36 = vld [vmem:[#allocation14 + $0x158] sm:$0xff]  }
 0x31a   :  { %2558 = vmatpush1.bf16.msra.mxu1 %v7394_v16  ;;  %v7448_v16 = vld [vmem:[#allocation14 + $0x118] sm:$0xff]  }
 0x31b   :  { %2559 = vmatprep.subr.bf16.mxu1 %v7399_v17  ;;  %v7449_v17 = vld [vmem:[#allocation14 + $0x160] sm:$0xff]  }
 0x31e   :  { %2560 = vmatpush1.bf16.msra.mxu1 %v7397_v52  ;;  %v7450_v52 = vld [vmem:[#allocation14 + $0x120] sm:$0xff]  }
 0x31f   :  { %2561 = vmatprep.subr.bf16.mxu1 %v7402_v18  ;;  %v7451_v18 = vld [vmem:[#allocation14 + $0x168] sm:$0xff]  }
 0x322   :  { %2562 = vmatpush1.bf16.msra.mxu1 %v7400_v26  ;;  %v7452_v26 = vld [vmem:[#allocation14 + $0x128] sm:$0xff]  }
 0x323   :  { %2563 = vmatprep.subr.bf16.mxu1 %v7405_v20  ;;  %v7453_v20 = vld [vmem:[#allocation14 + $0x170] sm:$0xff]  }
 0x326   :  { %2564 = vmatpush1.bf16.msra.mxu1 %v7403_v21  ;;  %v7454_v21 = vld [vmem:[#allocation14 + $0x130] sm:$0xff]  }
 0x327   :  { %2565 = vmatprep.subr.bf16.mxu1 %v7409_v22  ;;  %v7455_v22 = vld [vmem:[#allocation14 + $0x178] sm:$0xff]  }
 0x32a   :  { %2566 = vmatpush1.bf16.msra.mxu1 %v7407_v24  ;;  %v7456_v24 = vld [vmem:[#allocation14 + $0x138] sm:$0xff]  }
 0x32d   :  { %2568 = vmatmul.mubr.bf16.vlgmr.msra.gmra.mrb[12].mxu1 %v8717_v19 }
 0x32e   :  { %3261 = vmatprep.mubr.bf16.mxu1 %v8344_v0 }
 0x340   :  { %v2323_v31 = vpop.f32.mrb[8].mxu1  ;;  %v2446_v32 = vpop.f32.mrb[4].mxu0 }
 0x341   :  { %v6884_v34 = vadd.f32 %v2323_v31, %v740_v27  ;;  %v2325_v35 = vpop.f32.mrb[9].mxu1  ;;  %v2448_v33 = vpop.f32.mrb[5].mxu0  ;;  %v6886_v62 = vadd.f32 %v2446_v32, %v748_v63  ;;  %v239_v27 = vld [vmem:[#allocation7] sm:$0xff] }
 0x342   :  { %v6885_v37 = vadd.f32 %v2325_v35, %v744_v28  ;;  %v6887_v19 = vadd.f32 %v2448_v33, %v752_v29  ;;  %v2327_v39 = vpop.f32.mrb[10].mxu1  ;;  %v2450_v41 = vpop.f32.mrb[6].mxu0  ;;  %3104 = vrot.lane.b32.xlu0 %v239_v27, %s8345_s14  ;;  %v756_v28 = vrot.slane %v8728_v25, %v8713_v60  ;;  %v760_v29 = vrot.slane %v8728_v25, %v8696_v44  ;;  %v6347_v25 = vld [vmem:[#allocation16] ss:$0 sm:$0xff]  ;;  %v7467_v27 = vld [vmem:[#allocation17 + $0x10] ss:$24 sps:$4 sm:$0xff]  }
 0x343   :  { %v2576_v42 = vmax.f32 %v6884_v34, 0.0  ;;  %v2328_v43 = vpop.f32.mrb[11].mxu1  ;;  %v2451_v45 = vpop.f32.mrb[7].mxu0  ;;  %v2578_v4 = vmax.f32 %v6886_v62, 0.0  ;;  %v7459_v62 = vld [vmem:[#allocation17 + $0x4] ss:$24 sps:$4 sm:$0xff]  }
 0x344   :  { %v2577_v46 = vmax.f32 %v6885_v37, 0.0  ;;  %v2579_v47 = vmax.f32 %v6887_v19, 0.0  ;;  %3229 = vmatprep.subr.bf16.mxu1 %v7459_v62  ;;  %v7508_v62 = vld [vmem:[#allocation20 + $0x120] ss:$24 sps:$4 sm:$0xff]  }
 0x345   :  { %v2582_v50 = vpack.c.bf16 %v2576_v42, %v2576_v42  ;;  %v2584_v6 = vpack.c.bf16 %v2578_v4, %v2578_v4  ;;  %v3127_v4 = vld [vmem:[#allocation17 + $0x30] sm:$0x33] }
 0x346   :  { %v2583_v48 = vpack.c.bf16 %v2577_v46, %v2577_v46  ;;  %v2585_v53 = vpack.c.bf16 %v2579_v47, %v2579_v47 }
 0x348   :  { %3011 = vmatprep.mubr.bf16.mxu0 %v2583_v48 }
 0x349   :  { %3012 = vmatmul.mubr.bf16.vlgmr.msra.gmra.mrb[8].mxu0 %v2582_v50 }
 0x34a   :  { %6775 = vmatpush3.bf16.msra.mxu0 %v7426_v49  ;;  %3051 = vmatprep.mubr.bf16.mxu0 %v2585_v53 }
 0x34b   :  { %6776 = vmatprep.subr.bf16.mxu0 %v7427_v51 }
 0x34e   :  { %6777 = vmatpush3.bf16.msra.mxu0 %v7428_v54 }
 0x34f   :  { %6778 = vmatprep.subr.bf16.mxu0 %v7429_v55 }
 0x352   :  { %6779 = vmatpush3.bf16.msra.mxu0 %v7430_v56 }
 0x353   :  { %6780 = vmatprep.subr.bf16.mxu0 %v7431_v57 }
 0x356   :  { %6781 = vmatpush3.bf16.msra.mxu0 %v7432_v58 }
 0x357   :  { %6782 = vmatprep.subr.bf16.mxu0 %v7433_v59 }
 0x35a   :  { %6783 = vmatpush3.bf16.msra.mxu0 %v7434_v14 }
 0x35b   :  { %6784 = vmatprep.subr.bf16.mxu0 %v7435_v61 }
 0x35e   :  { %6785 = vmatpush3.bf16.msra.mxu0 %v7436_v40 }
 0x35f   :  { %6786 = vmatprep.subr.bf16.mxu0 %v7437_v1 }
 0x362   :  { %6787 = vmatpush3.bf16.msra.mxu0 %v7438_v2  ;;  %v7457_v2 = vld [vmem:[#allocation17] ss:$24 sps:$4 sm:$0xff]  }
 0x363   :  { %6788 = vmatprep.subr.bf16.mxu0 %v7439_v30  ;;  %v7460_v30 = vld [vmem:[#allocation17 + $0x8] ss:$24 sps:$4 sm:$0xff]   ;;  %3230 = vmatpush1.bf16.msra.mxu1 %v7457_v2  ;;  %v7525_v2 = vld [vmem:[#allocation20 + $0x18c] ss:$24 sps:$4 sm:$0xff]  }
 0x366   :  { %6789 = vmatpush3.bf16.msra.mxu0 %v7440_v3  ;;  %v7462_v3 = vld [vmem:[#allocation17 + $0xc] ss:$24 sps:$4 sm:$0xff]  }
 0x367   :  { %6796 = vmatprep.subr.bf16.mxu0 %v7441_v12  ;;  %v6404_v12 = vcombine.high %v3127_v4, %v3127_v4 }
 0x369   :  { %3052 = vmatmul.mubr.bf16.vlgmr.msra.gmra.mrb[12].mxu0 %v2584_v6  ;;  %v3128_v6 = vld [vmem:[#allocation17 + $0x38] sm:$0x33]  ;;  %6409 = vmatprep.subr.msk.bf16.mxu1 %vm3210_vm1, %v6404_v12 }
 0x36a   :  { %6797 = vmatpush3.bf16.msra.mxu0 %v7442_v5  ;;  %v6403_v5 = vcombine.low %v3127_v4, %v3127_v4  ;;  %v7531_v4 = vld [vmem:[#allocation20 + $0x1bc] ss:$24 sps:$4 sm:$0xff]   ;;  %v7514_v12 = vld [vmem:[#allocation20 + $0x150] ss:$24 sps:$4 sm:$0xff]  }
 0x36b   :  { %6798 = vmatprep.subr.bf16.mxu0 %v7443_v7  ;;  %v6406_v7 = vcombine.high %v3128_v6, %v3128_v6 }
 0x36e   :  { %6799 = vmatpush3.bf16.msra.mxu0 %v7444_v8  ;;  %v6405_v8 = vcombine.low %v3128_v6, %v3128_v6  ;;  %v7529_v6 = vld [vmem:[#allocation20 + $0x1b8] ss:$24 sps:$4 sm:$0xff]  }
 0x36f   :  { %6800 = vmatprep.subr.bf16.mxu0 %v7445_v9 }
 0x372   :  { %6801 = vmatpush3.bf16.msra.mxu0 %v7446_v10  ;;  %v3212_v10 = vsel %vm3210_vm1, %v6403_v5, 0  ;;  %v7522_v5 = vld [vmem:[#allocation20 + $0x184] ss:$24 sps:$4 sm:$0xff]  }
 0x373   :  { %6802 = vmatprep.subr.bf16.mxu0 %v7447_v36  ;;  %v3218_v36 = vsel %vm3210_vm1, %v6405_v8, 0  ;;  %3232 = vmatpush1.bf16.msra.mxu1 %v3212_v10  ;;  %v7520_v8 = vld [vmem:[#allocation20 + $0x180] ss:$24 sps:$4 sm:$0xff]  }
 0x374   :  { %v7535_v10 = vld [vmem:[#allocation20 + $0x1e8] ss:$24 sps:$4 sm:$0xff]  }
 0x376   :  { %6803 = vmatpush3.bf16.msra.mxu0 %v7448_v16 }
 0x377   :  { %6804 = vmatprep.subr.bf16.mxu0 %v7449_v17 }
 0x37a   :  { %6805 = vmatpush3.bf16.msra.mxu0 %v7450_v52  ;;  %v7469_v52 = vld [vmem:[#allocation17 + $0x14] ss:$24 sps:$4 sm:$0xff]  }
 0x37b   :  { %6806 = vmatprep.subr.bf16.mxu0 %v7451_v18 }
 0x37e   :  { %6807 = vmatpush3.bf16.msra.mxu0 %v7452_v26 }
 0x37f   :  { %6808 = vmatprep.subr.bf16.mxu0 %v7453_v20  ;;  %v7477_v20 = vld [vmem:[#allocation20 + $0xc] ss:$24 sps:$4 sm:$0xff]  }
 0x380   :  { %5247 = vmatprep.subr.bf16.mxu1 %v7477_v20  ;;  %v7532_v20 = vld [vmem:[#allocation20 + $0x1e0] ss:$24 sps:$4 sm:$0xff]  }
 0x382   :  { %6809 = vmatpush3.bf16.msra.mxu0 %v7454_v21 }
 0x383   :  { %6810 = vmatprep.subr.bf16.mxu0 %v7455_v22  ;;  %v3129_v22 = vld [vmem:[#allocation17 + $0x40] sm:$0x33] }
 0x386   :  { %6811 = vmatpush3.bf16.msra.mxu0 %v7456_v24  ;;  %v238_v24 = vld [vmem:[#allocation5] sm:$0xf] }
 0x387   :  { %3270 = vmatprep.subr.bf16.mxu0 %v7462_v3  ;;  %v7523_v3 = vld [vmem:[#allocation20 + $0x188] ss:$24 sps:$4 sm:$0xff]  }
 0x3b4   :  { %v3105_v9 = vpop.permute.xlu0 %3104 }
 0x400   :  { %v2569_v31 = vpop.f32.mrb[12].mxu1 }
 0x401   :  { %v6888_v32 = vadd.f32 %v2569_v31, %v756_v28  ;;  %v2571_v34 = vpop.f32.mrb[13].mxu1  ;;  %v6407_v31 = vcombine.low %v3129_v22, %v3129_v22 }
 0x402   :  { %v6889_v35 = vadd.f32 %v2571_v34, %v760_v29  ;;  %v2573_v33 = vpop.f32.mrb[14].mxu1  ;;  %v6408_v29 = vcombine.high %v3129_v22, %v3129_v22  ;;  %v7547_v22 = vld [vmem:[#allocation20 + $0x248] ss:$24 sps:$4 sm:$0xff]  }
 0x403   :  { %v2580_v37 = vmax.f32 %v6888_v32, 0.0  ;;  %v2574_v19 = vpop.f32.mrb[15].mxu1  ;;  %v7475_v32 = vld [vmem:[#allocation20 + $0x8] ss:$24 sps:$4 sm:$0xff]   ;;  %v3224_v33 = vsel %vm3210_vm1, %v6407_v31, 0 }
 0x404   :  { %v2581_v39 = vmax.f32 %v6889_v35, 0.0  ;;  %v7483_v35 = vld [vmem:[#allocation20 + $0x3c] ss:$24 sps:$4 sm:$0xff]   ;;  %v7481_v19 = vld [vmem:[#allocation20 + $0x38] ss:$24 sps:$4 sm:$0xff]  }
 0x405   :  { %v2586_v42 = vpack.c.bf16 %v2580_v37, %v2580_v37  ;;  %v7474_v37 = vld [vmem:[#allocation20 + $0x4] ss:$24 sps:$4 sm:$0xff]   ;;  %v7544_v31 = vld [vmem:[#allocation20 + $0x240] ss:$24 sps:$4 sm:$0xff]  }
 0x406   :  { %v2587_v41 = vpack.c.bf16 %v2581_v39, %v2581_v39  ;;  %v7489_v39 = vld [vmem:[#allocation20 + $0x6c] ss:$24 sps:$4 sm:$0xff]  }
 0x408   :  { %3091 = vmatprep.mubr.bf16.mxu0 %v2587_v41  ;;  %v7472_v41 = vld [vmem:[#allocation20] ss:$24 sps:$4 sm:$0xff]  }
 0x409   :  { %3092 = vmatmul.mubr.bf16.vlgmr.msra.gmra.mrb[16].mxu0 %v2586_v42  ;;  %v7480_v42 = vld [vmem:[#allocation20 + $0x34] ss:$24 sps:$4 sm:$0xff]  }
 0x40a   :  { %3302 = vmatprep.mubr.bf16.mxu0 %v8344_v0  ;;  %3271 = vmatpush1.bf16.msra.mxu0 %v7460_v30  ;;  %v7516_v30 = vld [vmem:[#allocation20 + $0x154] ss:$24 sps:$4 sm:$0xff]  }
 0x40b   :  { %6411 = vmatprep.subr.msk.bf16.mxu0 %vm3210_vm1, %v6406_v7  ;;  %v7537_v7 = vld [vmem:[#allocation20 + $0x1ec] ss:$24 sps:$4 sm:$0xff]  }
 0x40e   :  { %3273 = vmatpush1.bf16.msra.mxu0 %v3218_v36  ;;  %v7543_v36 = vld [vmem:[#allocation20 + $0x21c] ss:$24 sps:$4 sm:$0xff]  }
 0x40f   :  { %3311 = vmatprep.subr.bf16.mxu0 %v7469_v52  ;;  %v7534_v52 = vld [vmem:[#allocation20 + $0x1e4] ss:$24 sps:$4 sm:$0xff]  }
 0x41c   :  { %v6768_v43 = vpop.f32.mrb[8].mxu0 }
 0x41d   :  { %v6769_v45 = vpop.f32.mrb[9].mxu0 }
 0x41e   :  { %v6770_v46 = vadd.f32 %v6769_v45, %v6768_v43  ;;  %v6771_v47 = vpop.f32.mrb[10].mxu0  ;;  %v7487_v43 = vld [vmem:[#allocation20 + $0x68] ss:$24 sps:$4 sm:$0xff]   ;;  %v7495_v45 = vld [vmem:[#allocation20 + $0x9c] ss:$24 sps:$4 sm:$0xff]  }
 0x41f   :  { %v6772_v48 = vpop.f32.mrb[11].mxu0  ;;  %v7493_v47 = vld [vmem:[#allocation20 + $0x98] ss:$24 sps:$4 sm:$0xff]  }
 0x420   :  { %v3014_v51 = vadd.f32 %v6770_v46, %v6347_v25  ;;  %v7486_v46 = vld [vmem:[#allocation20 + $0x64] ss:$24 sps:$4 sm:$0xff]   ;;  %v7484_v25 = vld [vmem:[#allocation20 + $0x60] ss:$24 sps:$4 sm:$0xff]  }
 0x421   :  { %v7501_v48 = vld [vmem:[#allocation20 + $0xcc] ss:$24 sps:$4 sm:$0xff]  }
 0x43c   :  { %v6790_v49 = vpop.f32.mrb[12].mxu0 }
 0x43d   :  { %v6791_v50 = vpop.f32.mrb[13].mxu0 }
 0x43e   :  { %v6792_v53 = vadd.f32 %v6791_v50, %v6790_v49  ;;  %v6793_v54 = vpop.f32.mrb[14].mxu0  ;;  %v7492_v49 = vld [vmem:[#allocation20 + $0x94] ss:$24 sps:$4 sm:$0xff]   ;;  %v7499_v50 = vld [vmem:[#allocation20 + $0xc8] ss:$24 sps:$4 sm:$0xff]  }
 0x43f   :  { %v6794_v55 = vpop.f32.mrb[15].mxu0  ;;  %v7498_v54 = vld [vmem:[#allocation20 + $0xc4] ss:$24 sps:$4 sm:$0xff]  }
 0x440   :  { %v3054_v56 = vadd.f32 %v6792_v53, %v3014_v51  ;;  %v7507_v51 = vld [vmem:[#allocation20 + $0xfc] ss:$24 sps:$4 sm:$0xff]   ;;  %v7490_v53 = vld [vmem:[#allocation20 + $0x90] ss:$24 sps:$4 sm:$0xff]  }
 0x441   :  { %v7505_v55 = vld [vmem:[#allocation20 + $0xf8] ss:$24 sps:$4 sm:$0xff]  }
 0x4dc   :  { %v6812_v57 = vpop.f32.mrb[16].mxu0 }
 0x4dd   :  { %v6813_v58 = vpop.f32.mrb[17].mxu0 }
 0x4de   :  { %v6814_v59 = vadd.f32 %v6813_v58, %v6812_v57  ;;  %v6815_v14 = vpop.f32.mrb[18].mxu0  ;;  %v7496_v57 = vld [vmem:[#allocation20 + $0xc0] ss:$24 sps:$4 sm:$0xff]   ;;  %v7504_v58 = vld [vmem:[#allocation20 + $0xf4] ss:$24 sps:$4 sm:$0xff]  }
 0x4df   :  { %v6816_v61 = vpop.f32.mrb[19].mxu0  ;;  %v7519_v14 = vld [vmem:[#allocation20 + $0x15c] ss:$24 sps:$4 sm:$0xff]  }
 0x4e0   :  { %v8743_v40 = vadd.f32 %v6814_v59, %v3054_v56  ;;  %v7513_v56 = vld [vmem:[#allocation20 + $0x12c] ss:$24 sps:$4 sm:$0xff]   ;;  %v7511_v59 = vld [vmem:[#allocation20 + $0x128] ss:$24 sps:$4 sm:$0xff]  }
 0x4e1   :  { %v7502_v61 = vld [vmem:[#allocation20 + $0xf0] ss:$24 sps:$4 sm:$0xff]  }
 0x4e2   :  { %v6396_v63 = vclamps-f32 %v8743_v40, 5.0 }
 0x4e4   :  { %v3101_v1 = vmul.f32 1.442695, %v6396_v63  ;;  %v7510_v63 = vld [vmem:[#allocation20 + $0x124] ss:$24 sps:$4 sm:$0xff]  }
 0x4e6   :  { %7952 = vpow2.f32 %v3101_v1  ;;  %v7517_v1 = vld [vmem:[#allocation20 + $0x158] ss:$24 sps:$4 sm:$0xff]  }
 0x4f0   :  { %v8750_v16 = vpop.eup %7952 }
 0x4f1   :  { %v3107_v17 = vmul.f32 %v8750_v16, %v3105_v9  ;;  %v7528_v9 = vld [vmem:[#allocation20 + $0x1b4] ss:$24 sps:$4 sm:$0xff]  }
 0x4f3   :  { %3109 = vrot.lane.b32.xlu0 %v3107_v17, %s8346_s1  ;;  %v7526_v17 = vld [vmem:[#allocation20 + $0x1b0] ss:$24 sps:$4 sm:$0xff]  }
 0x565   :  { %v3110_v18 = vpop.permute.xlu0 %3109 }
 0x566   :  { %v3112_v26 = vadd.f32 %v3110_v18, %v8743_v40  ;;  %v7541_v18 = vld [vmem:[#allocation20 + $0x218] ss:$24 sps:$4 sm:$0xff]  }
 0x568   :  { %v3113_v21 = vpack.c.bf16 %v3112_v26, %v3112_v26  ;;  %v7549_v26 = vld [vmem:[#allocation20 + $0x24c] ss:$24 sps:$4 sm:$0xff]  }
 0x56a   :  { %3115 = vrot.lane.b32.xlu1 %v3113_v21, %s8347_s19  ;;  %v7540_v21 = vld [vmem:[#allocation20 + $0x214] ss:$24 sps:$4 sm:$0xff]  }
 0x5dc   :  { %v3116_v28 = vpop.permute.xlu1 %3115 }
 0x5dd   :  { %v3120_v34 = vsel %vm3117_vm2, %v238_v24, %v3116_v28  ;;  %v7555_v24 = vld [vmem:[#allocation20 + $0x27c] ss:$24 sps:$4 sm:$0xff]  }
 0x5de   :  { %6410 = vmatmul.mubr.msk.bf16.vlgmr.msra.gmra.mrb[16].mxu1 %vm3207_vm3, %v3120_v34  ;;  %6412 = vmatmul.mubr.msk.bf16.vlgmr.msra.gmra.mrb[20].mxu0 %vm3207_vm3, %v3120_v34  ;;  %v7546_v28 = vld [vmem:[#allocation20 + $0x244] ss:$24 sps:$4 sm:$0xff]  }
 0x5df   :  { %3312 = vmatpush1.bf16.msra.mxu0 %v7467_v27  ;;  %3343 = vmatprep.mubr.bf16.mxu0 %v8344_v0  ;;  %v7478_v0 = vld [vmem:[#allocation20 + $0x30] ss:$24 sps:$4 sm:$0xff]  }
 0x5e0   :  { %6413 = vmatprep.subr.msk.bf16.mxu0 %vm3210_vm1, %v6408_v29  ;;  %5248 = vmatpush1.bf16.msra.mxu1 %v7475_v32  ;;  %v7538_v27 = vld [vmem:[#allocation20 + $0x210] ss:$24 sps:$4 sm:$0xff]   ;;  %v7552_v32 = vld [vmem:[#allocation20 + $0x274] ss:$24 sps:$4 sm:$0xff]  }
 0x5e1   :  { %5249 = vmatprep.subr.bf16.mxu1 %v7483_v35  ;;  %v7553_v29 = vld [vmem:[#allocation20 + $0x278] ss:$24 sps:$4 sm:$0xff]   ;;  %v7558_v35 = vld [vmem:[#allocation20 + $0x2a4] ss:$24 sps:$4 sm:$0xff]  }
 0x5e3   :  { %3314 = vmatpush1.bf16.msra.mxu0 %v3224_v33  ;;  %v7561_v33 = vld [vmem:[#allocation20 + $0x2ac] ss:$24 sps:$4 sm:$0xff]  }
 0x5e4   :  { %5124 = vmatprep.subr.bf16.mxu0 %v7474_v37  ;;  %5250 = vmatpush1.bf16.msra.mxu1 %v7481_v19  ;;  %v7556_v37 = vld [vmem:[#allocation20 + $0x2a0] ss:$24 sps:$4 sm:$0xff]  }
 0x5e5   :  { %5251 = vmatprep.subr.bf16.mxu1 %v7489_v39  ;;  %v7559_v19 = vld [vmem:[#allocation20 + $0x2a8] ss:$24 sps:$4 sm:$0xff]   ;;  %v7564_v39 = vld [vmem:[#allocation20 + $0x2d4] ss:$24 sps:$4 sm:$0xff]  }
 0x5e6   :  { %6414 = vmatmul.mubr.msk.bf16.vlgmr.msra.gmra.mrb[24].mxu0 %vm3207_vm3, %v3120_v34  ;;  %v7550_v34 = vld [vmem:[#allocation20 + $0x270] ss:$24 sps:$4 sm:$0xff]  }
 0x5e7   :  { %5125 = vmatpush1.bf16.msra.mxu0 %v7472_v41  ;;  %v7567_v41 = vld [vmem:[#allocation20 + $0x2dc] ss:$24 sps:$4 sm:$0xff]  }
 0x5e8   :  { %5126 = vmatprep.subr.bf16.mxu0 %v7480_v42  ;;  %5252 = vmatpush1.bf16.msra.mxu1 %v7487_v43  ;;  %v7562_v42 = vld [vmem:[#allocation20 + $0x2d0] ss:$24 sps:$4 sm:$0xff]  }
 0x5e9   :  { %5253 = vmatprep.subr.bf16.mxu1 %v7495_v45  ;;  %v7565_v43 = vld [vmem:[#allocation20 + $0x2d8] ss:$24 sps:$4 sm:$0xff]   ;;  %v7570_v45 = vld [vmem:[#allocation20 + $0x304] ss:$24 sps:$4 sm:$0xff]  }
 0x5eb   :  { %5127 = vmatpush1.bf16.msra.mxu0 %v7478_v0  ;;  %v7573_v0 = vld [vmem:[#allocation20 + $0x30c] ss:$24 sps:$4 sm:$0xff]  }
 0x5ec   :  { %5128 = vmatprep.subr.bf16.mxu0 %v7486_v46  ;;  %5254 = vmatpush1.bf16.msra.mxu1 %v7493_v47  ;;  %v8760_v46 = vld [vmem:[#allocation19] sm:$0x3f] }
 0x5ed   :  { %5255 = vmatprep.subr.bf16.mxu1 %v7501_v48  ;;  %v3135_v47 = vrot.slane %v8760_v46, %v8658_v13  ;;  %v3139_v48 = vrot.slane %v8760_v46, %v8663_v15 }
 0x5ef   :  { %5129 = vmatpush1.bf16.msra.mxu0 %v7484_v25  ;;  %v3147_v25 = vrot.slane %v8760_v46, %v8670_v23 }
 0x5f0   :  { %5130 = vmatprep.subr.bf16.mxu0 %v7492_v49  ;;  %5256 = vmatpush1.bf16.msra.mxu1 %v7499_v50 }
 0x5f1   :  { %5257 = vmatprep.subr.bf16.mxu1 %v7507_v51 }
 0x5f3   :  { %5131 = vmatpush1.bf16.msra.mxu0 %v7490_v53 }
 0x5f4   :  { %5132 = vmatprep.subr.bf16.mxu0 %v7498_v54  ;;  %5258 = vmatpush1.bf16.msra.mxu1 %v7505_v55 }
 0x5f5   :  { %5259 = vmatprep.subr.bf16.mxu1 %v7513_v56 }
 0x5f7   :  { %5133 = vmatpush1.bf16.msra.mxu0 %v7496_v57 }
 0x5f8   :  { %5134 = vmatprep.subr.bf16.mxu0 %v7504_v58  ;;  %5260 = vmatpush1.bf16.msra.mxu1 %v7511_v59 }
 0x5f9   :  { %5261 = vmatprep.subr.bf16.mxu1 %v7519_v14 }
 0x5fb   :  { %5135 = vmatpush1.bf16.msra.mxu0 %v7502_v61 }
 0x5fc   :  { %5136 = vmatprep.subr.bf16.mxu0 %v7510_v63  ;;  %5262 = vmatpush1.bf16.msra.mxu1 %v7517_v1 }
 0x5fd   :  { %5263 = vmatprep.subr.bf16.mxu1 %v7525_v2 }
 0x5ff   :  { %5137 = vmatpush1.bf16.msra.mxu0 %v7508_v62  ;;  %v7568_v62 = vld [vmem:[#allocation20 + $0x300] ss:$24 sps:$4 sm:$0xff]  }
 0x600   :  { %5138 = vmatprep.subr.bf16.mxu0 %v7516_v30  ;;  %5264 = vmatpush1.bf16.msra.mxu1 %v7523_v3  ;;  %v7571_v30 = vld [vmem:[#allocation20 + $0x308] ss:$24 sps:$4 sm:$0xff]  }
 0x601   :  { %5265 = vmatprep.subr.bf16.mxu1 %v7531_v4 }
 0x603   :  { %5139 = vmatpush1.bf16.msra.mxu0 %v7514_v12  ;;  %v7576_v12 = vld [vmem:[#allocation20 + $0x334] ss:$24 sps:$4 sm:$0xff]  }
 0x604   :  { %5140 = vmatprep.subr.bf16.mxu0 %v7522_v5  ;;  %5266 = vmatpush1.bf16.msra.mxu1 %v7529_v6  ;;  %v7579_v5 = vld [vmem:[#allocation20 + $0x33c] ss:$24 sps:$4 sm:$0xff]  }
 0x605   :  { %5267 = vmatprep.subr.bf16.mxu1 %v7537_v7 }
 0x607   :  { %5141 = vmatpush1.bf16.msra.mxu0 %v7520_v8 }
 0x608   :  { %5142 = vmatprep.subr.bf16.mxu0 %v7528_v9  ;;  %5268 = vmatpush1.bf16.msra.mxu1 %v7535_v10  ;;  %v7574_v9 = vld [vmem:[#allocation20 + $0x330] ss:$24 sps:$4 sm:$0xff]  }
 0x609   :  { %5269 = vmatprep.subr.bf16.mxu1 %v7543_v36  ;;  %v7577_v10 = vld [vmem:[#allocation20 + $0x338] ss:$24 sps:$4 sm:$0xff]  }
 0x60b   :  { %5143 = vmatpush1.bf16.msra.mxu0 %v7526_v17  ;;  %v7582_v17 = vld [vmem:[#allocation20 + $0x364] ss:$24 sps:$4 sm:$0xff]  }
 0x60c   :  { %5144 = vmatprep.subr.bf16.mxu0 %v7534_v52  ;;  %5270 = vmatpush1.bf16.msra.mxu1 %v7541_v18  ;;  %v7585_v52 = vld [vmem:[#allocation20 + $0x36c] ss:$24 sps:$4 sm:$0xff]   ;;  %v7580_v18 = vld [vmem:[#allocation20 + $0x360] ss:$24 sps:$4 sm:$0xff]  }
 0x60d   :  { %5271 = vmatprep.subr.bf16.mxu1 %v7549_v26  ;;  %v7583_v26 = vld [vmem:[#allocation20 + $0x368] ss:$24 sps:$4 sm:$0xff]  }
 0x60f   :  { %5145 = vmatpush1.bf16.msra.mxu0 %v7532_v20  ;;  %v7588_v20 = vld [vmem:[#allocation20 + $0x394] ss:$24 sps:$4 sm:$0xff]  }
 0x610   :  { %5146 = vmatprep.subr.bf16.mxu0 %v7540_v21  ;;  %5272 = vmatpush1.bf16.msra.mxu1 %v7547_v22  ;;  %v7591_v21 = vld [vmem:[#allocation20 + $0x39c] ss:$24 sps:$4 sm:$0xff]   ;;  %v7586_v22 = vld [vmem:[#allocation20 + $0x390] ss:$24 sps:$4 sm:$0xff]  }
 0x611   :  { %5273 = vmatprep.subr.bf16.mxu1 %v7555_v24  ;;  %v7589_v24 = vld [vmem:[#allocation20 + $0x398] ss:$24 sps:$4 sm:$0xff]  }
 0x613   :  { %5147 = vmatpush1.bf16.msra.mxu0 %v7538_v27  ;;  %v7594_v27 = vld [vmem:[#allocation20 + $0x3c4] ss:$24 sps:$4 sm:$0xff]  }
 0x614   :  { %5148 = vmatprep.subr.bf16.mxu0 %v7546_v28  ;;  %5274 = vmatpush1.bf16.msra.mxu1 %v7553_v29  ;;  %v7597_v28 = vld [vmem:[#allocation20 + $0x3cc] ss:$24 sps:$4 sm:$0xff]   ;;  %v7592_v29 = vld [vmem:[#allocation20 + $0x3c0] ss:$24 sps:$4 sm:$0xff]  }
 0x615   :  { %5275 = vmatprep.subr.bf16.mxu1 %v7561_v33  ;;  %v7601_v33 = vld [vmem:[#allocation20 + $0x3f8] ss:$24 sps:$4 sm:$0xff]  }
 0x617   :  { %5149 = vmatpush1.bf16.msra.mxu0 %v7544_v31  ;;  %v7595_v31 = vld [vmem:[#allocation20 + $0x3c8] ss:$24 sps:$4 sm:$0xff]  }
 0x618   :  { %5150 = vmatprep.subr.bf16.mxu0 %v7552_v32  ;;  %5276 = vmatpush1.bf16.msra.mxu1 %v7559_v19  ;;  %v7600_v32 = vld [vmem:[#allocation20 + $0x3f4] ss:$24 sps:$4 sm:$0xff]  }
 0x619   :  { %5277 = vmatprep.subr.bf16.mxu1 %v7567_v41  ;;  %v7609_v19 = vld [vmem:[#allocation20 + $0x42c] ss:$24 sps:$4 sm:$0xff]   ;;  %v7607_v41 = vld [vmem:[#allocation20 + $0x428] ss:$24 sps:$4 sm:$0xff]  }
 0x61b   :  { %5151 = vmatpush1.bf16.msra.mxu0 %v7550_v34  ;;  %v7603_v34 = vld [vmem:[#allocation20 + $0x3fc] ss:$24 sps:$4 sm:$0xff]  }
 0x61c   :  { %5152 = vmatprep.subr.bf16.mxu0 %v7558_v35  ;;  %5278 = vmatpush1.bf16.msra.mxu1 %v7565_v43  ;;  %v7598_v35 = vld [vmem:[#allocation20 + $0x3f0] ss:$24 sps:$4 sm:$0xff]   ;;  %v7615_v43 = vld [vmem:[#allocation20 + $0x45c] ss:$24 sps:$4 sm:$0xff]  }
 0x61d   :  { %5288 = vmatprep.subr.bf16.mxu1 %v7573_v0  ;;  %v7613_v0 = vld [vmem:[#allocation20 + $0x458] ss:$24 sps:$4 sm:$0xff]  }
 0x61f   :  { %5153 = vmatpush1.bf16.msra.mxu0 %v7556_v37  ;;  %v7606_v37 = vld [vmem:[#allocation20 + $0x424] ss:$24 sps:$4 sm:$0xff]  }
 0x620   :  { %5154 = vmatprep.subr.bf16.mxu0 %v7564_v39  ;;  %v7604_v39 = vld [vmem:[#allocation20 + $0x420] ss:$24 sps:$4 sm:$0xff]  }
 0x623   :  { %5155 = vmatpush1.bf16.msra.mxu0 %v7562_v42  ;;  %v7612_v42 = vld [vmem:[#allocation20 + $0x454] ss:$24 sps:$4 sm:$0xff]  }
 0x624   :  { %5165 = vmatprep.subr.bf16.mxu0 %v7570_v45  ;;  %v7610_v45 = vld [vmem:[#allocation20 + $0x450] ss:$24 sps:$4 sm:$0xff]  }
 0x6b1   :  { %v3263_v49 = vpop.f32.mrb[16].mxu1  ;;  %v8768_v50 = vpop.f32.mrb[20].mxu0 }
 0x6b2   :  { %v3264_v51 = vadd.f32 %v3263_v49, %v3135_v47  ;;  %v3265_v53 = vpop.f32.mrb[17].mxu1  ;;  %v3306_v54 = vpop.f32.mrb[21].mxu0  ;;  %v7618_v47 = vld [vmem:[#allocation20 + $0x484] ss:$24 sps:$4 sm:$0xff]   ;;  %v7619_v49 = vld [vmem:[#allocation20 + $0x488] ss:$24 sps:$4 sm:$0xff]  }
 0x6b3   :  { %v3266_v55 = vadd.f32 %v3265_v53, %v3139_v48  ;;  %v3307_v56 = vadd.f32 %v3306_v54, %v3147_v25  ;;  %v3267_v57 = vpop.f32.mrb[18].mxu1  ;;  %v3308_v58 = vpop.f32.mrb[22].mxu0  ;;  %v7621_v48 = vld [vmem:[#allocation20 + $0x48c] ss:$24 sps:$4 sm:$0xff]   ;;  %v7616_v25 = vld [vmem:[#allocation20 + $0x480] ss:$24 sps:$4 sm:$0xff]  }
 0x6b4   :  { %v3352_v59 = vmax.f32 %v3264_v51, 0.0  ;;  %v3268_v14 = vpop.f32.mrb[19].mxu1  ;;  %v3309_v61 = vpop.f32.mrb[23].mxu0  ;;  %v7624_v51 = vld [vmem:[#allocation20 + $0x4b4] ss:$24 sps:$4 sm:$0xff]  }
 0x6b5   :  { %v3353_v63 = vmax.f32 %v3266_v55, 0.0  ;;  %v3355_v1 = vmax.f32 %v3307_v56, 0.0  ;;  %v7627_v53 = vld [vmem:[#allocation20 + $0x4bc] ss:$24 sps:$4 sm:$0xff]   ;;  %v7622_v54 = vld [vmem:[#allocation20 + $0x4b0] ss:$24 sps:$4 sm:$0xff]  }
 0x6b6   :  { %v8772_v3 = vpack.c.bf16 %v3352_v59, %v3352_v59  ;;  %v7625_v55 = vld [vmem:[#allocation20 + $0x4b8] ss:$24 sps:$4 sm:$0xff]   ;;  %v7630_v56 = vld [vmem:[#allocation20 + $0x4e4] ss:$24 sps:$4 sm:$0xff]   ;;  %v7631_v59 = vld [vmem:[#allocation20 + $0x4e8] ss:$24 sps:$4 sm:$0xff]  }
 0x6b7   :  { %v8770_v2 = vpack.c.bf16 %v3353_v63, %v3353_v63  ;;  %v8778_v6 = vpack.c.bf16 %v3355_v1, %v3355_v1  ;;  %v7633_v57 = vld [vmem:[#allocation20 + $0x4ec] ss:$24 sps:$4 sm:$0xff]   ;;  %v7628_v58 = vld [vmem:[#allocation20 + $0x4e0] ss:$24 sps:$4 sm:$0xff]   ;;  %v7639_v61 = vld [vmem:[#allocation20 + $0x51c] ss:$24 sps:$4 sm:$0xff]  }
 0x6b8   :  { %v7636_v14 = vld [vmem:[#allocation20 + $0x514] ss:$24 sps:$4 sm:$0xff]   ;;  %v7634_v63 = vld [vmem:[#allocation20 + $0x510] ss:$24 sps:$4 sm:$0xff]  }
 0x6b9   :  { %v8774_v4 = vpop.f32.mrb[24].mxu0  ;;  %5156 = vmatprep.mubr.bf16.mxu0 %v8770_v2  ;;  %5279 = vmatprep.mubr.bf16.mxu1 %v8770_v2  ;;  %v7637_v1 = vld [vmem:[#allocation20 + $0x518] ss:$24 sps:$4 sm:$0xff]  }
 0x6ba   :  { %v8780_v7 = vpop.f32.mrb[25].mxu0  ;;  %5157 = vmatmul.mubr.bf16.vlgmr.msra.gmra.mrb[28].mxu0 %v8772_v3  ;;  %5280 = vmatmul.mubr.bf16.vlgmr.msra.gmra.mrb[20].mxu1 %v8772_v3 }
 0x6bb   :  { %5166 = vmatpush1.bf16.msra.mxu0 %v7568_v62  ;;  %5289 = vmatpush1.bf16.msra.mxu1 %v7571_v30  ;;  %v3349_v8 = vpop.f32.mrb[26].mxu0  ;;  %v7642_v62 = vld [vmem:[#allocation20 + $0x544] ss:$24 sps:$4 sm:$0xff]  }
 0x6bc   :  { %5197 = vmatprep.mubr.bf16.mxu0 %v8778_v6  ;;  %5320 = vmatprep.mubr.bf16.mxu1 %v8778_v6  ;;  %v3350_v36 = vpop.f32.mrb[27].mxu0  ;;  %v7645_v30 = vld [vmem:[#allocation20 + $0x54c] ss:$24 sps:$4 sm:$0xff]  }
 0x6bd   :  { %5167 = vmatprep.subr.bf16.mxu0 %v7576_v12  ;;  %5290 = vmatprep.subr.bf16.mxu1 %v7579_v5  ;;  %v7640_v12 = vld [vmem:[#allocation20 + $0x540] ss:$24 sps:$4 sm:$0xff]   ;;  %v7648_v8 = vld [vmem:[#allocation20 + $0x574] ss:$24 sps:$4 sm:$0xff]  }
 0x6be   :  { %v7643_v5 = vld [vmem:[#allocation20 + $0x548] ss:$24 sps:$4 sm:$0xff]   ;;  %v7649_v36 = vld [vmem:[#allocation20 + $0x578] ss:$24 sps:$4 sm:$0xff]  }
 0x6bf   :  { %5168 = vmatpush1.bf16.msra.mxu0 %v7574_v9  ;;  %5291 = vmatpush1.bf16.msra.mxu1 %v7577_v10  ;;  %v7651_v9 = vld [vmem:[#allocation20 + $0x57c] ss:$24 sps:$4 sm:$0xff]   ;;  %v7646_v10 = vld [vmem:[#allocation20 + $0x570] ss:$24 sps:$4 sm:$0xff]  }
 0x6c0   :  { %5169 = vmatprep.subr.bf16.mxu0 %v7582_v17  ;;  %5292 = vmatprep.subr.bf16.mxu1 %v7585_v52  ;;  %v3143_v17 = vrot.slane %v8760_v46, %v8693_v38  ;;  %v7654_v52 = vld [vmem:[#allocation20 + $0x5a4] ss:$24 sps:$4 sm:$0xff]  }
 0x6c3   :  { %5170 = vmatpush1.bf16.msra.mxu0 %v7580_v18  ;;  %5293 = vmatpush1.bf16.msra.mxu1 %v7583_v26  ;;  %v7657_v18 = vld [vmem:[#allocation20 + $0x5ac] ss:$24 sps:$4 sm:$0xff]   ;;  %v3155_v26 = vrot.slane %v8760_v46, %v8696_v44 }
 0x6c4   :  { %5171 = vmatprep.subr.bf16.mxu0 %v7588_v20  ;;  %5294 = vmatprep.subr.bf16.mxu1 %v7591_v21  ;;  %v7652_v20 = vld [vmem:[#allocation20 + $0x5a0] ss:$24 sps:$4 sm:$0xff]  }
 0x6c5   :  { %v7655_v21 = vld [vmem:[#allocation20 + $0x5a8] ss:$24 sps:$4 sm:$0xff]  }
 0x6c7   :  { %5172 = vmatpush1.bf16.msra.mxu0 %v7586_v22  ;;  %5295 = vmatpush1.bf16.msra.mxu1 %v7589_v24  ;;  %v3305_v22 = vadd.f32 %v8768_v50, %v3143_v17  ;;  %v7660_v24 = vld [vmem:[#allocation20 + $0x5d4] ss:$24 sps:$4 sm:$0xff]   ;;  %v7712_v17 = vld [vmem:[#allocation20 + $0x780] ss:$24 sps:$4 sm:$0xff]  }
 0x6c8   :  { %5173 = vmatprep.subr.bf16.mxu0 %v7594_v27  ;;  %5296 = vmatprep.subr.bf16.mxu1 %v7597_v28  ;;  %v7663_v27 = vld [vmem:[#allocation20 + $0x5dc] ss:$24 sps:$4 sm:$0xff]   ;;  %v3348_v28 = vadd.f32 %v8780_v7, %v3155_v26 }
 0x6c9   :  { %v7672_v7 = vld [vmem:[#allocation20 + $0x634] ss:$24 sps:$4 sm:$0xff]  }
 0x6ca   :  { %v7723_v26 = vld [vmem:[#allocation20 + $0x7bc] ss:$24 sps:$4 sm:$0xff]  }
 0x6cb   :  { %5174 = vmatpush1.bf16.msra.mxu0 %v7592_v29  ;;  %5297 = vmatpush1.bf16.msra.mxu1 %v7595_v31  ;;  %v7658_v29 = vld [vmem:[#allocation20 + $0x5d0] ss:$24 sps:$4 sm:$0xff]  }
 0x6cc   :  { %5175 = vmatprep.subr.bf16.mxu0 %v7600_v32  ;;  %5298 = vmatprep.subr.bf16.mxu1 %v7603_v34  ;;  %v7661_v31 = vld [vmem:[#allocation20 + $0x5d8] ss:$24 sps:$4 sm:$0xff]   ;;  %v3354_v32 = vmax.f32 %v3305_v22, 0.0  ;;  %v7666_v34 = vld [vmem:[#allocation20 + $0x604] ss:$24 sps:$4 sm:$0xff]  }
 0x6cd   :  { %v7726_v22 = vld [vmem:[#allocation20 + $0x7e4] ss:$24 sps:$4 sm:$0xff]  }
 0x6ce   :  { %v8792_v50 = vpack.c.bf16 %v3354_v32, %v3354_v32  ;;  %v7730_v32 = vld [vmem:[#allocation20 + $0x810] ss:$24 sps:$4 sm:$0xff]  }
 0x6cf   :  { %5176 = vmatpush1.bf16.msra.mxu0 %v7598_v35  ;;  %5299 = vmatpush1.bf16.msra.mxu1 %v7601_v33  ;;  %v7669_v35 = vld [vmem:[#allocation20 + $0x60c] ss:$24 sps:$4 sm:$0xff]   ;;  %v3357_v33 = vmax.f32 %v3348_v28, 0.0  ;;  %v7727_v28 = vld [vmem:[#allocation20 + $0x7e8] ss:$24 sps:$4 sm:$0xff]  }
 0x6d0   :  { %5177 = vmatprep.subr.bf16.mxu0 %v7606_v37  ;;  %5300 = vmatprep.subr.bf16.mxu1 %v7609_v19  ;;  %v7664_v37 = vld [vmem:[#allocation20 + $0x600] ss:$24 sps:$4 sm:$0xff]  }
 0x6d1   :  { %v7667_v19 = vld [vmem:[#allocation20 + $0x608] ss:$24 sps:$4 sm:$0xff]  }
 0x6d3   :  { %5178 = vmatpush1.bf16.msra.mxu0 %v7604_v39  ;;  %5301 = vmatpush1.bf16.msra.mxu1 %v7607_v41  ;;  %v8794_v39 = vpack.c.bf16 %v3357_v33, %v3357_v33  ;;  %v7675_v41 = vld [vmem:[#allocation20 + $0x63c] ss:$24 sps:$4 sm:$0xff]   ;;  %v7741_v33 = vld [vmem:[#allocation20 + $0x84c] ss:$24 sps:$4 sm:$0xff]  }
 0x6d4   :  { %5179 = vmatprep.subr.bf16.mxu0 %v7612_v42  ;;  %5302 = vmatprep.subr.bf16.mxu1 %v7615_v43  ;;  %v7670_v42 = vld [vmem:[#allocation20 + $0x630] ss:$24 sps:$4 sm:$0xff]  }
 0x6d5   :  { %v7673_v43 = vld [vmem:[#allocation20 + $0x638] ss:$24 sps:$4 sm:$0xff]  }
 0x6d7   :  { %5180 = vmatpush1.bf16.msra.mxu0 %v7610_v45  ;;  %5303 = vmatpush1.bf16.msra.mxu1 %v7613_v0  ;;  %v7678_v45 = vld [vmem:[#allocation20 + $0x664] ss:$24 sps:$4 sm:$0xff]  }
 0x6d8   :  { %5181 = vmatprep.subr.bf16.mxu0 %v7618_v47  ;;  %5304 = vmatprep.subr.bf16.mxu1 %v7621_v48  ;;  %v7681_v0 = vld [vmem:[#allocation20 + $0x66c] ss:$24 sps:$4 sm:$0xff]   ;;  %v7676_v47 = vld [vmem:[#allocation20 + $0x660] ss:$24 sps:$4 sm:$0xff]  }
 0x6d9   :  { %v7679_v48 = vld [vmem:[#allocation20 + $0x668] ss:$24 sps:$4 sm:$0xff]  }
 0x6db   :  { %5182 = vmatpush1.bf16.msra.mxu0 %v7616_v25  ;;  %5305 = vmatpush1.bf16.msra.mxu1 %v7619_v49  ;;  %v7684_v25 = vld [vmem:[#allocation20 + $0x694] ss:$24 sps:$4 sm:$0xff]  }
 0x6dc   :  { %5183 = vmatprep.subr.bf16.mxu0 %v7624_v51  ;;  %5306 = vmatprep.subr.bf16.mxu1 %v7627_v53  ;;  %v7687_v49 = vld [vmem:[#allocation20 + $0x69c] ss:$24 sps:$4 sm:$0xff]   ;;  %v7682_v51 = vld [vmem:[#allocation20 + $0x690] ss:$24 sps:$4 sm:$0xff]  }
 0x6dd   :  { %v7685_v53 = vld [vmem:[#allocation20 + $0x698] ss:$24 sps:$4 sm:$0xff]  }
 0x6df   :  { %5184 = vmatpush1.bf16.msra.mxu0 %v7622_v54  ;;  %5307 = vmatpush1.bf16.msra.mxu1 %v7625_v55  ;;  %v7690_v54 = vld [vmem:[#allocation20 + $0x6c4] ss:$24 sps:$4 sm:$0xff]  }
 0x6e0   :  { %5185 = vmatprep.subr.bf16.mxu0 %v7630_v56  ;;  %5308 = vmatprep.subr.bf16.mxu1 %v7633_v57  ;;  %v7693_v55 = vld [vmem:[#allocation20 + $0x6cc] ss:$24 sps:$4 sm:$0xff]   ;;  %v7688_v56 = vld [vmem:[#allocation20 + $0x6c0] ss:$24 sps:$4 sm:$0xff]  }
 0x6e1   :  { %v7691_v57 = vld [vmem:[#allocation20 + $0x6c8] ss:$24 sps:$4 sm:$0xff]  }
 0x6e3   :  { %5186 = vmatpush1.bf16.msra.mxu0 %v7628_v58  ;;  %5309 = vmatpush1.bf16.msra.mxu1 %v7631_v59  ;;  %v7696_v58 = vld [vmem:[#allocation20 + $0x6f4] ss:$24 sps:$4 sm:$0xff]  }
 0x6e4   :  { %5187 = vmatprep.subr.bf16.mxu0 %v7636_v14  ;;  %5310 = vmatprep.subr.bf16.mxu1 %v7639_v61  ;;  %v7699_v59 = vld [vmem:[#allocation20 + $0x6fc] ss:$24 sps:$4 sm:$0xff]   ;;  %v7694_v14 = vld [vmem:[#allocation20 + $0x6f0] ss:$24 sps:$4 sm:$0xff]  }
 0x6e5   :  { %v7697_v61 = vld [vmem:[#allocation20 + $0x6f8] ss:$24 sps:$4 sm:$0xff]  }
 0x6e7   :  { %5188 = vmatpush1.bf16.msra.mxu0 %v7634_v63  ;;  %5311 = vmatpush1.bf16.msra.mxu1 %v7637_v1  ;;  %v7702_v63 = vld [vmem:[#allocation20 + $0x724] ss:$24 sps:$4 sm:$0xff]  }
 0x6e8   :  { %5189 = vmatprep.subr.bf16.mxu0 %v7642_v62  ;;  %5312 = vmatprep.subr.bf16.mxu1 %v7645_v30  ;;  %v7705_v1 = vld [vmem:[#allocation20 + $0x72c] ss:$24 sps:$4 sm:$0xff]   ;;  %v7700_v62 = vld [vmem:[#allocation20 + $0x720] ss:$24 sps:$4 sm:$0xff]  }
 0x6e9   :  { %v7703_v30 = vld [vmem:[#allocation20 + $0x728] ss:$24 sps:$4 sm:$0xff]  }
 0x6eb   :  { %5190 = vmatpush1.bf16.msra.mxu0 %v7640_v12  ;;  %5313 = vmatpush1.bf16.msra.mxu1 %v7643_v5  ;;  %v7708_v12 = vld [vmem:[#allocation20 + $0x754] ss:$24 sps:$4 sm:$0xff]  }
 0x6ec   :  { %5191 = vmatprep.subr.bf16.mxu0 %v7648_v8  ;;  %5314 = vmatprep.subr.bf16.mxu1 %v7651_v9  ;;  %v7711_v5 = vld [vmem:[#allocation20 + $0x75c] ss:$24 sps:$4 sm:$0xff]   ;;  %v7706_v8 = vld [vmem:[#allocation20 + $0x750] ss:$24 sps:$4 sm:$0xff]  }
 0x6ed   :  { %v7709_v9 = vld [vmem:[#allocation20 + $0x758] ss:$24 sps:$4 sm:$0xff]  }
 0x6ef   :  { %5192 = vmatpush1.bf16.msra.mxu0 %v7646_v10  ;;  %5315 = vmatpush1.bf16.msra.mxu1 %v7649_v36  ;;  %v7714_v10 = vld [vmem:[#allocation20 + $0x784] ss:$24 sps:$4 sm:$0xff]  }
 0x6f0   :  { %5193 = vmatprep.subr.bf16.mxu0 %v7654_v52  ;;  %5316 = vmatprep.subr.bf16.mxu1 %v7657_v18  ;;  %v7717_v36 = vld [vmem:[#allocation20 + $0x78c] ss:$24 sps:$4 sm:$0xff]   ;;  %v7715_v52 = vld [vmem:[#allocation20 + $0x788] ss:$24 sps:$4 sm:$0xff]  }
 0x6f1   :  { %v7720_v18 = vld [vmem:[#allocation20 + $0x7b4] ss:$24 sps:$4 sm:$0xff]  }
 0x6f3   :  { %5194 = vmatpush1.bf16.msra.mxu0 %v7652_v20  ;;  %5317 = vmatpush1.bf16.msra.mxu1 %v7655_v21  ;;  %v7718_v20 = vld [vmem:[#allocation20 + $0x7b0] ss:$24 sps:$4 sm:$0xff]  }
 0x6f4   :  { %5195 = vmatprep.subr.bf16.mxu0 %v7660_v24  ;;  %5318 = vmatprep.subr.bf16.mxu1 %v7663_v27  ;;  %v7721_v21 = vld [vmem:[#allocation20 + $0x7b8] ss:$24 sps:$4 sm:$0xff]   ;;  %v7729_v24 = vld [vmem:[#allocation20 + $0x7ec] ss:$24 sps:$4 sm:$0xff]  }
 0x6f5   :  { %v7724_v27 = vld [vmem:[#allocation20 + $0x7e0] ss:$24 sps:$4 sm:$0xff]  }
 0x6f7   :  { %5196 = vmatpush1.bf16.msra.mxu0 %v7658_v29  ;;  %5319 = vmatpush1.bf16.msra.mxu1 %v7661_v31  ;;  %v7732_v29 = vld [vmem:[#allocation20 + $0x814] ss:$24 sps:$4 sm:$0xff]  }
 0x6f8   :  { %5206 = vmatprep.subr.bf16.mxu0 %v7666_v34  ;;  %5329 = vmatprep.subr.bf16.mxu1 %v7669_v35  ;;  %v7735_v31 = vld [vmem:[#allocation20 + $0x81c] ss:$24 sps:$4 sm:$0xff]   ;;  %v7733_v34 = vld [vmem:[#allocation20 + $0x818] ss:$24 sps:$4 sm:$0xff]  }
 0x6f9   :  { %v7738_v35 = vld [vmem:[#allocation20 + $0x844] ss:$24 sps:$4 sm:$0xff]  }
 0x6fa   :  { %5198 = vmatmul.mubr.bf16.vlgmr.msra.gmra.mrb[28].mxu0 %v8792_v50  ;;  %5321 = vmatmul.mubr.bf16.vlgmr.msra.gmra.mrb[20].mxu1 %v8792_v50 }
 0x6fb   :  { %5207 = vmatpush1.bf16.msra.mxu0 %v7664_v37  ;;  %5238 = vmatprep.mubr.bf16.mxu0 %v8794_v39  ;;  %v7736_v37 = vld [vmem:[#allocation20 + $0x840] ss:$24 sps:$4 sm:$0xff]  }
 0x6fc   :  { %5330 = vmatpush1.bf16.msra.mxu1 %v7667_v19  ;;  %5361 = vmatprep.mubr.bf16.mxu1 %v8794_v39  ;;  %v7739_v19 = vld [vmem:[#allocation20 + $0x848] ss:$24 sps:$4 sm:$0xff]  }
 0x6fd   :  { %5208 = vmatprep.subr.bf16.mxu0 %v7672_v7  ;;  %5331 = vmatprep.subr.bf16.mxu1 %v7675_v41  ;;  %v7744_v7 = vld [vmem:[#allocation20 + $0x874] ss:$24 sps:$4 sm:$0xff]  }
 0x6fe   :  { %v7747_v41 = vld [vmem:[#allocation20 + $0x87c] ss:$24 sps:$4 sm:$0xff]  }
 0x6ff   :  { %5209 = vmatpush1.bf16.msra.mxu0 %v7670_v42  ;;  %v7742_v42 = vld [vmem:[#allocation20 + $0x870] ss:$24 sps:$4 sm:$0xff]  }
 0x700   :  { %5332 = vmatpush1.bf16.msra.mxu1 %v7673_v43  ;;  %5210 = vmatprep.subr.bf16.mxu0 %v7678_v45  ;;  %v3151_v43 = vrot.slane %v8760_v46, %v8713_v60  ;;  %v7745_v45 = vld [vmem:[#allocation20 + $0x878] ss:$24 sps:$4 sm:$0xff]  }
 0x701   :  { %5333 = vmatprep.subr.bf16.mxu1 %v7681_v0  ;;  %v7750_v0 = vld [vmem:[#allocation20 + $0x8a4] ss:$24 sps:$4 sm:$0xff]   ;;  %v7757_v46 = vld [vmem:[#allocation20 + $0x8d8] ss:$24 sps:$4 sm:$0xff]  }
 0x703   :  { %5211 = vmatpush1.bf16.msra.mxu0 %v7676_v47  ;;  %v7753_v47 = vld [vmem:[#allocation20 + $0x8ac] ss:$24 sps:$4 sm:$0xff]  }
 0x704   :  { %5334 = vmatpush1.bf16.msra.mxu1 %v7679_v48  ;;  %5212 = vmatprep.subr.bf16.mxu0 %v7684_v25  ;;  %v7748_v48 = vld [vmem:[#allocation20 + $0x8a0] ss:$24 sps:$4 sm:$0xff]   ;;  %v3346_v25 = vadd.f32 %v8774_v4, %v3151_v43  ;;  %v7765_v4 = vld [vmem:[#allocation20 + $0x44] ss:$24 sps:$4 sm:$0xff]   ;;  %v7907_v43 = vld [vmem:[#allocation23 + $0x8] sm:$0xff]  }
 0x705   :  { %5335 = vmatprep.subr.bf16.mxu1 %v7687_v49  ;;  %v7751_v49 = vld [vmem:[#allocation20 + $0x8a8] ss:$24 sps:$4 sm:$0xff]  }
 0x707   :  { %5213 = vmatpush1.bf16.msra.mxu0 %v7682_v51  ;;  %v7756_v51 = vld [vmem:[#allocation20 + $0x8d4] ss:$24 sps:$4 sm:$0xff]  }
 0x708   :  { %5336 = vmatpush1.bf16.msra.mxu1 %v7685_v53  ;;  %5214 = vmatprep.subr.bf16.mxu0 %v7690_v54  ;;  %v7759_v53 = vld [vmem:[#allocation20 + $0x8dc] ss:$24 sps:$4 sm:$0xff]   ;;  %v7754_v54 = vld [vmem:[#allocation20 + $0x8d0] ss:$24 sps:$4 sm:$0xff]  }
 0x709   :  { %5337 = vmatprep.subr.bf16.mxu1 %v7693_v55  ;;  %v3356_v55 = vmax.f32 %v3346_v25, 0.0  ;;  %v7910_v25 = vld [vmem:[#allocation23 + $0x58] sm:$0xff]  }
 0x70b   :  { %5215 = vmatpush1.bf16.msra.mxu0 %v7688_v56  ;;  %v7762_v56 = vld [vmem:[#allocation20 + $0x14] ss:$24 sps:$4 sm:$0xff]  }
 0x70c   :  { %5338 = vmatpush1.bf16.msra.mxu1 %v7691_v57  ;;  %5216 = vmatprep.subr.bf16.mxu0 %v7696_v58  ;;  %v7760_v57 = vld [vmem:[#allocation20 + $0x10] ss:$24 sps:$4 sm:$0xff]   ;;  %v8803_v58 = vpack.c.bf16 %v3356_v55, %v3356_v55  ;;  %v7822_v55 = vld [vmem:[#allocation20 + $0x3d4] ss:$24 sps:$4 sm:$0xff]  }
 0x70d   :  { %5339 = vmatprep.subr.bf16.mxu1 %v7699_v59  ;;  %v7763_v59 = vld [vmem:[#allocation20 + $0x40] ss:$24 sps:$4 sm:$0xff]  }
 0x70f   :  { %5217 = vmatpush1.bf16.msra.mxu0 %v7694_v14  ;;  %v7768_v14 = vld [vmem:[#allocation20 + $0x74] ss:$24 sps:$4 sm:$0xff]  }
 0x710   :  { %5340 = vmatpush1.bf16.msra.mxu1 %v7697_v61  ;;  %5218 = vmatprep.subr.bf16.mxu0 %v7702_v63  ;;  %v7766_v61 = vld [vmem:[#allocation20 + $0x70] ss:$24 sps:$4 sm:$0xff]   ;;  %v7771_v63 = vld [vmem:[#allocation20 + $0xa4] ss:$24 sps:$4 sm:$0xff]  }
 0x711   :  { %5341 = vmatprep.subr.bf16.mxu1 %v7705_v1  ;;  %v7769_v1 = vld [vmem:[#allocation20 + $0xa0] ss:$24 sps:$4 sm:$0xff]  }
 0x713   :  { %5219 = vmatpush1.bf16.msra.mxu0 %v7700_v62  ;;  %v7774_v62 = vld [vmem:[#allocation20 + $0xd4] ss:$24 sps:$4 sm:$0xff]  }
 0x714   :  { %5342 = vmatpush1.bf16.msra.mxu1 %v7703_v30  ;;  %5220 = vmatprep.subr.bf16.mxu0 %v7708_v12  ;;  %v7772_v30 = vld [vmem:[#allocation20 + $0xd0] ss:$24 sps:$4 sm:$0xff]   ;;  %v7777_v12 = vld [vmem:[#allocation20 + $0x104] ss:$24 sps:$4 sm:$0xff]  }
 0x715   :  { %5343 = vmatprep.subr.bf16.mxu1 %v7711_v5  ;;  %v7775_v5 = vld [vmem:[#allocation20 + $0x100] ss:$24 sps:$4 sm:$0xff]  }
 0x717   :  { %5221 = vmatpush1.bf16.msra.mxu0 %v7706_v8  ;;  %v7780_v8 = vld [vmem:[#allocation20 + $0x134] ss:$24 sps:$4 sm:$0xff]  }
 0x718   :  { %5344 = vmatpush1.bf16.msra.mxu1 %v7709_v9  ;;  %5222 = vmatprep.subr.bf16.mxu0 %v7714_v10  ;;  %v7783_v9 = vld [vmem:[#allocation20 + $0x164] ss:$24 sps:$4 sm:$0xff]   ;;  %v7781_v10 = vld [vmem:[#allocation20 + $0x160] ss:$24 sps:$4 sm:$0xff]  }
 0x719   :  { %5345 = vmatprep.subr.bf16.mxu1 %v7717_v36  ;;  %v7786_v36 = vld [vmem:[#allocation20 + $0x194] ss:$24 sps:$4 sm:$0xff]  }
 0x71b   :  { %5223 = vmatpush1.bf16.msra.mxu0 %v7712_v17  ;;  %v7784_v17 = vld [vmem:[#allocation20 + $0x190] ss:$24 sps:$4 sm:$0xff]  }
 0x71c   :  { %5346 = vmatpush1.bf16.msra.mxu1 %v7715_v52  ;;  %5224 = vmatprep.subr.bf16.mxu0 %v7720_v18  ;;  %v7789_v52 = vld [vmem:[#allocation20 + $0x1c4] ss:$24 sps:$4 sm:$0xff]   ;;  %v7787_v18 = vld [vmem:[#allocation20 + $0x1c0] ss:$24 sps:$4 sm:$0xff]  }
 0x71d   :  { %5347 = vmatprep.subr.bf16.mxu1 %v7723_v26  ;;  %v7792_v26 = vld [vmem:[#allocation20 + $0x1f4] ss:$24 sps:$4 sm:$0xff]  }
 0x71f   :  { %5225 = vmatpush1.bf16.msra.mxu0 %v7718_v20  ;;  %v7790_v20 = vld [vmem:[#allocation20 + $0x1f0] ss:$24 sps:$4 sm:$0xff]  }
 0x720   :  { %5348 = vmatpush1.bf16.msra.mxu1 %v7721_v21  ;;  %5226 = vmatprep.subr.bf16.mxu0 %v7726_v22  ;;  %v7795_v21 = vld [vmem:[#allocation20 + $0x224] ss:$24 sps:$4 sm:$0xff]   ;;  %v7793_v22 = vld [vmem:[#allocation20 + $0x220] ss:$24 sps:$4 sm:$0xff]  }
 0x721   :  { %5349 = vmatprep.subr.bf16.mxu1 %v7729_v24  ;;  %v7798_v24 = vld [vmem:[#allocation20 + $0x254] ss:$24 sps:$4 sm:$0xff]  }
 0x723   :  { %5227 = vmatpush1.bf16.msra.mxu0 %v7724_v27  ;;  %v7796_v27 = vld [vmem:[#allocation20 + $0x250] ss:$24 sps:$4 sm:$0xff]  }
 0x724   :  { %5350 = vmatpush1.bf16.msra.mxu1 %v7727_v28  ;;  %5228 = vmatprep.subr.bf16.mxu0 %v7732_v29  ;;  %v7801_v28 = vld [vmem:[#allocation20 + $0x284] ss:$24 sps:$4 sm:$0xff]   ;;  %v7799_v29 = vld [vmem:[#allocation20 + $0x280] ss:$24 sps:$4 sm:$0xff]  }
 0x725   :  { %5351 = vmatprep.subr.bf16.mxu1 %v7735_v31  ;;  %v7804_v31 = vld [vmem:[#allocation20 + $0x2b4] ss:$24 sps:$4 sm:$0xff]  }
 0x727   :  { %5229 = vmatpush1.bf16.msra.mxu0 %v7730_v32  ;;  %v7802_v32 = vld [vmem:[#allocation20 + $0x2b0] ss:$24 sps:$4 sm:$0xff]  }
 0x728   :  { %5352 = vmatpush1.bf16.msra.mxu1 %v7733_v34  ;;  %5230 = vmatprep.subr.bf16.mxu0 %v7738_v35  ;;  %v7807_v34 = vld [vmem:[#allocation20 + $0x2e4] ss:$24 sps:$4 sm:$0xff]   ;;  %v7805_v35 = vld [vmem:[#allocation20 + $0x2e0] ss:$24 sps:$4 sm:$0xff]  }
 0x729   :  { %5353 = vmatprep.subr.bf16.mxu1 %v7741_v33  ;;  %v7901_v33 = vld [vmem:[#allocation23 + $0x40] sm:$0xff]  }
 0x72b   :  { %5231 = vmatpush1.bf16.msra.mxu0 %v7736_v37  ;;  %v7810_v37 = vld [vmem:[#allocation20 + $0x314] ss:$24 sps:$4 sm:$0xff]  }
 0x72c   :  { %5354 = vmatpush1.bf16.msra.mxu1 %v7739_v19  ;;  %5232 = vmatprep.subr.bf16.mxu0 %v7744_v7  ;;  %v7905_v19 = vld [vmem:[#allocation23] sm:$0xff]  }
 0x72d   :  { %5355 = vmatprep.subr.bf16.mxu1 %v7747_v41  ;;  %v7808_v7 = vld [vmem:[#allocation20 + $0x310] ss:$24 sps:$4 sm:$0xff]  }
 0x72e   :  { %v7906_v41 = vld [vmem:[#allocation23 + $0x48] sm:$0xff]  }
 0x72f   :  { %5233 = vmatpush1.bf16.msra.mxu0 %v7742_v42  ;;  %v7813_v42 = vld [vmem:[#allocation20 + $0x344] ss:$24 sps:$4 sm:$0xff]  }
 0x730   :  { %5356 = vmatpush1.bf16.msra.mxu1 %v7745_v45  ;;  %5234 = vmatprep.subr.bf16.mxu0 %v7750_v0  ;;  %v7908_v45 = vld [vmem:[#allocation23 + $0x50] sm:$0xff]  }
 0x731   :  { %5357 = vmatprep.subr.bf16.mxu1 %v7753_v47  ;;  %v7811_v0 = vld [vmem:[#allocation20 + $0x340] ss:$24 sps:$4 sm:$0xff]   ;;  %v7816_v47 = vld [vmem:[#allocation20 + $0x374] ss:$24 sps:$4 sm:$0xff]  }
 0x733   :  { %5235 = vmatpush1.bf16.msra.mxu0 %v7748_v48  ;;  %v7909_v48 = vld [vmem:[#allocation23 + $0x10] sm:$0xff]  }
 0x734   :  { %5358 = vmatpush1.bf16.msra.mxu1 %v7751_v49  ;;  %5236 = vmatprep.subr.bf16.mxu0 %v7756_v51  ;;  %v7814_v49 = vld [vmem:[#allocation20 + $0x370] ss:$24 sps:$4 sm:$0xff]   ;;  %v7819_v51 = vld [vmem:[#allocation20 + $0x3a4] ss:$24 sps:$4 sm:$0xff]  }
 0x735   :  { %5359 = vmatprep.subr.bf16.mxu1 %v7759_v53  ;;  %v7911_v53 = vld [vmem:[#allocation23 + $0x18] sm:$0xff]  }
 0x737   :  { %5237 = vmatpush1.bf16.msra.mxu0 %v7754_v54  ;;  %v7912_v54 = vld [vmem:[#allocation23 + $0x60] sm:$0xff]  }
 0x738   :  { %5360 = vmatpush1.bf16.msra.mxu1 %v7757_v46  ;;  %5370 = vmatprep.subr.bf16.mxu0 %v7762_v56  ;;  %v7914_v46 = vld [vmem:[#allocation23 + $0x68] sm:$0xff]  }
 0x739   :  { %6818 = vmatprep.subr.bf16.mxu1 %v7901_v33  ;;  %v7820_v56 = vld [vmem:[#allocation20 + $0x3d0] ss:$24 sps:$4 sm:$0xff]   ;;  %v7859_v33 = vld [vmem:[#allocation20 + $0x640] ss:$24 sps:$4 sm:$0xff]  }
 0x73a   :  { %5239 = vmatmul.mubr.bf16.vlgmr.msra.gmra.mrb[28].mxu0 %v8803_v58 }
 0x73b   :  { %5362 = vmatmul.mubr.bf16.vlgmr.msra.gmra.mrb[20].mxu1 %v8803_v58  ;;  %5371 = vmatpush1.bf16.msra.mxu0 %v7760_v57  ;;  %v7825_v57 = vld [vmem:[#allocation20 + $0x404] ss:$24 sps:$4 sm:$0xff]  }
 0x73c   :  { %5402 = vmatprep.mubr.bf16.mxu0 %v8770_v2  ;;  %5372 = vmatprep.subr.bf16.mxu0 %v7765_v4  ;;  %v7778_v2 = vld [vmem:[#allocation20 + $0x130] ss:$24 sps:$4 sm:$0xff]  }
 0x73d   :  { %6819 = vmatpush3.bf16.msra.mxu1 %v7905_v19  ;;  %v7915_v4 = vld [vmem:[#allocation23 + $0x28] sm:$0xff]  }
 0x73e   :  { %6820 = vmatprep.subr.bf16.mxu1 %v7906_v41  ;;  %v7862_v19 = vld [vmem:[#allocation20 + $0x670] ss:$24 sps:$4 sm:$0xff]   ;;  %v7865_v41 = vld [vmem:[#allocation20 + $0x6a0] ss:$24 sps:$4 sm:$0xff]  }
 0x73f   :  { %5373 = vmatpush1.bf16.msra.mxu0 %v7763_v59  ;;  %v7823_v59 = vld [vmem:[#allocation20 + $0x400] ss:$24 sps:$4 sm:$0xff]  }
 0x740   :  { %5374 = vmatprep.subr.bf16.mxu0 %v7768_v14  ;;  %v7828_v14 = vld [vmem:[#allocation20 + $0x434] ss:$24 sps:$4 sm:$0xff]  }
 0x741   :  { %6821 = vmatpush3.bf16.msra.mxu1 %v7907_v43  ;;  %v7868_v43 = vld [vmem:[#allocation20 + $0x6d0] ss:$24 sps:$4 sm:$0xff]  }
 0x742   :  { %6822 = vmatprep.subr.bf16.mxu1 %v7908_v45  ;;  %v7873_v45 = vld [vmem:[#allocation20 + $0x704] ss:$24 sps:$4 sm:$0xff]  }
 0x743   :  { %5375 = vmatpush1.bf16.msra.mxu0 %v7766_v61  ;;  %v7916_v61 = vld [vmem:[#allocation23 + $0x70] sm:$0xff]  }
 0x744   :  { %5376 = vmatprep.subr.bf16.mxu0 %v7771_v63  ;;  %v7917_v63 = vld [vmem:[#allocation23 + $0x30] sm:$0xff]  }
 0x745   :  { %6823 = vmatpush3.bf16.msra.mxu1 %v7909_v48  ;;  %v7877_v48 = vld [vmem:[#allocation20 + $0x760] ss:$24 sps:$4 sm:$0xff]  }
 0x746   :  { %6824 = vmatprep.subr.bf16.mxu1 %v7910_v25  ;;  %v7882_v25 = vld [vmem:[#allocation20 + $0x794] ss:$24 sps:$4 sm:$0xff]  }
 0x747   :  { %5377 = vmatpush1.bf16.msra.mxu0 %v7769_v1  ;;  %v7826_v1 = vld [vmem:[#allocation20 + $0x430] ss:$24 sps:$4 sm:$0xff]  }
 0x748   :  { %5378 = vmatprep.subr.bf16.mxu0 %v7774_v62  ;;  %v7831_v62 = vld [vmem:[#allocation20 + $0x464] ss:$24 sps:$4 sm:$0xff]  }
 0x749   :  { %6825 = vmatpush3.bf16.msra.mxu1 %v7911_v53  ;;  %v7883_v53 = vld [vmem:[#allocation20 + $0x7c0] ss:$24 sps:$4 sm:$0xff]  }
 0x74a   :  { %6826 = vmatprep.subr.bf16.mxu1 %v7912_v54  ;;  %v7888_v54 = vld [vmem:[#allocation20 + $0x7f4] ss:$24 sps:$4 sm:$0xff]  }
 0x74b   :  { %5379 = vmatpush1.bf16.msra.mxu0 %v7772_v30  ;;  %v7918_v30 = vld [vmem:[#allocation23 + $0x78] sm:$0xff]  }
 0x74c   :  { %5380 = vmatprep.subr.bf16.mxu0 %v7777_v12  ;;  %v7919_v12 = vld [vmem:[#allocation23 + $0x38] sm:$0xff]  }
 0x74f   :  { %5381 = vmatpush1.bf16.msra.mxu0 %v7775_v5  ;;  %v7829_v5 = vld [vmem:[#allocation20 + $0x460] ss:$24 sps:$4 sm:$0xff]  }
 0x750   :  { %5382 = vmatprep.subr.bf16.mxu0 %v7780_v8  ;;  %v7834_v8 = vld [vmem:[#allocation20 + $0x494] ss:$24 sps:$4 sm:$0xff]  }
 0x753   :  { %5383 = vmatpush1.bf16.msra.mxu0 %v7778_v2  ;;  %v7920_v2 = vld [vmem:[#allocation23 + $0xc0] sm:$0xff]  }
 0x754   :  { %5384 = vmatprep.subr.bf16.mxu0 %v7783_v9  ;;  %v7832_v9 = vld [vmem:[#allocation20 + $0x490] ss:$24 sps:$4 sm:$0xff]  }
 0x757   :  { %5385 = vmatpush1.bf16.msra.mxu0 %v7781_v10  ;;  %v7837_v10 = vld [vmem:[#allocation20 + $0x4c4] ss:$24 sps:$4 sm:$0xff]  }
 0x758   :  { %5386 = vmatprep.subr.bf16.mxu0 %v7786_v36  ;;  %v7835_v36 = vld [vmem:[#allocation20 + $0x4c0] ss:$24 sps:$4 sm:$0xff]  }
 0x75b   :  { %5387 = vmatpush1.bf16.msra.mxu0 %v7784_v17  ;;  %v7840_v17 = vld [vmem:[#allocation20 + $0x4f4] ss:$24 sps:$4 sm:$0xff]  }
 0x75c   :  { %5388 = vmatprep.subr.bf16.mxu0 %v7789_v52  ;;  %v7838_v52 = vld [vmem:[#allocation20 + $0x4f0] ss:$24 sps:$4 sm:$0xff]  }
 0x75f   :  { %5389 = vmatpush1.bf16.msra.mxu0 %v7787_v18  ;;  %v7843_v18 = vld [vmem:[#allocation20 + $0x524] ss:$24 sps:$4 sm:$0xff]  }
 0x760   :  { %5390 = vmatprep.subr.bf16.mxu0 %v7792_v26  ;;  %v7841_v26 = vld [vmem:[#allocation20 + $0x520] ss:$24 sps:$4 sm:$0xff]  }
 0x763   :  { %5391 = vmatpush1.bf16.msra.mxu0 %v7790_v20  ;;  %v7846_v20 = vld [vmem:[#allocation20 + $0x554] ss:$24 sps:$4 sm:$0xff]  }
 0x764   :  { %5392 = vmatprep.subr.bf16.mxu0 %v7795_v21  ;;  %v7844_v21 = vld [vmem:[#allocation20 + $0x550] ss:$24 sps:$4 sm:$0xff]  }
 0x767   :  { %5393 = vmatpush1.bf16.msra.mxu0 %v7793_v22  ;;  %v7849_v22 = vld [vmem:[#allocation20 + $0x584] ss:$24 sps:$4 sm:$0xff]  }
 0x768   :  { %5394 = vmatprep.subr.bf16.mxu0 %v7798_v24  ;;  %v7847_v24 = vld [vmem:[#allocation20 + $0x580] ss:$24 sps:$4 sm:$0xff]  }
 0x76b   :  { %5395 = vmatpush1.bf16.msra.mxu0 %v7796_v27  ;;  %v7852_v27 = vld [vmem:[#allocation20 + $0x5b4] ss:$24 sps:$4 sm:$0xff]  }
 0x76c   :  { %5396 = vmatprep.subr.bf16.mxu0 %v7801_v28  ;;  %v7850_v28 = vld [vmem:[#allocation20 + $0x5b0] ss:$24 sps:$4 sm:$0xff]  }
 0x76f   :  { %5397 = vmatpush1.bf16.msra.mxu0 %v7799_v29  ;;  %v7855_v29 = vld [vmem:[#allocation20 + $0x5e4] ss:$24 sps:$4 sm:$0xff]  }
 0x770   :  { %5398 = vmatprep.subr.bf16.mxu0 %v7804_v31  ;;  %v7853_v31 = vld [vmem:[#allocation20 + $0x5e0] ss:$24 sps:$4 sm:$0xff]  }
 0x773   :  { %5399 = vmatpush1.bf16.msra.mxu0 %v7802_v32  ;;  %v7858_v32 = vld [vmem:[#allocation20 + $0x614] ss:$24 sps:$4 sm:$0xff]  }
 0x774   :  { %5400 = vmatprep.subr.bf16.mxu0 %v7807_v34  ;;  %v7856_v34 = vld [vmem:[#allocation20 + $0x610] ss:$24 sps:$4 sm:$0xff]  }
 0x777   :  { %5401 = vmatpush1.bf16.msra.mxu0 %v7805_v35  ;;  %v7861_v35 = vld [vmem:[#allocation20 + $0x644] ss:$24 sps:$4 sm:$0xff]  }
 0x778   :  { %5411 = vmatprep.subr.bf16.mxu0 %v7810_v37  ;;  %v7864_v37 = vld [vmem:[#allocation20 + $0x674] ss:$24 sps:$4 sm:$0xff]  }
 0x77a   :  { %5403 = vmatmul.mubr.bf16.vlgmr.msra.gmra.mrb[32].mxu0 %v8772_v3  ;;  %v7817_v3 = vld [vmem:[#allocation20 + $0x3a0] ss:$24 sps:$4 sm:$0xff]  }
 0x77b   :  { %5412 = vmatpush1.bf16.msra.mxu0 %v7808_v7  ;;  %5443 = vmatprep.mubr.bf16.mxu0 %v8778_v6  ;;  %v7913_v6 = vld [vmem:[#allocation23 + $0x20] sm:$0xff]  }
 0x77c   :  { %5413 = vmatprep.subr.bf16.mxu0 %v7813_v42  ;;  %6827 = vmatpush3.bf16.msra.mxu1 %v7913_v6  ;;  %v7867_v7 = vld [vmem:[#allocation20 + $0x6a4] ss:$24 sps:$4 sm:$0xff]   ;;  %v7870_v42 = vld [vmem:[#allocation20 + $0x6d4] ss:$24 sps:$4 sm:$0xff]   ;;  %v7889_v6 = vld [vmem:[#allocation20 + $0x820] ss:$24 sps:$4 sm:$0xff]  }
 0x77d   :  { %6828 = vmatprep.subr.bf16.mxu1 %v7914_v46  ;;  %v7894_v46 = vld [vmem:[#allocation20 + $0x854] ss:$24 sps:$4 sm:$0xff]  }
 0x77f   :  { %5414 = vmatpush1.bf16.msra.mxu0 %v7811_v0  ;;  %v7876_v0 = vld [vmem:[#allocation20 + $0x734] ss:$24 sps:$4 sm:$0xff]  }
 0x780   :  { %5415 = vmatprep.subr.bf16.mxu0 %v7816_v47  ;;  %6829 = vmatpush3.bf16.msra.mxu1 %v7915_v4  ;;  %v7879_v47 = vld [vmem:[#allocation20 + $0x764] ss:$24 sps:$4 sm:$0xff]   ;;  %v7895_v4 = vld [vmem:[#allocation20 + $0x880] ss:$24 sps:$4 sm:$0xff]  }
 0x781   :  { %6830 = vmatprep.subr.bf16.mxu1 %v7916_v61  ;;  %v7904_v61 = vld [vmem:[#allocation20 + $0x8e4] ss:$24 sps:$4 sm:$0xff]  }
 0x783   :  { %5416 = vmatpush1.bf16.msra.mxu0 %v7814_v49  ;;  %v7880_v49 = vld [vmem:[#allocation20 + $0x790] ss:$24 sps:$4 sm:$0xff]  }
 0x784   :  { %5417 = vmatprep.subr.bf16.mxu0 %v7819_v51  ;;  %6831 = vmatpush3.bf16.msra.mxu1 %v7917_v63  ;;  %v7885_v51 = vld [vmem:[#allocation20 + $0x7c4] ss:$24 sps:$4 sm:$0xff]   ;;  %v7902_v63 = vld [vmem:[#allocation20 + $0x8e0] ss:$24 sps:$4 sm:$0xff]  }
 0x785   :  { %6832 = vmatprep.subr.bf16.mxu1 %v7918_v30 }
 0x787   :  { %5418 = vmatpush1.bf16.msra.mxu0 %v7817_v3  ;;  %v7886_v3 = vld [vmem:[#allocation20 + $0x7f0] ss:$24 sps:$4 sm:$0xff]  }
 0x788   :  { %5419 = vmatprep.subr.bf16.mxu0 %v7822_v55  ;;  %6833 = vmatpush3.bf16.msra.mxu1 %v7919_v12  ;;  %v7891_v55 = vld [vmem:[#allocation20 + $0x824] ss:$24 sps:$4 sm:$0xff]  }
 0x789   :  { %6840 = vmatprep.subr.bf16.mxu1 %v7920_v2 }
 0x78b   :  { %5420 = vmatpush1.bf16.msra.mxu0 %v7820_v56  ;;  %v7892_v56 = vld [vmem:[#allocation20 + $0x850] ss:$24 sps:$4 sm:$0xff]  }
 0x78c   :  { %5421 = vmatprep.subr.bf16.mxu0 %v7825_v57  ;;  %v7897_v57 = vld [vmem:[#allocation20 + $0x884] ss:$24 sps:$4 sm:$0xff]  }
 0x78f   :  { %5422 = vmatpush1.bf16.msra.mxu0 %v7823_v59  ;;  %v7900_v59 = vld [vmem:[#allocation20 + $0x8b4] ss:$24 sps:$4 sm:$0xff]  }
 0x790   :  { %5423 = vmatprep.subr.bf16.mxu0 %v7828_v14  ;;  %v7898_v14 = vld [vmem:[#allocation20 + $0x8b0] ss:$24 sps:$4 sm:$0xff]  }
 0x793   :  { %5424 = vmatpush1.bf16.msra.mxu0 %v7826_v1  ;;  %v8813_v1 = vld [vmem:[#allocation22] sm:$0x3f] }
 0x794   :  { %5425 = vmatprep.subr.bf16.mxu0 %v7831_v62  ;;  %v3657_v62 = vrot.slane %v8813_v1, %v8658_v13  ;;  %v3661_v30 = vrot.slane %v8813_v1, %v8663_v15  ;;  %v3669_v12 = vrot.slane %v8813_v1, %v8670_v23  ;;  %v7923_v23 = vld [vmem:[#allocation23 + $0x88] sm:$0xff]  }
 0x797   :  { %5426 = vmatpush1.bf16.msra.mxu0 %v7829_v5 }
 0x798   :  { %5427 = vmatprep.subr.bf16.mxu0 %v7834_v8 }
 0x79b   :  { %5428 = vmatpush1.bf16.msra.mxu0 %v7832_v9 }
 0x79c   :  { %5429 = vmatprep.subr.bf16.mxu0 %v7837_v10 }
 0x79f   :  { %5430 = vmatpush1.bf16.msra.mxu0 %v7835_v36 }
 0x7a0   :  { %5431 = vmatprep.subr.bf16.mxu0 %v7840_v17 }
 0x7a3   :  { %5432 = vmatpush1.bf16.msra.mxu0 %v7838_v52 }
 0x7a4   :  { %5433 = vmatprep.subr.bf16.mxu0 %v7843_v18 }
 0x7a7   :  { %5434 = vmatpush1.bf16.msra.mxu0 %v7841_v26 }
 0x7a8   :  { %5435 = vmatprep.subr.bf16.mxu0 %v7846_v20 }
 0x7ab   :  { %5436 = vmatpush1.bf16.msra.mxu0 %v7844_v21 }
 0x7ac   :  { %5437 = vmatprep.subr.bf16.mxu0 %v7849_v22 }
 0x7af   :  { %5438 = vmatpush1.bf16.msra.mxu0 %v7847_v24  ;;  %v7921_v24 = vld [vmem:[#allocation23 + $0x80] sm:$0xff]  }
 0x7b0   :  { %5439 = vmatprep.subr.bf16.mxu0 %v7852_v27  ;;  %v7922_v27 = vld [vmem:[#allocation23 + $0xc8] sm:$0xff]  }
 0x7b3   :  { %5440 = vmatpush1.bf16.msra.mxu0 %v7850_v28 }
 0x7b4   :  { %5441 = vmatprep.subr.bf16.mxu0 %v7855_v29  ;;  %v7924_v29 = vld [vmem:[#allocation23 + $0xd0] sm:$0xff]  }
 0x7b7   :  { %5442 = vmatpush1.bf16.msra.mxu0 %v7853_v31  ;;  %v7925_v31 = vld [vmem:[#allocation23 + $0x90] sm:$0xff]  }
 0x7b8   :  { %5452 = vmatprep.subr.bf16.mxu0 %v7858_v32  ;;  %v7926_v32 = vld [vmem:[#allocation23 + $0xd8] sm:$0xff]  }
 0x7ba   :  { %5444 = vmatmul.mubr.bf16.vlgmr.msra.gmra.mrb[32].mxu0 %v8792_v50  ;;  %v7871_v50 = vld [vmem:[#allocation20 + $0x700] ss:$24 sps:$4 sm:$0xff]  }
 0x7bb   :  { %5453 = vmatpush1.bf16.msra.mxu0 %v7856_v34  ;;  %5484 = vmatprep.mubr.bf16.mxu0 %v8794_v39  ;;  %v7874_v39 = vld [vmem:[#allocation20 + $0x730] ss:$24 sps:$4 sm:$0xff]   ;;  %v7927_v34 = vld [vmem:[#allocation23 + $0x98] sm:$0xff]  }
 0x7bc   :  { %5454 = vmatprep.subr.bf16.mxu0 %v7861_v35  ;;  %v7928_v35 = vld [vmem:[#allocation23 + $0xe0] sm:$0xff]  }
 0x7bf   :  { %5455 = vmatpush1.bf16.msra.mxu0 %v7859_v33  ;;  %v7929_v33 = vld [vmem:[#allocation23 + $0xa0] sm:$0xff]  }
 0x7c0   :  { %5456 = vmatprep.subr.bf16.mxu0 %v7864_v37  ;;  %v7930_v37 = vld [vmem:[#allocation23 + $0xe8] sm:$0xff]  }
 0x7c3   :  { %5457 = vmatpush1.bf16.msra.mxu0 %v7862_v19  ;;  %v7931_v19 = vld [vmem:[#allocation23 + $0xa8] sm:$0xff]  }
 0x7c4   :  { %5458 = vmatprep.subr.bf16.mxu0 %v7867_v7  ;;  %v3665_v7 = vrot.slane %v8813_v1, %v8693_v38  ;;  %v7939_v38 = vld [vmem:[#allocation23 + $0x108] sm:$0xff]  }
 0x7c7   :  { %5459 = vmatpush1.bf16.msra.mxu0 %v7865_v41  ;;  %v7932_v41 = vld [vmem:[#allocation23 + $0xf0] sm:$0xff]  }
 0x7c8   :  { %5460 = vmatprep.subr.bf16.mxu0 %v7870_v42  ;;  %v7933_v42 = vld [vmem:[#allocation23 + $0xb0] sm:$0xff]  }
 0x7cb   :  { %5461 = vmatpush1.bf16.msra.mxu0 %v7868_v43 }
 0x7cc   :  { %5462 = vmatprep.subr.bf16.mxu0 %v7873_v45  ;;  %v7934_v45 = vld [vmem:[#allocation23 + $0xf8] sm:$0xff]  }
 0x7cf   :  { %5463 = vmatpush1.bf16.msra.mxu0 %v7871_v50  ;;  %v7935_v50 = vld [vmem:[#allocation23 + $0xb8] sm:$0xff]  }
 0x7d0   :  { %5464 = vmatprep.subr.bf16.mxu0 %v7876_v0 }
 0x7d3   :  { %5465 = vmatpush1.bf16.msra.mxu0 %v7874_v39  ;;  %v7936_v39 = vld [vmem:[#allocation23 + $0x140] sm:$0xff]  }
 0x7d4   :  { %5466 = vmatprep.subr.bf16.mxu0 %v7879_v47  ;;  %v7937_v47 = vld [vmem:[#allocation23 + $0x100] sm:$0xff]  }
 0x7d7   :  { %5467 = vmatpush1.bf16.msra.mxu0 %v7877_v48 }
 0x7d8   :  { %5468 = vmatprep.subr.bf16.mxu0 %v7882_v25  ;;  %v7938_v25 = vld [vmem:[#allocation23 + $0x148] sm:$0xff]  }
 0x7db   :  { %5469 = vmatpush1.bf16.msra.mxu0 %v7880_v49  ;;  %v7940_v49 = vld [vmem:[#allocation23 + $0x150] sm:$0xff]  }
 0x7dc   :  { %5470 = vmatprep.subr.bf16.mxu0 %v7885_v51  ;;  %v7941_v51 = vld [vmem:[#allocation23 + $0x110] sm:$0xff]  }
 0x7df   :  { %5471 = vmatpush1.bf16.msra.mxu0 %v7883_v53  ;;  %v7942_v53 = vld [vmem:[#allocation23 + $0x158] sm:$0xff]  }
 0x7e0   :  { %5472 = vmatprep.subr.bf16.mxu0 %v7888_v54  ;;  %v7943_v54 = vld [vmem:[#allocation23 + $0x118] sm:$0xff]  }
 0x7e3   :  { %5473 = vmatpush1.bf16.msra.mxu0 %v7886_v3  ;;  %v7944_v3 = vld [vmem:[#allocation23 + $0x160] sm:$0xff]  }
 0x7e4   :  { %5474 = vmatprep.subr.bf16.mxu0 %v7891_v55  ;;  %v7945_v55 = vld [vmem:[#allocation23 + $0x120] sm:$0xff]  }
 0x7e7   :  { %5475 = vmatpush1.bf16.msra.mxu0 %v7889_v6  ;;  %v7946_v6 = vld [vmem:[#allocation23 + $0x168] sm:$0xff]  }
 0x7e8   :  { %5476 = vmatprep.subr.bf16.mxu0 %v7894_v46  ;;  %v7947_v46 = vld [vmem:[#allocation23 + $0x128] sm:$0xff]  }
 0x7eb   :  { %5477 = vmatpush1.bf16.msra.mxu0 %v7892_v56  ;;  %v7948_v56 = vld [vmem:[#allocation23 + $0x170] sm:$0xff]  }
 0x7ec   :  { %5478 = vmatprep.subr.bf16.mxu0 %v7897_v57  ;;  %v7949_v57 = vld [vmem:[#allocation23 + $0x130] sm:$0xff]  }
 0x7ef   :  { %5479 = vmatpush1.bf16.msra.mxu0 %v7895_v4  ;;  %v7950_v4 = vld [vmem:[#allocation23 + $0x178] sm:$0xff]  }
 0x7f0   :  { %5480 = vmatprep.subr.bf16.mxu0 %v7900_v59  ;;  %v7951_v59 = vld [vmem:[#allocation23 + $0x138] sm:$0xff]  }
 0x7f3   :  { %5481 = vmatpush1.bf16.msra.mxu0 %v7898_v14  ;;  %v3673_v14 = vrot.slane %v8813_v1, %v8713_v60 }
 0x7f4   :  { %5482 = vmatprep.subr.bf16.mxu0 %v7904_v61  ;;  %v3677_v61 = vrot.slane %v8813_v1, %v8696_v44 }
 0x7f7   :  { %5483 = vmatpush1.bf16.msra.mxu0 %v7902_v63 }
 0x7fa   :  { %5485 = vmatmul.mubr.bf16.vlgmr.msra.gmra.mrb[32].mxu0 %v8803_v58 }
 0x80d   :  { %v5240_v5 = vpop.f32.mrb[28].mxu0 }
 0x80e   :  { %v6890_v8 = vadd.f32 %v5240_v5, %v3657_v62  ;;  %v5363_v2 = vpop.f32.mrb[20].mxu1  ;;  %v5242_v9 = vpop.f32.mrb[29].mxu0 }
 0x80f   :  { %v6891_v10 = vadd.f32 %v5242_v9, %v3661_v30  ;;  %v5365_v36 = vpop.f32.mrb[21].mxu1  ;;  %v5244_v17 = vpop.f32.mrb[30].mxu0  ;;  %v6892_v43 = vadd.f32 %v5363_v2, %v3665_v7 }
 0x810   :  { %v5493_v52 = vmax.f32 %v6890_v8, 0.0  ;;  %v6893_v58 = vadd.f32 %v5365_v36, %v3669_v12  ;;  %v5367_v18 = vpop.f32.mrb[22].mxu1  ;;  %v5245_v26 = vpop.f32.mrb[31].mxu0 }
 0x811   :  { %v5494_v20 = vmax.f32 %v6891_v10, 0.0  ;;  %v5368_v21 = vpop.f32.mrb[23].mxu1  ;;  %v5495_v0 = vmax.f32 %v6892_v43, 0.0  ;;  %v6703_v26 = vld [vmem:[#allocation25] ss:$0 sm:$0xff] }
 0x812   :  { %v5496_v13 = vmax.f32 %v6893_v58, 0.0  ;;  %v5499_v15 = vpack.c.bf16 %v5493_v52, %v5493_v52 }
 0x813   :  { %v5500_v22 = vpack.c.bf16 %v5494_v20, %v5494_v20  ;;  %v5501_v48 = vpack.c.bf16 %v5495_v0, %v5495_v0 }
 0x814   :  { %v5502_v28 = vpack.c.bf16 %v5496_v13, %v5496_v13 }
 0x815   :  { %5928 = vmatprep.mubr.bf16.mxu1 %v5500_v22 }
 0x816   :  { %5929 = vmatmul.mubr.bf16.vlgmr.msra.gmra.mrb[24].mxu1 %v5499_v15  ;;  %v6017_v15 = vand.u32 127, %v248_v11 }
 0x817   :  { %6841 = vmatpush3.bf16.msra.mxu1 %v7921_v24  ;;  %5968 = vmatprep.mubr.bf16.mxu1 %v5502_v28 }
 0x818   :  { %6842 = vmatprep.subr.bf16.mxu1 %v7922_v27  ;;  %vm6021_vm4 = vcmp.ge.s32.totalorder %v6017_v15, 12  ;;  %vm6022_vm5 = vcmp.lt.s32.totalorder %v6017_v15, 20  ;;  %vm6018_vm6 = vcmp.ge.s32.totalorder %v6017_v15, 4  ;;  %vm6019_vm7 = vcmp.lt.s32.totalorder %v6017_v15, 12 }
 0x819   :  { %vm6023_vm8 = vmand %vm6021_vm4, %vm6022_vm5 }
 0x81a   :  { %vm6020_vm9 = vmand %vm6018_vm6, %vm6019_vm7 }
 0x81b   :  { %6843 = vmatpush3.bf16.msra.mxu1 %v7923_v23 }
 0x81c   :  { %6844 = vmatprep.subr.bf16.mxu1 %v7924_v29 }
 0x81f   :  { %6845 = vmatpush3.bf16.msra.mxu1 %v7925_v31  ;;  %v6024_v31 = vsel %vm6023_vm8, %v8750_v16, 0.0 }
 0x820   :  { %6846 = vmatprep.subr.bf16.mxu1 %v7926_v32 }
 0x823   :  { %6847 = vmatpush3.bf16.msra.mxu1 %v7927_v34 }
 0x824   :  { %6848 = vmatprep.subr.bf16.mxu1 %v7928_v35  ;;  %v6025_v35 = vsel %vm6020_vm9, %v8743_v40, %v6024_v31 }
 0x827   :  { %6849 = vmatpush3.bf16.msra.mxu1 %v7929_v33 }
 0x828   :  { %6850 = vmatprep.subr.bf16.mxu1 %v7930_v37 }
 0x82b   :  { %6851 = vmatpush3.bf16.msra.mxu1 %v7931_v19 }
 0x82c   :  { %6852 = vmatprep.subr.bf16.mxu1 %v7932_v41 }
 0x82f   :  { %6853 = vmatpush3.bf16.msra.mxu1 %v7933_v42 }
 0x830   :  { %6854 = vmatprep.subr.bf16.mxu1 %v7934_v45 }
 0x833   :  { %6855 = vmatpush3.bf16.msra.mxu1 %v7935_v50 }
 0x834   :  { %6862 = vmatprep.subr.bf16.mxu1 %v7936_v39 }
 0x836   :  { %5969 = vmatmul.mubr.bf16.vlgmr.msra.gmra.mrb[28].mxu1 %v5501_v48 }
 0x837   :  { %6863 = vmatpush3.bf16.msra.mxu1 %v7937_v47 }
 0x838   :  { %6864 = vmatprep.subr.bf16.mxu1 %v7938_v25 }
 0x83b   :  { %6865 = vmatpush3.bf16.msra.mxu1 %v7939_v38 }
 0x83c   :  { %6866 = vmatprep.subr.bf16.mxu1 %v7940_v49 }
 0x83f   :  { %6867 = vmatpush3.bf16.msra.mxu1 %v7941_v51 }
 0x840   :  { %6868 = vmatprep.subr.bf16.mxu1 %v7942_v53 }
 0x843   :  { %6869 = vmatpush3.bf16.msra.mxu1 %v7943_v54 }
 0x844   :  { %6870 = vmatprep.subr.bf16.mxu1 %v7944_v3 }
 0x847   :  { %6871 = vmatpush3.bf16.msra.mxu1 %v7945_v55 }
 0x848   :  { %6872 = vmatprep.subr.bf16.mxu1 %v7946_v6 }
 0x84b   :  { %6873 = vmatpush3.bf16.msra.mxu1 %v7947_v46 }
 0x84c   :  { %6874 = vmatprep.subr.bf16.mxu1 %v7948_v56 }
 0x84f   :  { %6875 = vmatpush3.bf16.msra.mxu1 %v7949_v57 }
 0x850   :  { %6876 = vmatprep.subr.bf16.mxu1 %v7950_v4 }
 0x853   :  { %6877 = vmatpush3.bf16.msra.mxu1 %v7951_v59 }
 0x8cd   :  { %v5486_v63 = vpop.f32.mrb[32].mxu0 }
 0x8ce   :  { %v6894_v62 = vadd.f32 %v5486_v63, %v3673_v14  ;;  %v5488_v30 = vpop.f32.mrb[33].mxu0 }
 0x8cf   :  { %v6895_v12 = vadd.f32 %v5488_v30, %v3677_v61  ;;  %v5490_v5 = vpop.f32.mrb[34].mxu0 }
 0x8d0   :  { %v5497_v8 = vmax.f32 %v6894_v62, 0.0  ;;  %v5491_v2 = vpop.f32.mrb[35].mxu0 }
 0x8d1   :  { %v5498_v9 = vmax.f32 %v6895_v12, 0.0 }
 0x8d2   :  { %v5503_v36 = vpack.c.bf16 %v5497_v8, %v5497_v8 }
 0x8d3   :  { %v5504_v10 = vpack.c.bf16 %v5498_v9, %v5498_v9 }
 0x8d5   :  { %6008 = vmatprep.mubr.bf16.mxu1 %v5504_v10 }
 0x8d6   :  { %6009 = vmatmul.mubr.bf16.vlgmr.msra.gmra.mrb[32].mxu1 %v5503_v36 }
 0x8e9   :  { %v6834_v17 = vpop.f32.mrb[24].mxu1 }
 0x8ea   :  { %v6835_v52 = vpop.f32.mrb[25].mxu1 }
 0x8eb   :  { %v6836_v58 = vadd.f32 %v6835_v52, %v6834_v17  ;;  %v6837_v18 = vpop.f32.mrb[26].mxu1 }
 0x8ec   :  { %v6838_v60 = vpop.f32.mrb[27].mxu1 }
 0x8ed   :  { %v5931_v1 = vadd.f32 %v6836_v58, %v6703_v26 }
 0x909   :  { %v6856_v20 = vpop.f32.mrb[28].mxu1 }
 0x90a   :  { %v6857_v44 = vpop.f32.mrb[29].mxu1 }
 0x90b   :  { %v6858_v21 = vadd.f32 %v6857_v44, %v6856_v20  ;;  %v6859_v13 = vpop.f32.mrb[30].mxu1 }
 0x90c   :  { %v6860_v22 = vpop.f32.mrb[31].mxu1 }
 0x90d   :  { %v5971_v24 = vadd.f32 %v6858_v21, %v5931_v1 }
 0x9a9   :  { %v6878_v27 = vpop.f32.mrb[32].mxu1 }
 0x9aa   :  { %v6879_v28 = vpop.f32.mrb[33].mxu1 }
 0x9ab   :  { %v6880_v23 = vadd.f32 %v6879_v28, %v6878_v27  ;;  %v6881_v29 = vpop.f32.mrb[34].mxu1 }
 0x9ac   :  { %v6882_v32 = vpop.f32.mrb[35].mxu1 }
 0x9ad   :  { %v6011_v34 = vadd.f32 %v6880_v23, %v5971_v24 }
 0x9af   :  { %v6026_v33 = vadd.f32 %v6025_v35, %v6011_v34 }
 0x9b1   :  { %6027 = vst [vmem:[#allocation26] sm:$0xff] %v6026_v33 }
 0x9b2   :  { %8296 = shalt.err (!%p8293_p12)
}
 0x9b3   :  { %s8297_s17 = scalar_lea.hbm %s8857_s15, 128 }
 0x9b4   :  { %p8298_p13 = scmp.ne.s32.totalorder %s8857_s15, %s8297_s17  ;;  %p8301_p0 = scmp.lt.u32.totalorder %s8297_s17, %s8857_s15 }
 0x9b6   :  { %p8303_p1 = pnand %p8301_p0, %p8298_p13 }
 0x9b8   :  { %8306 = shalt.err (!%p8303_p1)
}
 0x9b9   :  { %6037 = dma.vmem_to_hbm [thread:$0]  %s6035_s8, 128, %s8857_s15, [#allocation4]  }
 0x9ba   :  { %8323 = dma.done.wait [#allocation4], 128  }
 0x9bb   :  { %8324 = vsyncadd [#allocation4], 4294967168 }
 0x9bc   :  { %6041 = vsyncpa [#allocation3], 1 }
 0x9bd   :  { %6042 = vsyncpa [#allocation6], 1 }
 0x9be   :  { %6043 = vsyncpa [#allocation9], 1 }
 0x9bf   :  { %6044 = vsyncpa [#allocation12], 1 }
 0x9c0   :  { %6045 = vsyncpa [#allocation15], 1 }
 0x9c1   :  { %6046 = vsyncpa [#allocation18], 1 }
 0x9c2   :  { %6047 = vsyncpa [#allocation21], 1 }
 0x9c3   :  { %6048 = vsyncpa [#allocation24], 1 }
 0x9c4   :  { %6049 = vsyncpa [#allocation4], 1 }

</bundles_post_ra>
